<compile_context>
chip_gen: v6e
topology: v6e:2x2x1
jax: 0.10.0
libtpu: 0.0.40
codegen_flags: <defaults>
</compile_context>

<pallas_src>
import functools

import jax
import jax.numpy as jnp
import numpy as np
from jax import lax
from jax.experimental import pallas as pl
from jax.experimental.pallas import tpu as pltpu


def _bilinear_matrix(out_size, in_size):
    """Row-resampling matrix (out, in) for bilinear, align_corners=True."""
    if out_size == 1:
        src = np.zeros((1,), np.float64)
    else:
        src = np.arange(out_size, dtype=np.float64) * (in_size - 1) / (out_size - 1)
    lo = np.clip(np.floor(src).astype(np.int64), 0, in_size - 1)
    hi = np.clip(lo + 1, 0, in_size - 1)
    frac = src - lo
    R = np.zeros((out_size, in_size), np.float64)
    R[np.arange(out_size), lo] += 1.0 - frac
    R[np.arange(out_size), hi] += frac
    return jnp.asarray(R, jnp.float32)


def _decode_psp_kernel(xflat_ref, w3_ref, scale_ref, bias_ref, w1_ref, b1_ref,
                       rh_ref, rwp_ref, out_ref, acc_ref, *,
                       H, Wp, channels_major_out):
    k = pl.program_id(1)
    HWp = H * Wp

    @pl.when(k == 0)
    def _init():
        acc_ref[...] = jnp.zeros_like(acc_ref)

    # conv2DBatchNormRelu's 3x3 conv (pad=1, stride=1, no bias), this Cin slab:
    # 9 shifted matmuls over the flattened padded tile.  Tap (dy, dx) is the
    # contiguous row window starting at dy*Wp+dx; accumulator row y*Wp+x is
    # output pixel (y, x) for x < W and a discarded halo column for x >= W.
    for dy in range(3):
        for dx in range(3):
            patch = xflat_ref[pl.ds(dy * Wp + dx, HWp), :]      # (HWp, TK) bf16
            acc_ref[...] += jnp.dot(patch, w3_ref[dy * 3 + dx],
                                    preferred_element_type=jnp.float32)

    @pl.when(k == pl.num_programs(1) - 1)
    def _finalize():
        ncls = w1_ref.shape[-1]
        # Folded BatchNorm2d + ReLU.
        mid = jnp.maximum(acc_ref[...] * scale_ref[...] + bias_ref[...], 0.0)
        # Dropout2d(p=0.1) is identity at inference.
        # TODO(synk): train-mode channel dropout not implemented (eval semantics).
        # 1x1 classification conv (+ bias).
        logits = jnp.dot(mid, w1_ref[...],
                         preferred_element_type=jnp.float32) + b1_ref[...]
        l3 = logits.reshape(H, Wp, ncls)                         # (h, w, c)
        if channels_major_out:
            # Separable align_corners bilinear.  dot_general output orders are
            # chosen so the result lands channel-major with a lane-dense
            # (..., OW) layout and no extra transposes:
            #   (h,w,c) x (o,h) -> (w,c,o);  (w,c,o) x (p,w) -> (c,o,p)
            t1 = lax.dot_general(l3, rh_ref[...],
                                 (((0,), (1,)), ((), ())),
                                 preferred_element_type=jnp.float32)
            out = lax.dot_general(t1, rwp_ref[...],
                                  (((0,), (1,)), ((), ())),
                                  preferred_element_type=jnp.float32)
        else:
            # Channel-minor fallback (same math, previously-validated op set).
            t1 = jnp.einsum('oh,hwc->owc', rh_ref[...], l3,
                            preferred_element_type=jnp.float32)
            out = jnp.einsum('pw,owc->opc', rwp_ref[...], t1,
                             preferred_element_type=jnp.float32)
        out_ref[...] = out.astype(out_ref.dtype)


def _decode_psp_impl(x_nchw, params, height, width, *, channels_major_out):
    x = jnp.transpose(x_nchw, (0, 2, 3, 1)).astype(jnp.bfloat16)   # NHWC bf16
    N, H, W, Cin = x.shape
    Cmid = params['w3'].shape[-1]
    ncls = params['w1'].shape[-1]
    OH, OW = height, width
    Wp = W + 2

    # Spatial zero-pad (1 top, 2 bottom, 1 left/right): the extra bottom row
    # lets every conv tap read a full contiguous H*Wp-row window of the
    # flattened tile.
    # TODO(synk): padding is still a host-side jnp.pad (one extra HBM round
    # trip of x); could be folded into an in-kernel DMA + memset.
    xflat = jnp.pad(x, ((0, 0), (1, 2), (1, 1), (0, 0))).reshape(
        N, (H + 3) * Wp, Cin)

    TK = 128 if Cin % 128 == 0 else Cin            # Cin reduction tile
    KT = Cin // TK

    w3 = params['w3'].astype(jnp.bfloat16)         # (9, Cin, Cmid)

    rh = _bilinear_matrix(OH, H)                   # (OH, H)
    # Width matrix over the PADDED width: zero columns kill the halo (x >= W).
    rwp = jnp.zeros((OW, Wp), jnp.float32).at[:, :W].set(_bilinear_matrix(OW, W))

    if channels_major_out:
        out_shape = jax.ShapeDtypeStruct((N, ncls, OH, OW), jnp.float32)
        out_spec = pl.BlockSpec((None, ncls, OH, OW), lambda n, k: (n, 0, 0, 0))
    else:
        out_shape = jax.ShapeDtypeStruct((N, OH, OW, ncls), jnp.float32)
        out_spec = pl.BlockSpec((None, OH, OW, ncls), lambda n, k: (n, 0, 0, 0))

    kernel = functools.partial(_decode_psp_kernel, H=H, Wp=Wp,
                               channels_major_out=channels_major_out)

    grid_spec = pltpu.PrefetchScalarGridSpec(
        num_scalar_prefetch=0,
        grid=(N, KT),
        in_specs=[
            pl.BlockSpec((None, (H + 3) * Wp, TK), lambda n, k: (n, 0, k)),
            pl.BlockSpec((9, TK, Cmid), lambda n, k: (0, k, 0)),
            pl.BlockSpec((1, Cmid), lambda n, k: (0, 0)),
            pl.BlockSpec((1, Cmid), lambda n, k: (0, 0)),
            pl.BlockSpec((Cmid, ncls), lambda n, k: (0, 0)),
            pl.BlockSpec((1, ncls), lambda n, k: (0, 0)),
            pl.BlockSpec((OH, H), lambda n, k: (0, 0)),
            pl.BlockSpec((OW, Wp), lambda n, k: (0, 0)),
        ],
        out_specs=out_spec,
        scratch_shapes=[pltpu.VMEM((H * Wp, Cmid), jnp.float32)],
    )

    out = pl.pallas_call(
        kernel,
        out_shape=out_shape,
        grid_spec=grid_spec,
        compiler_params=pltpu.CompilerParams(
            dimension_semantics=("parallel", "arbitrary")),
    )(xflat, w3, params['bn_scale'], params['bn_bias'],
      params['w1'], params['b1'], rh, rwp)

    if channels_major_out:
        return out                                   # already NCHW
    return jnp.transpose(out, (0, 3, 1, 2))          # NHWC -> NCHW


def decode_psp_feature(x_nchw, params, height, width):
    """Forward pass of DecodePSPFeature.  x_nchw: (N, Cin, H, W) float32."""
    try:
        out = _decode_psp_impl(x_nchw, params, height, width,
                               channels_major_out=True)
        return jax.block_until_ready(out)
    except Exception:
        # Guarded fallback in case this Mosaic build rejects the rank-3-LHS
        # dot_generals used for the lane-dense channel-major output layout.
        out = _decode_psp_impl(x_nchw, params, height, width,
                               channels_major_out=False)
        return jax.block_until_ready(out)


def _reference(x_nchw, params, height, width):
    """Pure-JAX reference (conv inputs bf16-rounded to match the kernel)."""
    x = jnp.transpose(x_nchw, (0, 2, 3, 1))
    xq = x.astype(jnp.bfloat16).astype(jnp.float32)
    N, H, W, Cin = x.shape
    Cmid = params['w3'].shape[-1]
    w3q = params['w3'].astype(jnp.bfloat16).astype(jnp.float32)
    w3_hwio = w3q.reshape(3, 3, Cin, Cmid)
    y = lax.conv_general_dilated(
        xq, w3_hwio, window_strides=(1, 1), padding=((1, 1), (1, 1)),
        dimension_numbers=('NHWC', 'HWIO', 'NHWC'),
        preferred_element_type=jnp.float32)
    y = jnp.maximum(y * params['bn_scale'][0] + params['bn_bias'][0], 0.0)
    logits = jnp.einsum('nhwc,ck->nhwk', y, params['w1'],
                        preferred_element_type=jnp.float32) + params['b1'][0]
    rh = _bilinear_matrix(height, H)
    rw = _bilinear_matrix(width, W)
    out = jnp.einsum('oh,pw,nhwc->nopc', rh, rw, logits)
    return jnp.transpose(out, (0, 3, 1, 2))


if __name__ == "__main__":
    # Small, module-consistent shapes (PyTorch used Cin=4096, Cmid=512).
    N, Cin, H, W = 2, 256, 8, 8
    Cmid, n_classes = 128, 8
    height, width = 16, 16            # F.interpolate target size

    key = jax.random.PRNGKey(0)
    k = jax.random.split(key, 8)
    x = jax.random.normal(k[0], (N, Cin, H, W), jnp.float32)

    # conv3x3 weight (PyTorch OIHW) -> (3,3,Cin,Cmid) -> (9,Cin,Cmid)
    w3_oihw = jax.random.normal(k[1], (Cmid, Cin, 3, 3), jnp.float32) * 0.02
    w3 = jnp.transpose(w3_oihw, (2, 3, 1, 0)).reshape(9, Cin, Cmid)

    # BatchNorm2d(Cmid) folded to per-channel scale/bias (eps = 1e-5).
    gamma = 1.0 + 0.1 * jax.random.normal(k[2], (Cmid,), jnp.float32)
    beta = 0.1 * jax.random.normal(k[3], (Cmid,), jnp.float32)
    r_mean = 0.1 * jax.random.normal(k[4], (Cmid,), jnp.float32)
    r_var = jnp.abs(1.0 + 0.1 * jax.random.normal(k[5], (Cmid,), jnp.float32))
    bn_scale = (gamma / jnp.sqrt(r_var + 1e-5)).reshape(1, Cmid)
    bn_bias = (beta - r_mean * bn_scale[0]).reshape(1, Cmid)

    # 1x1 classification conv: (ncls, Cmid, 1, 1) -> (Cmid, ncls), plus bias.
    w1 = jnp.transpose(
        jax.random.normal(k[6], (n_classes, Cmid, 1, 1), jnp.float32) * 0.05,
        (2, 3, 1, 0)).reshape(Cmid, n_classes)
    b1 = (0.01 * jax.random.normal(k[7], (n_classes,), jnp.float32)
          ).reshape(1, n_classes)

    params = dict(w3=w3, bn_scale=bn_scale, bn_bias=bn_bias, w1=w1, b1=b1)

    out = decode_psp_feature(x, params, height, width)
    out = jax.block_until_ready(out)

    ref = jax.block_until_ready(_reference(x, params, height, width))
    np.testing.assert_allclose(np.asarray(out), np.asarray(ref),
                               rtol=3e-3, atol=3e-3)
    assert out.shape == (N, n_classes, height, width)
    print("KERNEL_OK")
</pallas_src>

<mosaic_0001>
module attributes {stable_mosaic.version = 11 : i64} {
  func.func @_decode_psp_kernel(%arg0: i32, %arg1: i32, %arg2: memref<1x110x128xbf16, #tpu.memory_space<vmem>>, %arg3: memref<9x128x128xbf16, #tpu.memory_space<vmem>>, %arg4: memref<1x128xf32, #tpu.memory_space<vmem>>, %arg5: memref<1x128xf32, #tpu.memory_space<vmem>>, %arg6: memref<128x8xf32, #tpu.memory_space<vmem>>, %arg7: memref<1x8xf32, #tpu.memory_space<vmem>>, %arg8: memref<16x8xf32, #tpu.memory_space<vmem>>, %arg9: memref<16x10xf32, #tpu.memory_space<vmem>>, %arg10: memref<1x8x16x16xf32, #tpu.memory_space<vmem>>, %arg11: memref<80x128xf32, #tpu.memory_space<vmem>>) attributes {dimension_semantics = [#tpu.dimension_semantics<parallel>, #tpu.dimension_semantics<arbitrary>], iteration_bounds = array<i64: 2, 2>, scalar_prefetch = 0 : i64, scratch_operands = 1 : i64, tpu.core_type = #tpu.core_type<tc>, window_params = [{transform_indices = @transform_0, window_bounds = array<i64: 1, 110, 128>}, {transform_indices = @transform_1, window_bounds = array<i64: 9, 128, 128>}, {pipeline_mode = #tpu.pipeline_mode<synchronous>, transform_indices = @transform_2, window_bounds = array<i64: 1, 128>}, {pipeline_mode = #tpu.pipeline_mode<synchronous>, transform_indices = @transform_3, window_bounds = array<i64: 1, 128>}, {pipeline_mode = #tpu.pipeline_mode<synchronous>, transform_indices = @transform_4, window_bounds = array<i64: 128, 8>}, {pipeline_mode = #tpu.pipeline_mode<synchronous>, transform_indices = @transform_5, window_bounds = array<i64: 1, 8>}, {pipeline_mode = #tpu.pipeline_mode<synchronous>, transform_indices = @transform_6, window_bounds = array<i64: 16, 8>}, {pipeline_mode = #tpu.pipeline_mode<synchronous>, transform_indices = @transform_7, window_bounds = array<i64: 16, 10>}, {transform_indices = @transform_8, window_bounds = array<i64: 1, 8, 16, 16>}]} {
    %c0_i32 = arith.constant 0 : i32
    %0 = arith.cmpi eq, %arg1, %c0_i32 : i32
    %1 = arith.extui %0 : i1 to i32
    %c0_i32_0 = arith.constant 0 : i32
    %2 = arith.cmpi ne, %1, %c0_i32_0 : i32
    scf.if %2 {
      %cst_85 = arith.constant 0.000000e+00 : f32
      %78 = vector.broadcast %cst_85 : f32 to vector<80x128xf32>
      %c0_86 = arith.constant 0 : index
      %c0_87 = arith.constant 0 : index
      %79 = vector.load %arg11[%c0_86, %c0_87] : memref<80x128xf32, #tpu.memory_space<vmem>>, vector<80x128xf32>
      tpu.vector_store %arg11[%c0_86, %c0_87], %78 {strides = array<i32>} : memref<80x128xf32, #tpu.memory_space<vmem>>, vector<80x128xf32>,
    } else {
    }
    %c0 = arith.constant 0 : index
    %c0_1 = arith.constant 0 : index
    %c0_2 = arith.constant 0 : index
    %3 = vector.load %arg2[%c0, %c0_1, %c0_2] : memref<1x110x128xbf16, #tpu.memory_space<vmem>>, vector<1x80x128xbf16>
    %4 = vector.shape_cast %3 : vector<1x80x128xbf16> to vector<80x128xbf16>
    %c0_3 = arith.constant 0 : index
    %c0_4 = arith.constant 0 : index
    %5 = vector.load %arg11[%c0_3, %c0_4] : memref<80x128xf32, #tpu.memory_space<vmem>>, vector<80x128xf32>
    %c0_5 = arith.constant 0 : index
    %c0_6 = arith.constant 0 : index
    %c0_7 = arith.constant 0 : index
    %6 = vector.load %arg3[%c0_5, %c0_6, %c0_7] : memref<9x128x128xbf16, #tpu.memory_space<vmem>>, vector<1x128x128xbf16>
    %7 = vector.shape_cast %6 : vector<1x128x128xbf16> to vector<128x128xbf16>
    %cst = arith.constant dense<0.000000e+00> : vector<80x128xf32>
    %8 = tpu.matmul %4, %7, %cst {dimension_numbers = #tpu.dot_dimension_numbers<[1], [0], [0], [1], [0, 0, 1, 1], [], []>} : vector<80x128xbf16>, vector<128x128xbf16>, vector<80x128xf32> -> vector<80x128xf32>
    %9 = arith.addf %5, %8 : vector<80x128xf32>
    %c0_8 = arith.constant 0 : index
    %c0_9 = arith.constant 0 : index
    %10 = vector.load %arg11[%c0_8, %c0_9] : memref<80x128xf32, #tpu.memory_space<vmem>>, vector<80x128xf32>
    tpu.vector_store %arg11[%c0_8, %c0_9], %9 {strides = array<i32>} : memref<80x128xf32, #tpu.memory_space<vmem>>, vector<80x128xf32>,
    %c0_10 = arith.constant 0 : index
    %c1 = arith.constant 1 : index
    %c0_11 = arith.constant 0 : index
    %11 = vector.load %arg2[%c0_10, %c1, %c0_11] : memref<1x110x128xbf16, #tpu.memory_space<vmem>>, vector<1x80x128xbf16>
    %12 = vector.shape_cast %11 : vector<1x80x128xbf16> to vector<80x128xbf16>
    %c0_12 = arith.constant 0 : index
    %c0_13 = arith.constant 0 : index
    %13 = vector.load %arg11[%c0_12, %c0_13] : memref<80x128xf32, #tpu.memory_space<vmem>>, vector<80x128xf32>
    %c1_14 = arith.constant 1 : index
    %c0_15 = arith.constant 0 : index
    %c0_16 = arith.constant 0 : index
    %14 = vector.load %arg3[%c1_14, %c0_15, %c0_16] : memref<9x128x128xbf16, #tpu.memory_space<vmem>>, vector<1x128x128xbf16>
    %15 = vector.shape_cast %14 : vector<1x128x128xbf16> to vector<128x128xbf16>
    %cst_17 = arith.constant dense<0.000000e+00> : vector<80x128xf32>
    %16 = tpu.matmul %12, %15, %cst_17 {dimension_numbers = #tpu.dot_dimension_numbers<[1], [0], [0], [1], [0, 0, 1, 1], [], []>} : vector<80x128xbf16>, vector<128x128xbf16>, vector<80x128xf32> -> vector<80x128xf32>
    %17 = arith.addf %13, %16 : vector<80x128xf32>
    %c0_18 = arith.constant 0 : index
    %c0_19 = arith.constant 0 : index
    %18 = vector.load %arg11[%c0_18, %c0_19] : memref<80x128xf32, #tpu.memory_space<vmem>>, vector<80x128xf32>
    tpu.vector_store %arg11[%c0_18, %c0_19], %17 {strides = array<i32>} : memref<80x128xf32, #tpu.memory_space<vmem>>, vector<80x128xf32>,
    %c0_20 = arith.constant 0 : index
    %c2 = arith.constant 2 : index
    %c0_21 = arith.constant 0 : index
    %19 = vector.load %arg2[%c0_20, %c2, %c0_21] : memref<1x110x128xbf16, #tpu.memory_space<vmem>>, vector<1x80x128xbf16>
    %20 = vector.shape_cast %19 : vector<1x80x128xbf16> to vector<80x128xbf16>
    %c0_22 = arith.constant 0 : index
    %c0_23 = arith.constant 0 : index
    %21 = vector.load %arg11[%c0_22, %c0_23] : memref<80x128xf32, #tpu.memory_space<vmem>>, vector<80x128xf32>
    %c2_24 = arith.constant 2 : index
    %c0_25 = arith.constant 0 : index
    %c0_26 = arith.constant 0 : index
    %22 = vector.load %arg3[%c2_24, %c0_25, %c0_26] : memref<9x128x128xbf16, #tpu.memory_space<vmem>>, vector<1x128x128xbf16>
    %23 = vector.shape_cast %22 : vector<1x128x128xbf16> to vector<128x128xbf16>
    %cst_27 = arith.constant dense<0.000000e+00> : vector<80x128xf32>
    %24 = tpu.matmul %20, %23, %cst_27 {dimension_numbers = #tpu.dot_dimension_numbers<[1], [0], [0], [1], [0, 0, 1, 1], [], []>} : vector<80x128xbf16>, vector<128x128xbf16>, vector<80x128xf32> -> vector<80x128xf32>
    %25 = arith.addf %21, %24 : vector<80x128xf32>
    %c0_28 = arith.constant 0 : index
    %c0_29 = arith.constant 0 : index
    %26 = vector.load %arg11[%c0_28, %c0_29] : memref<80x128xf32, #tpu.memory_space<vmem>>, vector<80x128xf32>
    tpu.vector_store %arg11[%c0_28, %c0_29], %25 {strides = array<i32>} : memref<80x128xf32, #tpu.memory_space<vmem>>, vector<80x128xf32>,
    %c0_30 = arith.constant 0 : index
    %c10 = arith.constant 10 : index
    %c0_31 = arith.constant 0 : index
    %27 = vector.load %arg2[%c0_30, %c10, %c0_31] : memref<1x110x128xbf16, #tpu.memory_space<vmem>>, vector<1x80x128xbf16>
    %28 = vector.shape_cast %27 : vector<1x80x128xbf16> to vector<80x128xbf16>
    %c0_32 = arith.constant 0 : index
    %c0_33 = arith.constant 0 : index
    %29 = vector.load %arg11[%c0_32, %c0_33] : memref<80x128xf32, #tpu.memory_space<vmem>>, vector<80x128xf32>
    %c3 = arith.constant 3 : index
    %c0_34 = arith.constant 0 : index
    %c0_35 = arith.constant 0 : index
    %30 = vector.load %arg3[%c3, %c0_34, %c0_35] : memref<9x128x128xbf16, #tpu.memory_space<vmem>>, vector<1x128x128xbf16>
    %31 = vector.shape_cast %30 : vector<1x128x128xbf16> to vector<128x128xbf16>
    %cst_36 = arith.constant dense<0.000000e+00> : vector<80x128xf32>
    %32 = tpu.matmul %28, %31, %cst_36 {dimension_numbers = #tpu.dot_dimension_numbers<[1], [0], [0], [1], [0, 0, 1, 1], [], []>} : vector<80x128xbf16>, vector<128x128xbf16>, vector<80x128xf32> -> vector<80x128xf32>
    %33 = arith.addf %29, %32 : vector<80x128xf32>
    %c0_37 = arith.constant 0 : index
    %c0_38 = arith.constant 0 : index
    %34 = vector.load %arg11[%c0_37, %c0_38] : memref<80x128xf32, #tpu.memory_space<vmem>>, vector<80x128xf32>
    tpu.vector_store %arg11[%c0_37, %c0_38], %33 {strides = array<i32>} : memref<80x128xf32, #tpu.memory_space<vmem>>, vector<80x128xf32>,
    %c0_39 = arith.constant 0 : index
    %c11 = arith.constant 11 : index
    %c0_40 = arith.constant 0 : index
    %35 = vector.load %arg2[%c0_39, %c11, %c0_40] : memref<1x110x128xbf16, #tpu.memory_space<vmem>>, vector<1x80x128xbf16>
    %36 = vector.shape_cast %35 : vector<1x80x128xbf16> to vector<80x128xbf16>
    %c0_41 = arith.constant 0 : index
    %c0_42 = arith.constant 0 : index
    %37 = vector.load %arg11[%c0_41, %c0_42] : memref<80x128xf32, #tpu.memory_space<vmem>>, vector<80x128xf32>
    %c4 = arith.constant 4 : index
    %c0_43 = arith.constant 0 : index
    %c0_44 = arith.constant 0 : index
    %38 = vector.load %arg3[%c4, %c0_43, %c0_44] : memref<9x128x128xbf16, #tpu.memory_space<vmem>>, vector<1x128x128xbf16>
    %39 = vector.shape_cast %38 : vector<1x128x128xbf16> to vector<128x128xbf16>
    %cst_45 = arith.constant dense<0.000000e+00> : vector<80x128xf32>
    %40 = tpu.matmul %36, %39, %cst_45 {dimension_numbers = #tpu.dot_dimension_numbers<[1], [0], [0], [1], [0, 0, 1, 1], [], []>} : vector<80x128xbf16>, vector<128x128xbf16>, vector<80x128xf32> -> vector<80x128xf32>
    %41 = arith.addf %37, %40 : vector<80x128xf32>
    %c0_46 = arith.constant 0 : index
    %c0_47 = arith.constant 0 : index
    %42 = vector.load %arg11[%c0_46, %c0_47] : memref<80x128xf32, #tpu.memory_space<vmem>>, vector<80x128xf32>
    tpu.vector_store %arg11[%c0_46, %c0_47], %41 {strides = array<i32>} : memref<80x128xf32, #tpu.memory_space<vmem>>, vector<80x128xf32>,
    %c0_48 = arith.constant 0 : index
    %c12 = arith.constant 12 : index
    %c0_49 = arith.constant 0 : index
    %43 = vector.load %arg2[%c0_48, %c12, %c0_49] : memref<1x110x128xbf16, #tpu.memory_space<vmem>>, vector<1x80x128xbf16>
    %44 = vector.shape_cast %43 : vector<1x80x128xbf16> to vector<80x128xbf16>
    %c0_50 = arith.constant 0 : index
    %c0_51 = arith.constant 0 : index
    %45 = vector.load %arg11[%c0_50, %c0_51] : memref<80x128xf32, #tpu.memory_space<vmem>>, vector<80x128xf32>
    %c5 = arith.constant 5 : index
    %c0_52 = arith.constant 0 : index
    %c0_53 = arith.constant 0 : index
    %46 = vector.load %arg3[%c5, %c0_52, %c0_53] : memref<9x128x128xbf16, #tpu.memory_space<vmem>>, vector<1x128x128xbf16>
    %47 = vector.shape_cast %46 : vector<1x128x128xbf16> to vector<128x128xbf16>
    %cst_54 = arith.constant dense<0.000000e+00> : vector<80x128xf32>
    %48 = tpu.matmul %44, %47, %cst_54 {dimension_numbers = #tpu.dot_dimension_numbers<[1], [0], [0], [1], [0, 0, 1, 1], [], []>} : vector<80x128xbf16>, vector<128x128xbf16>, vector<80x128xf32> -> vector<80x128xf32>
    %49 = arith.addf %45, %48 : vector<80x128xf32>
    %c0_55 = arith.constant 0 : index
    %c0_56 = arith.constant 0 : index
    %50 = vector.load %arg11[%c0_55, %c0_56] : memref<80x128xf32, #tpu.memory_space<vmem>>, vector<80x128xf32>
    tpu.vector_store %arg11[%c0_55, %c0_56], %49 {strides = array<i32>} : memref<80x128xf32, #tpu.memory_space<vmem>>, vector<80x128xf32>,
    %c0_57 = arith.constant 0 : index
    %c20 = arith.constant 20 : index
    %c0_58 = arith.constant 0 : index
    %51 = vector.load %arg2[%c0_57, %c20, %c0_58] : memref<1x110x128xbf16, #tpu.memory_space<vmem>>, vector<1x80x128xbf16>
    %52 = vector.shape_cast %51 : vector<1x80x128xbf16> to vector<80x128xbf16>
    %c0_59 = arith.constant 0 : index
    %c0_60 = arith.constant 0 : index
    %53 = vector.load %arg11[%c0_59, %c0_60] : memref<80x128xf32, #tpu.memory_space<vmem>>, vector<80x128xf32>
    %c6 = arith.constant 6 : index
    %c0_61 = arith.constant 0 : index
    %c0_62 = arith.constant 0 : index
    %54 = vector.load %arg3[%c6, %c0_61, %c0_62] : memref<9x128x128xbf16, #tpu.memory_space<vmem>>, vector<1x128x128xbf16>
    %55 = vector.shape_cast %54 : vector<1x128x128xbf16> to vector<128x128xbf16>
    %cst_63 = arith.constant dense<0.000000e+00> : vector<80x128xf32>
    %56 = tpu.matmul %52, %55, %cst_63 {dimension_numbers = #tpu.dot_dimension_numbers<[1], [0], [0], [1], [0, 0, 1, 1], [], []>} : vector<80x128xbf16>, vector<128x128xbf16>, vector<80x128xf32> -> vector<80x128xf32>
    %57 = arith.addf %53, %56 : vector<80x128xf32>
    %c0_64 = arith.constant 0 : index
    %c0_65 = arith.constant 0 : index
    %58 = vector.load %arg11[%c0_64, %c0_65] : memref<80x128xf32, #tpu.memory_space<vmem>>, vector<80x128xf32>
    tpu.vector_store %arg11[%c0_64, %c0_65], %57 {strides = array<i32>} : memref<80x128xf32, #tpu.memory_space<vmem>>, vector<80x128xf32>,
    %c0_66 = arith.constant 0 : index
    %c21 = arith.constant 21 : index
    %c0_67 = arith.constant 0 : index
    %59 = vector.load %arg2[%c0_66, %c21, %c0_67] : memref<1x110x128xbf16, #tpu.memory_space<vmem>>, vector<1x80x128xbf16>
    %60 = vector.shape_cast %59 : vector<1x80x128xbf16> to vector<80x128xbf16>
    %c0_68 = arith.constant 0 : index
    %c0_69 = arith.constant 0 : index
    %61 = vector.load %arg11[%c0_68, %c0_69] : memref<80x128xf32, #tpu.memory_space<vmem>>, vector<80x128xf32>
    %c7 = arith.constant 7 : index
    %c0_70 = arith.constant 0 : index
    %c0_71 = arith.constant 0 : index
    %62 = vector.load %arg3[%c7, %c0_70, %c0_71] : memref<9x128x128xbf16, #tpu.memory_space<vmem>>, vector<1x128x128xbf16>
    %63 = vector.shape_cast %62 : vector<1x128x128xbf16> to vector<128x128xbf16>
    %cst_72 = arith.constant dense<0.000000e+00> : vector<80x128xf32>
    %64 = tpu.matmul %60, %63, %cst_72 {dimension_numbers = #tpu.dot_dimension_numbers<[1], [0], [0], [1], [0, 0, 1, 1], [], []>} : vector<80x128xbf16>, vector<128x128xbf16>, vector<80x128xf32> -> vector<80x128xf32>
    %65 = arith.addf %61, %64 : vector<80x128xf32>
    %c0_73 = arith.constant 0 : index
    %c0_74 = arith.constant 0 : index
    %66 = vector.load %arg11[%c0_73, %c0_74] : memref<80x128xf32, #tpu.memory_space<vmem>>, vector<80x128xf32>
    tpu.vector_store %arg11[%c0_73, %c0_74], %65 {strides = array<i32>} : memref<80x128xf32, #tpu.memory_space<vmem>>, vector<80x128xf32>,
    %c0_75 = arith.constant 0 : index
    %c22 = arith.constant 22 : index
    %c0_76 = arith.constant 0 : index
    %67 = vector.load %arg2[%c0_75, %c22, %c0_76] : memref<1x110x128xbf16, #tpu.memory_space<vmem>>, vector<1x80x128xbf16>
    %68 = vector.shape_cast %67 : vector<1x80x128xbf16> to vector<80x128xbf16>
    %c0_77 = arith.constant 0 : index
    %c0_78 = arith.constant 0 : index
    %69 = vector.load %arg11[%c0_77, %c0_78] : memref<80x128xf32, #tpu.memory_space<vmem>>, vector<80x128xf32>
    %c8 = arith.constant 8 : index
    %c0_79 = arith.constant 0 : index
    %c0_80 = arith.constant 0 : index
    %70 = vector.load %arg3[%c8, %c0_79, %c0_80] : memref<9x128x128xbf16, #tpu.memory_space<vmem>>, vector<1x128x128xbf16>
    %71 = vector.shape_cast %70 : vector<1x128x128xbf16> to vector<128x128xbf16>
    %cst_81 = arith.constant dense<0.000000e+00> : vector<80x128xf32>
    %72 = tpu.matmul %68, %71, %cst_81 {dimension_numbers = #tpu.dot_dimension_numbers<[1], [0], [0], [1], [0, 0, 1, 1], [], []>} : vector<80x128xbf16>, vector<128x128xbf16>, vector<80x128xf32> -> vector<80x128xf32>
    %73 = arith.addf %69, %72 : vector<80x128xf32>
    %c0_82 = arith.constant 0 : index
    %c0_83 = arith.constant 0 : index
    %74 = vector.load %arg11[%c0_82, %c0_83] : memref<80x128xf32, #tpu.memory_space<vmem>>, vector<80x128xf32>
    tpu.vector_store %arg11[%c0_82, %c0_83], %73 {strides = array<i32>} : memref<80x128xf32, #tpu.memory_space<vmem>>, vector<80x128xf32>,
    %c1_i32 = arith.constant 1 : i32
    %75 = arith.cmpi eq, %arg1, %c1_i32 : i32
    %76 = arith.extui %75 : i1 to i32
    %c0_i32_84 = arith.constant 0 : i32
    %77 = arith.cmpi ne, %76, %c0_i32_84 : i32
    scf.if %77 {
      %c0_85 = arith.constant 0 : index
      %c0_86 = arith.constant 0 : index
      %78 = vector.load %arg11[%c0_85, %c0_86] : memref<80x128xf32, #tpu.memory_space<vmem>>, vector<80x128xf32>
      %c0_87 = arith.constant 0 : index
      %c0_88 = arith.constant 0 : index
      %79 = vector.load %arg4[%c0_87, %c0_88] : memref<1x128xf32, #tpu.memory_space<vmem>>, vector<1x128xf32>
      %80 = vector.broadcast %79 : vector<1x128xf32> to vector<80x128xf32>
      %81 = arith.mulf %78, %80 : vector<80x128xf32>
      %c0_89 = arith.constant 0 : index
      %c0_90 = arith.constant 0 : index
      %82 = vector.load %arg5[%c0_89, %c0_90] : memref<1x128xf32, #tpu.memory_space<vmem>>, vector<1x128xf32>
      %83 = vector.broadcast %82 : vector<1x128xf32> to vector<80x128xf32>
      %84 = arith.addf %81, %83 : vector<80x128xf32>
      %cst_91 = arith.constant 0.000000e+00 : f32
      %85 = vector.broadcast %cst_91 : f32 to vector<80x128xf32>
      %86 = arith.maximumf %84, %85 : vector<80x128xf32>
      %c0_92 = arith.constant 0 : index
      %c0_93 = arith.constant 0 : index
      %87 = vector.load %arg6[%c0_92, %c0_93] : memref<128x8xf32, #tpu.memory_space<vmem>>, vector<128x8xf32>
      %cst_94 = arith.constant dense<0.000000e+00> : vector<80x8xf32>
      %88 = tpu.matmul %86, %87, %cst_94 {dimension_numbers = #tpu.dot_dimension_numbers<[1], [0], [0], [1], [0, 0, 1, 1], [], []>} : vector<80x128xf32>, vector<128x8xf32>, vector<80x8xf32> -> vector<80x8xf32>
      %c0_95 = arith.constant 0 : index
      %c0_96 = arith.constant 0 : index
      %89 = vector.load %arg7[%c0_95, %c0_96] : memref<1x8xf32, #tpu.memory_space<vmem>>, vector<1x8xf32>
      %90 = vector.broadcast %89 : vector<1x8xf32> to vector<80x8xf32>
      %91 = arith.addf %88, %90 : vector<80x8xf32>
      %92 = vector.shape_cast %91 : vector<80x8xf32> to vector<8x10x8xf32>
      %c0_97 = arith.constant 0 : index
      %c0_98 = arith.constant 0 : index
      %93 = vector.load %arg8[%c0_97, %c0_98] : memref<16x8xf32, #tpu.memory_space<vmem>>, vector<16x8xf32>
      %cst_99 = arith.constant dense<0.000000e+00> : vector<10x8x16xf32>
      %94 = tpu.matmul %92, %93, %cst_99 {dimension_numbers = #tpu.dot_dimension_numbers<[0], [1], [1, 2], [0], [0, 1, 0, 2, 1, 0], [], []>} : vector<8x10x8xf32>, vector<16x8xf32>, vector<10x8x16xf32> -> vector<10x8x16xf32>
      %c0_100 = arith.constant 0 : index
      %c0_101 = arith.constant 0 : index
      %95 = vector.load %arg9[%c0_100, %c0_101] : memref<16x10xf32, #tpu.memory_space<vmem>>, vector<16x10xf32>
      %cst_102 = arith.constant dense<0.000000e+00> : vector<8x16x16xf32>
      %96 = tpu.matmul %94, %95, %cst_102 {dimension_numbers = #tpu.dot_dimension_numbers<[0], [1], [1, 2], [0], [0, 1, 0, 2, 1, 0], [], []>} : vector<10x8x16xf32>, vector<16x10xf32>, vector<8x16x16xf32> -> vector<8x16x16xf32>
      %c0_103 = arith.constant 0 : index
      %c0_104 = arith.constant 0 : index
      %c0_105 = arith.constant 0 : index
      %c0_106 = arith.constant 0 : index
      %97 = vector.load %arg10[%c0_103, %c0_104, %c0_105, %c0_106] : memref<1x8x16x16xf32, #tpu.memory_space<vmem>>, vector<1x8x16x16xf32>
      %98 = vector.shape_cast %97 : vector<1x8x16x16xf32> to vector<8x16x16xf32>
      %99 = vector.shape_cast %96 : vector<8x16x16xf32> to vector<1x8x16x16xf32>
      tpu.vector_store %arg10[%c0_103, %c0_104, %c0_105, %c0_106], %99 {strides = array<i32>} : memref<1x8x16x16xf32, #tpu.memory_space<vmem>>, vector<1x8x16x16xf32>,
    } else {
    }
    return
  }
  func.func @transform_0(%arg0: i32, %arg1: i32) -> (i32, i32, i32) {
    %c0_i32 = arith.constant 0 : i32
    %c0_i32_0 = arith.constant 0 : i32
    return %arg0, %c0_i32, %arg1 : i32, i32, i32
  }
  func.func @transform_1(%arg0: i32, %arg1: i32) -> (i32, i32, i32) {
    %c0_i32 = arith.constant 0 : i32
    %c0_i32_0 = arith.constant 0 : i32
    %c0_i32_1 = arith.constant 0 : i32
    return %c0_i32, %arg1, %c0_i32_0 : i32, i32, i32
  }
  func.func @transform_2(%arg0: i32, %arg1: i32) -> (i32, i32) {
    %c0_i32 = arith.constant 0 : i32
    %c0_i32_0 = arith.constant 0 : i32
    %c0_i32_1 = arith.constant 0 : i32
    return %c0_i32, %c0_i32_0 : i32, i32
  }
  func.func @transform_3(%arg0: i32, %arg1: i32) -> (i32, i32) {
    %c0_i32 = arith.constant 0 : i32
    %c0_i32_0 = arith.constant 0 : i32
    %c0_i32_1 = arith.constant 0 : i32
    return %c0_i32, %c0_i32_0 : i32, i32
  }
  func.func @transform_4(%arg0: i32, %arg1: i32) -> (i32, i32) {
    %c0_i32 = arith.constant 0 : i32
    %c0_i32_0 = arith.constant 0 : i32
    %c0_i32_1 = arith.constant 0 : i32
    return %c0_i32, %c0_i32_0 : i32, i32
  }
  func.func @transform_5(%arg0: i32, %arg1: i32) -> (i32, i32) {
    %c0_i32 = arith.constant 0 : i32
    %c0_i32_0 = arith.constant 0 : i32
    %c0_i32_1 = arith.constant 0 : i32
    return %c0_i32, %c0_i32_0 : i32, i32
  }
  func.func @transform_6(%arg0: i32, %arg1: i32) -> (i32, i32) {
    %c0_i32 = arith.constant 0 : i32
    %c0_i32_0 = arith.constant 0 : i32
    %c0_i32_1 = arith.constant 0 : i32
    return %c0_i32, %c0_i32_0 : i32, i32
  }
  func.func @transform_7(%arg0: i32, %arg1: i32) -> (i32, i32) {
    %c0_i32 = arith.constant 0 : i32
    %c0_i32_0 = arith.constant 0 : i32
    %c0_i32_1 = arith.constant 0 : i32
    return %c0_i32, %c0_i32_0 : i32, i32
  }
  func.func @transform_8(%arg0: i32, %arg1: i32) -> (i32, i32, i32, i32) {
    %c0_i32 = arith.constant 0 : i32
    %c0_i32_0 = arith.constant 0 : i32
    %c0_i32_1 = arith.constant 0 : i32
    %c0_i32_2 = arith.constant 0 : i32
    return %arg0, %c0_i32, %c0_i32_0, %c0_i32_1 : i32, i32, i32, i32
  }
}

module attributes {stable_mosaic.version = 11 : i64} {
  func.func @_decode_psp_kernel(%arg0: i32, %arg1: i32, %arg2: memref<1x110x128xbf16, #tpu.memory_space<vmem>>, %arg3: memref<9x128x128xbf16, #tpu.memory_space<vmem>>, %arg4: memref<1x128xf32, #tpu.memory_space<vmem>>, %arg5: memref<1x128xf32, #tpu.memory_space<vmem>>, %arg6: memref<128x8xf32, #tpu.memory_space<vmem>>, %arg7: memref<1x8xf32, #tpu.memory_space<vmem>>, %arg8: memref<16x8xf32, #tpu.memory_space<vmem>>, %arg9: memref<16x10xf32, #tpu.memory_space<vmem>>, %arg10: memref<1x16x16x8xf32, #tpu.memory_space<vmem>>, %arg11: memref<80x128xf32, #tpu.memory_space<vmem>>) attributes {dimension_semantics = [#tpu.dimension_semantics<parallel>, #tpu.dimension_semantics<arbitrary>], iteration_bounds = array<i64: 2, 2>, scalar_prefetch = 0 : i64, scratch_operands = 1 : i64, tpu.core_type = #tpu.core_type<tc>, window_params = [{transform_indices = @transform_0, window_bounds = array<i64: 1, 110, 128>}, {transform_indices = @transform_1, window_bounds = array<i64: 9, 128, 128>}, {pipeline_mode = #tpu.pipeline_mode<synchronous>, transform_indices = @transform_2, window_bounds = array<i64: 1, 128>}, {pipeline_mode = #tpu.pipeline_mode<synchronous>, transform_indices = @transform_3, window_bounds = array<i64: 1, 128>}, {pipeline_mode = #tpu.pipeline_mode<synchronous>, transform_indices = @transform_4, window_bounds = array<i64: 128, 8>}, {pipeline_mode = #tpu.pipeline_mode<synchronous>, transform_indices = @transform_5, window_bounds = array<i64: 1, 8>}, {pipeline_mode = #tpu.pipeline_mode<synchronous>, transform_indices = @transform_6, window_bounds = array<i64: 16, 8>}, {pipeline_mode = #tpu.pipeline_mode<synchronous>, transform_indices = @transform_7, window_bounds = array<i64: 16, 10>}, {transform_indices = @transform_8, window_bounds = array<i64: 1, 16, 16, 8>}]} {
    %c0_i32 = arith.constant 0 : i32
    %0 = arith.cmpi eq, %arg1, %c0_i32 : i32
    %1 = arith.extui %0 : i1 to i32
    %c0_i32_0 = arith.constant 0 : i32
    %2 = arith.cmpi ne, %1, %c0_i32_0 : i32
    scf.if %2 {
      %cst_85 = arith.constant 0.000000e+00 : f32
      %78 = vector.broadcast %cst_85 : f32 to vector<80x128xf32>
      %c0_86 = arith.constant 0 : index
      %c0_87 = arith.constant 0 : index
      %79 = vector.load %arg11[%c0_86, %c0_87] : memref<80x128xf32, #tpu.memory_space<vmem>>, vector<80x128xf32>
      tpu.vector_store %arg11[%c0_86, %c0_87], %78 {strides = array<i32>} : memref<80x128xf32, #tpu.memory_space<vmem>>, vector<80x128xf32>,
    } else {
    }
    %c0 = arith.constant 0 : index
    %c0_1 = arith.constant 0 : index
    %c0_2 = arith.constant 0 : index
    %3 = vector.load %arg2[%c0, %c0_1, %c0_2] : memref<1x110x128xbf16, #tpu.memory_space<vmem>>, vector<1x80x128xbf16>
    %4 = vector.shape_cast %3 : vector<1x80x128xbf16> to vector<80x128xbf16>
    %c0_3 = arith.constant 0 : index
    %c0_4 = arith.constant 0 : index
    %5 = vector.load %arg11[%c0_3, %c0_4] : memref<80x128xf32, #tpu.memory_space<vmem>>, vector<80x128xf32>
    %c0_5 = arith.constant 0 : index
    %c0_6 = arith.constant 0 : index
    %c0_7 = arith.constant 0 : index
    %6 = vector.load %arg3[%c0_5, %c0_6, %c0_7] : memref<9x128x128xbf16, #tpu.memory_space<vmem>>, vector<1x128x128xbf16>
    %7 = vector.shape_cast %6 : vector<1x128x128xbf16> to vector<128x128xbf16>
    %cst = arith.constant dense<0.000000e+00> : vector<80x128xf32>
    %8 = tpu.matmul %4, %7, %cst {dimension_numbers = #tpu.dot_dimension_numbers<[1], [0], [0], [1], [0, 0, 1, 1], [], []>} : vector<80x128xbf16>, vector<128x128xbf16>, vector<80x128xf32> -> vector<80x128xf32>
    %9 = arith.addf %5, %8 : vector<80x128xf32>
    %c0_8 = arith.constant 0 : index
    %c0_9 = arith.constant 0 : index
    %10 = vector.load %arg11[%c0_8, %c0_9] : memref<80x128xf32, #tpu.memory_space<vmem>>, vector<80x128xf32>
    tpu.vector_store %arg11[%c0_8, %c0_9], %9 {strides = array<i32>} : memref<80x128xf32, #tpu.memory_space<vmem>>, vector<80x128xf32>,
    %c0_10 = arith.constant 0 : index
    %c1 = arith.constant 1 : index
    %c0_11 = arith.constant 0 : index
    %11 = vector.load %arg2[%c0_10, %c1, %c0_11] : memref<1x110x128xbf16, #tpu.memory_space<vmem>>, vector<1x80x128xbf16>
    %12 = vector.shape_cast %11 : vector<1x80x128xbf16> to vector<80x128xbf16>
    %c0_12 = arith.constant 0 : index
    %c0_13 = arith.constant 0 : index
    %13 = vector.load %arg11[%c0_12, %c0_13] : memref<80x128xf32, #tpu.memory_space<vmem>>, vector<80x128xf32>
    %c1_14 = arith.constant 1 : index
    %c0_15 = arith.constant 0 : index
    %c0_16 = arith.constant 0 : index
    %14 = vector.load %arg3[%c1_14, %c0_15, %c0_16] : memref<9x128x128xbf16, #tpu.memory_space<vmem>>, vector<1x128x128xbf16>
    %15 = vector.shape_cast %14 : vector<1x128x128xbf16> to vector<128x128xbf16>
    %cst_17 = arith.constant dense<0.000000e+00> : vector<80x128xf32>
    %16 = tpu.matmul %12, %15, %cst_17 {dimension_numbers = #tpu.dot_dimension_numbers<[1], [0], [0], [1], [0, 0, 1, 1], [], []>} : vector<80x128xbf16>, vector<128x128xbf16>, vector<80x128xf32> -> vector<80x128xf32>
    %17 = arith.addf %13, %16 : vector<80x128xf32>
    %c0_18 = arith.constant 0 : index
    %c0_19 = arith.constant 0 : index
    %18 = vector.load %arg11[%c0_18, %c0_19] : memref<80x128xf32, #tpu.memory_space<vmem>>, vector<80x128xf32>
    tpu.vector_store %arg11[%c0_18, %c0_19], %17 {strides = array<i32>} : memref<80x128xf32, #tpu.memory_space<vmem>>, vector<80x128xf32>,
    %c0_20 = arith.constant 0 : index
    %c2 = arith.constant 2 : index
    %c0_21 = arith.constant 0 : index
    %19 = vector.load %arg2[%c0_20, %c2, %c0_21] : memref<1x110x128xbf16, #tpu.memory_space<vmem>>, vector<1x80x128xbf16>
    %20 = vector.shape_cast %19 : vector<1x80x128xbf16> to vector<80x128xbf16>
    %c0_22 = arith.constant 0 : index
    %c0_23 = arith.constant 0 : index
    %21 = vector.load %arg11[%c0_22, %c0_23] : memref<80x128xf32, #tpu.memory_space<vmem>>, vector<80x128xf32>
    %c2_24 = arith.constant 2 : index
    %c0_25 = arith.constant 0 : index
    %c0_26 = arith.constant 0 : index
    %22 = vector.load %arg3[%c2_24, %c0_25, %c0_26] : memref<9x128x128xbf16, #tpu.memory_space<vmem>>, vector<1x128x128xbf16>
    %23 = vector.shape_cast %22 : vector<1x128x128xbf16> to vector<128x128xbf16>
    %cst_27 = arith.constant dense<0.000000e+00> : vector<80x128xf32>
    %24 = tpu.matmul %20, %23, %cst_27 {dimension_numbers = #tpu.dot_dimension_numbers<[1], [0], [0], [1], [0, 0, 1, 1], [], []>} : vector<80x128xbf16>, vector<128x128xbf16>, vector<80x128xf32> -> vector<80x128xf32>
    %25 = arith.addf %21, %24 : vector<80x128xf32>
    %c0_28 = arith.constant 0 : index
    %c0_29 = arith.constant 0 : index
    %26 = vector.load %arg11[%c0_28, %c0_29] : memref<80x128xf32, #tpu.memory_space<vmem>>, vector<80x128xf32>
    tpu.vector_store %arg11[%c0_28, %c0_29], %25 {strides = array<i32>} : memref<80x128xf32, #tpu.memory_space<vmem>>, vector<80x128xf32>,
    %c0_30 = arith.constant 0 : index
    %c10 = arith.constant 10 : index
    %c0_31 = arith.constant 0 : index
    %27 = vector.load %arg2[%c0_30, %c10, %c0_31] : memref<1x110x128xbf16, #tpu.memory_space<vmem>>, vector<1x80x128xbf16>
    %28 = vector.shape_cast %27 : vector<1x80x128xbf16> to vector<80x128xbf16>
    %c0_32 = arith.constant 0 : index
    %c0_33 = arith.constant 0 : index
    %29 = vector.load %arg11[%c0_32, %c0_33] : memref<80x128xf32, #tpu.memory_space<vmem>>, vector<80x128xf32>
    %c3 = arith.constant 3 : index
    %c0_34 = arith.constant 0 : index
    %c0_35 = arith.constant 0 : index
    %30 = vector.load %arg3[%c3, %c0_34, %c0_35] : memref<9x128x128xbf16, #tpu.memory_space<vmem>>, vector<1x128x128xbf16>
    %31 = vector.shape_cast %30 : vector<1x128x128xbf16> to vector<128x128xbf16>
    %cst_36 = arith.constant dense<0.000000e+00> : vector<80x128xf32>
    %32 = tpu.matmul %28, %31, %cst_36 {dimension_numbers = #tpu.dot_dimension_numbers<[1], [0], [0], [1], [0, 0, 1, 1], [], []>} : vector<80x128xbf16>, vector<128x128xbf16>, vector<80x128xf32> -> vector<80x128xf32>
    %33 = arith.addf %29, %32 : vector<80x128xf32>
    %c0_37 = arith.constant 0 : index
    %c0_38 = arith.constant 0 : index
    %34 = vector.load %arg11[%c0_37, %c0_38] : memref<80x128xf32, #tpu.memory_space<vmem>>, vector<80x128xf32>
    tpu.vector_store %arg11[%c0_37, %c0_38], %33 {strides = array<i32>} : memref<80x128xf32, #tpu.memory_space<vmem>>, vector<80x128xf32>,
    %c0_39 = arith.constant 0 : index
    %c11 = arith.constant 11 : index
    %c0_40 = arith.constant 0 : index
    %35 = vector.load %arg2[%c0_39, %c11, %c0_40] : memref<1x110x128xbf16, #tpu.memory_space<vmem>>, vector<1x80x128xbf16>
    %36 = vector.shape_cast %35 : vector<1x80x128xbf16> to vector<80x128xbf16>
    %c0_41 = arith.constant 0 : index
    %c0_42 = arith.constant 0 : index
    %37 = vector.load %arg11[%c0_41, %c0_42] : memref<80x128xf32, #tpu.memory_space<vmem>>, vector<80x128xf32>
    %c4 = arith.constant 4 : index
    %c0_43 = arith.constant 0 : index
    %c0_44 = arith.constant 0 : index
    %38 = vector.load %arg3[%c4, %c0_43, %c0_44] : memref<9x128x128xbf16, #tpu.memory_space<vmem>>, vector<1x128x128xbf16>
    %39 = vector.shape_cast %38 : vector<1x128x128xbf16> to vector<128x128xbf16>
    %cst_45 = arith.constant dense<0.000000e+00> : vector<80x128xf32>
    %40 = tpu.matmul %36, %39, %cst_45 {dimension_numbers = #tpu.dot_dimension_numbers<[1], [0], [0], [1], [0, 0, 1, 1], [], []>} : vector<80x128xbf16>, vector<128x128xbf16>, vector<80x128xf32> -> vector<80x128xf32>
    %41 = arith.addf %37, %40 : vector<80x128xf32>
    %c0_46 = arith.constant 0 : index
    %c0_47 = arith.constant 0 : index
    %42 = vector.load %arg11[%c0_46, %c0_47] : memref<80x128xf32, #tpu.memory_space<vmem>>, vector<80x128xf32>
    tpu.vector_store %arg11[%c0_46, %c0_47], %41 {strides = array<i32>} : memref<80x128xf32, #tpu.memory_space<vmem>>, vector<80x128xf32>,
    %c0_48 = arith.constant 0 : index
    %c12 = arith.constant 12 : index
    %c0_49 = arith.constant 0 : index
    %43 = vector.load %arg2[%c0_48, %c12, %c0_49] : memref<1x110x128xbf16, #tpu.memory_space<vmem>>, vector<1x80x128xbf16>
    %44 = vector.shape_cast %43 : vector<1x80x128xbf16> to vector<80x128xbf16>
    %c0_50 = arith.constant 0 : index
    %c0_51 = arith.constant 0 : index
    %45 = vector.load %arg11[%c0_50, %c0_51] : memref<80x128xf32, #tpu.memory_space<vmem>>, vector<80x128xf32>
    %c5 = arith.constant 5 : index
    %c0_52 = arith.constant 0 : index
    %c0_53 = arith.constant 0 : index
    %46 = vector.load %arg3[%c5, %c0_52, %c0_53] : memref<9x128x128xbf16, #tpu.memory_space<vmem>>, vector<1x128x128xbf16>
    %47 = vector.shape_cast %46 : vector<1x128x128xbf16> to vector<128x128xbf16>
    %cst_54 = arith.constant dense<0.000000e+00> : vector<80x128xf32>
    %48 = tpu.matmul %44, %47, %cst_54 {dimension_numbers = #tpu.dot_dimension_numbers<[1], [0], [0], [1], [0, 0, 1, 1], [], []>} : vector<80x128xbf16>, vector<128x128xbf16>, vector<80x128xf32> -> vector<80x128xf32>
    %49 = arith.addf %45, %48 : vector<80x128xf32>
    %c0_55 = arith.constant 0 : index
    %c0_56 = arith.constant 0 : index
    %50 = vector.load %arg11[%c0_55, %c0_56] : memref<80x128xf32, #tpu.memory_space<vmem>>, vector<80x128xf32>
    tpu.vector_store %arg11[%c0_55, %c0_56], %49 {strides = array<i32>} : memref<80x128xf32, #tpu.memory_space<vmem>>, vector<80x128xf32>,
    %c0_57 = arith.constant 0 : index
    %c20 = arith.constant 20 : index
    %c0_58 = arith.constant 0 : index
    %51 = vector.load %arg2[%c0_57, %c20, %c0_58] : memref<1x110x128xbf16, #tpu.memory_space<vmem>>, vector<1x80x128xbf16>
    %52 = vector.shape_cast %51 : vector<1x80x128xbf16> to vector<80x128xbf16>
    %c0_59 = arith.constant 0 : index
    %c0_60 = arith.constant 0 : index
    %53 = vector.load %arg11[%c0_59, %c0_60] : memref<80x128xf32, #tpu.memory_space<vmem>>, vector<80x128xf32>
    %c6 = arith.constant 6 : index
    %c0_61 = arith.constant 0 : index
    %c0_62 = arith.constant 0 : index
    %54 = vector.load %arg3[%c6, %c0_61, %c0_62] : memref<9x128x128xbf16, #tpu.memory_space<vmem>>, vector<1x128x128xbf16>
    %55 = vector.shape_cast %54 : vector<1x128x128xbf16> to vector<128x128xbf16>
    %cst_63 = arith.constant dense<0.000000e+00> : vector<80x128xf32>
    %56 = tpu.matmul %52, %55, %cst_63 {dimension_numbers = #tpu.dot_dimension_numbers<[1], [0], [0], [1], [0, 0, 1, 1], [], []>} : vector<80x128xbf16>, vector<128x128xbf16>, vector<80x128xf32> -> vector<80x128xf32>
    %57 = arith.addf %53, %56 : vector<80x128xf32>
    %c0_64 = arith.constant 0 : index
    %c0_65 = arith.constant 0 : index
    %58 = vector.load %arg11[%c0_64, %c0_65] : memref<80x128xf32, #tpu.memory_space<vmem>>, vector<80x128xf32>
    tpu.vector_store %arg11[%c0_64, %c0_65], %57 {strides = array<i32>} : memref<80x128xf32, #tpu.memory_space<vmem>>, vector<80x128xf32>,
    %c0_66 = arith.constant 0 : index
    %c21 = arith.constant 21 : index
    %c0_67 = arith.constant 0 : index
    %59 = vector.load %arg2[%c0_66, %c21, %c0_67] : memref<1x110x128xbf16, #tpu.memory_space<vmem>>, vector<1x80x128xbf16>
    %60 = vector.shape_cast %59 : vector<1x80x128xbf16> to vector<80x128xbf16>
    %c0_68 = arith.constant 0 : index
    %c0_69 = arith.constant 0 : index
    %61 = vector.load %arg11[%c0_68, %c0_69] : memref<80x128xf32, #tpu.memory_space<vmem>>, vector<80x128xf32>
    %c7 = arith.constant 7 : index
    %c0_70 = arith.constant 0 : index
    %c0_71 = arith.constant 0 : index
    %62 = vector.load %arg3[%c7, %c0_70, %c0_71] : memref<9x128x128xbf16, #tpu.memory_space<vmem>>, vector<1x128x128xbf16>
    %63 = vector.shape_cast %62 : vector<1x128x128xbf16> to vector<128x128xbf16>
    %cst_72 = arith.constant dense<0.000000e+00> : vector<80x128xf32>
    %64 = tpu.matmul %60, %63, %cst_72 {dimension_numbers = #tpu.dot_dimension_numbers<[1], [0], [0], [1], [0, 0, 1, 1], [], []>} : vector<80x128xbf16>, vector<128x128xbf16>, vector<80x128xf32> -> vector<80x128xf32>
    %65 = arith.addf %61, %64 : vector<80x128xf32>
    %c0_73 = arith.constant 0 : index
    %c0_74 = arith.constant 0 : index
    %66 = vector.load %arg11[%c0_73, %c0_74] : memref<80x128xf32, #tpu.memory_space<vmem>>, vector<80x128xf32>
    tpu.vector_store %arg11[%c0_73, %c0_74], %65 {strides = array<i32>} : memref<80x128xf32, #tpu.memory_space<vmem>>, vector<80x128xf32>,
    %c0_75 = arith.constant 0 : index
    %c22 = arith.constant 22 : index
    %c0_76 = arith.constant 0 : index
    %67 = vector.load %arg2[%c0_75, %c22, %c0_76] : memref<1x110x128xbf16, #tpu.memory_space<vmem>>, vector<1x80x128xbf16>
    %68 = vector.shape_cast %67 : vector<1x80x128xbf16> to vector<80x128xbf16>
    %c0_77 = arith.constant 0 : index
    %c0_78 = arith.constant 0 : index
    %69 = vector.load %arg11[%c0_77, %c0_78] : memref<80x128xf32, #tpu.memory_space<vmem>>, vector<80x128xf32>
    %c8 = arith.constant 8 : index
    %c0_79 = arith.constant 0 : index
    %c0_80 = arith.constant 0 : index
    %70 = vector.load %arg3[%c8, %c0_79, %c0_80] : memref<9x128x128xbf16, #tpu.memory_space<vmem>>, vector<1x128x128xbf16>
    %71 = vector.shape_cast %70 : vector<1x128x128xbf16> to vector<128x128xbf16>
    %cst_81 = arith.constant dense<0.000000e+00> : vector<80x128xf32>
    %72 = tpu.matmul %68, %71, %cst_81 {dimension_numbers = #tpu.dot_dimension_numbers<[1], [0], [0], [1], [0, 0, 1, 1], [], []>} : vector<80x128xbf16>, vector<128x128xbf16>, vector<80x128xf32> -> vector<80x128xf32>
    %73 = arith.addf %69, %72 : vector<80x128xf32>
    %c0_82 = arith.constant 0 : index
    %c0_83 = arith.constant 0 : index
    %74 = vector.load %arg11[%c0_82, %c0_83] : memref<80x128xf32, #tpu.memory_space<vmem>>, vector<80x128xf32>
    tpu.vector_store %arg11[%c0_82, %c0_83], %73 {strides = array<i32>} : memref<80x128xf32, #tpu.memory_space<vmem>>, vector<80x128xf32>,
    %c1_i32 = arith.constant 1 : i32
    %75 = arith.cmpi eq, %arg1, %c1_i32 : i32
    %76 = arith.extui %75 : i1 to i32
    %c0_i32_84 = arith.constant 0 : i32
    %77 = arith.cmpi ne, %76, %c0_i32_84 : i32
    scf.if %77 {
      %c0_85 = arith.constant 0 : index
      %c0_86 = arith.constant 0 : index
      %78 = vector.load %arg11[%c0_85, %c0_86] : memref<80x128xf32, #tpu.memory_space<vmem>>, vector<80x128xf32>
      %c0_87 = arith.constant 0 : index
      %c0_88 = arith.constant 0 : index
      %79 = vector.load %arg4[%c0_87, %c0_88] : memref<1x128xf32, #tpu.memory_space<vmem>>, vector<1x128xf32>
      %80 = vector.broadcast %79 : vector<1x128xf32> to vector<80x128xf32>
      %81 = arith.mulf %78, %80 : vector<80x128xf32>
      %c0_89 = arith.constant 0 : index
      %c0_90 = arith.constant 0 : index
      %82 = vector.load %arg5[%c0_89, %c0_90] : memref<1x128xf32, #tpu.memory_space<vmem>>, vector<1x128xf32>
      %83 = vector.broadcast %82 : vector<1x128xf32> to vector<80x128xf32>
      %84 = arith.addf %81, %83 : vector<80x128xf32>
      %cst_91 = arith.constant 0.000000e+00 : f32
      %85 = vector.broadcast %cst_91 : f32 to vector<80x128xf32>
      %86 = arith.maximumf %84, %85 : vector<80x128xf32>
      %c0_92 = arith.constant 0 : index
      %c0_93 = arith.constant 0 : index
      %87 = vector.load %arg6[%c0_92, %c0_93] : memref<128x8xf32, #tpu.memory_space<vmem>>, vector<128x8xf32>
      %cst_94 = arith.constant dense<0.000000e+00> : vector<80x8xf32>
      %88 = tpu.matmul %86, %87, %cst_94 {dimension_numbers = #tpu.dot_dimension_numbers<[1], [0], [0], [1], [0, 0, 1, 1], [], []>} : vector<80x128xf32>, vector<128x8xf32>, vector<80x8xf32> -> vector<80x8xf32>
      %c0_95 = arith.constant 0 : index
      %c0_96 = arith.constant 0 : index
      %89 = vector.load %arg7[%c0_95, %c0_96] : memref<1x8xf32, #tpu.memory_space<vmem>>, vector<1x8xf32>
      %90 = vector.broadcast %89 : vector<1x8xf32> to vector<80x8xf32>
      %91 = arith.addf %88, %90 : vector<80x8xf32>
      %92 = vector.shape_cast %91 : vector<80x8xf32> to vector<8x10x8xf32>
      %c0_97 = arith.constant 0 : index
      %c0_98 = arith.constant 0 : index
      %93 = vector.load %arg8[%c0_97, %c0_98] : memref<16x8xf32, #tpu.memory_space<vmem>>, vector<16x8xf32>
      "tpu.trace_start"() <{level = 10 : i32, message = "oh,hwc->owc"}> : () -> ()
      %cst_99 = arith.constant dense<0.000000e+00> : vector<16x10x8xf32>
      %94 = tpu.matmul %93, %92, %cst_99 {dimension_numbers = #tpu.dot_dimension_numbers<[1], [0], [0], [1, 2], [0, 0, 1, 1, 1, 2], [], []>} : vector<16x8xf32>, vector<8x10x8xf32>, vector<16x10x8xf32> -> vector<16x10x8xf32>
      "tpu.trace_stop"() : () -> ()
      %c0_100 = arith.constant 0 : index
      %c0_101 = arith.constant 0 : index
      %95 = vector.load %arg9[%c0_100, %c0_101] : memref<16x10xf32, #tpu.memory_space<vmem>>, vector<16x10xf32>
      "tpu.trace_start"() <{level = 10 : i32, message = "pw,owc->opc"}> : () -> ()
      %cst_102 = arith.constant dense<0.000000e+00> : vector<16x8x16xf32>
      %96 = tpu.matmul %94, %95, %cst_102 {dimension_numbers = #tpu.dot_dimension_numbers<[1], [1], [0, 2], [0], [0, 0, 0, 2, 1, 0], [], []>} : vector<16x10x8xf32>, vector<16x10xf32>, vector<16x8x16xf32> -> vector<16x8x16xf32>
      %97 = tpu.transpose %96, [0, 2, 1] : vector<16x8x16xf32> -> vector<16x16x8xf32>
      "tpu.trace_stop"() : () -> ()
      %c0_103 = arith.constant 0 : index
      %c0_104 = arith.constant 0 : index
      %c0_105 = arith.constant 0 : index
      %c0_106 = arith.constant 0 : index
      %98 = vector.load %arg10[%c0_103, %c0_104, %c0_105, %c0_106] : memref<1x16x16x8xf32, #tpu.memory_space<vmem>>, vector<1x16x16x8xf32>
      %99 = vector.shape_cast %98 : vector<1x16x16x8xf32> to vector<16x16x8xf32>
      %100 = vector.shape_cast %97 : vector<16x16x8xf32> to vector<1x16x16x8xf32>
      tpu.vector_store %arg10[%c0_103, %c0_104, %c0_105, %c0_106], %100 {strides = array<i32>} : memref<1x16x16x8xf32, #tpu.memory_space<vmem>>, vector<1x16x16x8xf32>,
    } else {
    }
    return
  }
  func.func @transform_0(%arg0: i32, %arg1: i32) -> (i32, i32, i32) {
    %c0_i32 = arith.constant 0 : i32
    %c0_i32_0 = arith.constant 0 : i32
    return %arg0, %c0_i32, %arg1 : i32, i32, i32
  }
  func.func @transform_1(%arg0: i32, %arg1: i32) -> (i32, i32, i32) {
    %c0_i32 = arith.constant 0 : i32
    %c0_i32_0 = arith.constant 0 : i32
    %c0_i32_1 = arith.constant 0 : i32
    return %c0_i32, %arg1, %c0_i32_0 : i32, i32, i32
  }
  func.func @transform_2(%arg0: i32, %arg1: i32) -> (i32, i32) {
    %c0_i32 = arith.constant 0 : i32
    %c0_i32_0 = arith.constant 0 : i32
    %c0_i32_1 = arith.constant 0 : i32
    return %c0_i32, %c0_i32_0 : i32, i32
  }
  func.func @transform_3(%arg0: i32, %arg1: i32) -> (i32, i32) {
    %c0_i32 = arith.constant 0 : i32
    %c0_i32_0 = arith.constant 0 : i32
    %c0_i32_1 = arith.constant 0 : i32
    return %c0_i32, %c0_i32_0 : i32, i32
  }
  func.func @transform_4(%arg0: i32, %arg1: i32) -> (i32, i32) {
    %c0_i32 = arith.constant 0 : i32
    %c0_i32_0 = arith.constant 0 : i32
    %c0_i32_1 = arith.constant 0 : i32
    return %c0_i32, %c0_i32_0 : i32, i32
  }
  func.func @transform_5(%arg0: i32, %arg1: i32) -> (i32, i32) {
    %c0_i32 = arith.constant 0 : i32
    %c0_i32_0 = arith.constant 0 : i32
    %c0_i32_1 = arith.constant 0 : i32
    return %c0_i32, %c0_i32_0 : i32, i32
  }
  func.func @transform_6(%arg0: i32, %arg1: i32) -> (i32, i32) {
    %c0_i32 = arith.constant 0 : i32
    %c0_i32_0 = arith.constant 0 : i32
    %c0_i32_1 = arith.constant 0 : i32
    return %c0_i32, %c0_i32_0 : i32, i32
  }
  func.func @transform_7(%arg0: i32, %arg1: i32) -> (i32, i32) {
    %c0_i32 = arith.constant 0 : i32
    %c0_i32_0 = arith.constant 0 : i32
    %c0_i32_1 = arith.constant 0 : i32
    return %c0_i32, %c0_i32_0 : i32, i32
  }
  func.func @transform_8(%arg0: i32, %arg1: i32) -> (i32, i32, i32, i32) {
    %c0_i32 = arith.constant 0 : i32
    %c0_i32_0 = arith.constant 0 : i32
    %c0_i32_1 = arith.constant 0 : i32
    %c0_i32_2 = arith.constant 0 : i32
    return %arg0, %c0_i32, %c0_i32_0, %c0_i32_1 : i32, i32, i32, i32
  }
}

</mosaic_0001>

<bundles_post_ra>
// kernel: tpu_custom_call.1
= control target key start
LH: loop header
LB: loop body
LE: loop exit
PB: predicated region body
PF: predicated region fallthrough
CT: control target
= control target key end

     0   :  { %s6694_s0 = inlined_call_operand.vmem [shape: bf16[2,110,256], index: 0, kind: input, shape index: {}]   ;;  %s6695_s1 = inlined_call_operand.hbm [shape: bf16[9,256,128], index: 1, kind: input, shape index: {}]   ;;  %s6696_s2 = inlined_call_operand.vmem [shape: f32[1,128], index: 2, kind: input, shape index: {}]   ;;  %s6697_s3 = inlined_call_operand.vmem [shape: f32[1,128], index: 3, kind: input, shape index: {}]   ;;  %s6698_s4 = inlined_call_operand.vmem [shape: f32[128,8], index: 4, kind: input, shape index: {}]   ;;  %s6699_s5 = inlined_call_operand.vmem [shape: f32[1,8], index: 5, kind: input, shape index: {}]   ;;  %s6700_s6 = inlined_call_operand.vmem [shape: f32[16,8], index: 6, kind: input, shape index: {}]   ;;  %s6701_s7 = inlined_call_operand.vmem [shape: f32[16,10], index: 7, kind: input, shape index: {}]   ;;  %s6702_s8 = inlined_call_operand.hbm [shape: f32[2,8,16,16], index: 8, kind: output, shape index: {}]  }
   0x1   :  { %6711 = sst [smem:[#allocation22_spill]] %s6694_s0 }
   0x2   :  { %6712 = sst [smem:[#allocation23_spill]] %s6700_s6 }
   0x3   :  { %6713 = sst [smem:[#allocation24_spill]] %s6701_s7 }
   0x4   :  { %6714 = sst [smem:[#allocation25_spill]] %s6702_s8 }
   0x5   :  { %13 = vsyncpa [#allocation5], 0 }
   0x6   :  { %15 = vsyncpa [#allocation5 + $0x1], 0 }
   0x7   :  { %16 = vsyncpa [#allocation6], 0 }
   0x8   :  { %18 = vsyncpa [#allocation6 + $0x1], 0  ;;  %s5703_s27 = smov 0   ;;  %s5705_s28 = smov 0  }
   0x9   :  { %s5707_s29 = smov 0   ;;  %s5709_s30 = smov 0  }
   0xa   :  { %s5711_s9 = smov 0   ;;  %s5713_s10 = smov 0  }
   0xb   :  { %s5715_s11 = smov 0   ;;  %s5717_s12 = smov 0  }
   0xc   :  { %s5719_s13 = smov 0   ;;  %s5721_s14 = smov 0  }
   0xd   :  { %s5723_s15 = smov 0   ;;  %s5725_s16 = smov 0  }
   0xe   :  { %s5727_s17 = smov 0  }
   0xf LB: > { %6715 = sst [smem:[#allocation13_spill]] %s5609_s12  ;;  %s33_s20 = sadd.s32 1, %s5621_s15  ;;  %s5629_s17 = sphi %s5727_s17, %s24_s17   ;;  %s5625_s16 = sphi %s5725_s16, %s6754_s16   ;;  %s5621_s15 = sphi %s5723_s15, %s6745_s15   ;;  %s5617_s14 = sphi %s5721_s14, %s6744_s14   ;;  %s5613_s13 = sphi %s5719_s13, %s6743_s13   ;;  %s5609_s12 = sphi %s5717_s12, %s6742_s12   ;;  %s5605_s11 = sphi %s5715_s11, %s6741_s11   ;;  %s5601_s10 = sphi %s5713_s10, %s6753_s10   ;;  %s5597_s9 = sphi %s5711_s9, %s6752_s9   ;;  %s5593_s30 = sphi %s5709_s30, %s6751_s30   ;;  %s5589_s29 = sphi %s5707_s29, %s6750_s29   ;;  %s5585_s28 = sphi %s5705_s28, %s6749_s28   ;;  %s5581_s27 = sphi %s5703_s27, %s6748_s27  }
  0x10   : > { %6716 = sst [smem:[#allocation14_spill]] %s5617_s14  ;;  %s36_s21 = sadd.s32 1, %s5625_s16 }
  0x11   : > { %6717 = sst [smem:[#allocation15_spill]] %s5621_s15  ;;  %p34_p0 = scmp.ge.s32.totalorder %s33_s20, 2 }
  0x12   : > { %6718 = sst [smem:[#allocation16_spill]] %s5625_s16  ;;  %s45_s22 = sadd.s32 1, %s5609_s12 }
  0x13   : > { %p52_p1 = scmp.ne.s32.totalorder %s5609_s12, %s5605_s11  ;;  %p53_p2 = scmp.eq.s32.totalorder %s5629_s17, 0 }
  0x14   : > { %s6756_s20 = smov (%p34_p0, %s33_s20), 0  ;;  %s6758_s21 = smov (!%p34_p0, %s36_s21), %s5625_s16 }
  0x15   : > { %6719 = sst [smem:[#allocation17_spill]] %s6756_s20  ;;  %s41_s23 = ssub.s32 %s5621_s15, %s6756_s20 }
  0x16   : > { %p5781_p3 = por %p53_p2, %p52_p1  ;;  %p38_p4 = scmp.ge.s32.totalorder %s6758_s21, 2 }
  0x17   : > { %p69_p5 = scmp.eq.s32.totalorder %s41_s23, 0  ;;  %s71_s25 = sadd.s32 1, %s5601_s10 }
  0x18   : > { %p78_p6 = scmp.ne.s32.totalorder %s5601_s10, %s5597_s9  ;;  %s6760_s21 = smov (%p38_p4, %s6758_s21), 0 }
  0x19   : > { %6721 = sst [smem:[#allocation18_spill]] %s6760_s21  ;;  %s40_s19 = ssub.s32 %s5625_s16, %s6760_s21 }
  0x1a   : > { %s5791_s26 = scalar_select %p69_p5, %s5601_s10, %s71_s25  }
  0x1b   : > { %p5795_p7 = por %p78_p6, %p53_p2  ;;  %s42_s20 = sor.u32 %s41_s23, %s40_s19 }
  0x1c   : > { %6722 = sst [smem:[#allocation19_spill]] %s5791_s26  ;;  %p84_p8 = scmp.ne.s32.totalorder %s5597_s9, %s5593_s30 }
  0x1d   : > { %p43_p9 = scmp.eq.s32.totalorder %s42_s20, 0  ;;  %s6724_s8 = sadd.s32 4294967295, %s5629_s17  }
  0x1e   : > { %p85_p10 = scmp.eq.s32.totalorder %s6724_s8, 0  ;;  %p221_p11 = scmp.eq.s32.totalorder %s40_s19, 0 }
  0x1f   : > { %s223_s14 = sadd.s32 1, %s5589_s29  ;;  %p233_p13 = scmp.ne.s32.totalorder %s5589_s29, %s5585_s28 }
  0x20   : > { %s5805_s7 = scalar_select %p43_p9, %s5609_s12, %s45_s22  }
  0x21   : > { %p5807_p12 = por %p85_p10, %p84_p8  ;;  %s6728_s21 = smov %s6724_s8 }
  0x22   : > { %6725 = sst [smem:[#allocation20_spill]] %s5805_s7  ;;  %p234_p0 = scmp.eq.s32.totalorder %s6728_s21, 3 }
  0x23   : > { %s5814_s25 = scalar_select %p221_p11, %s5589_s29, %s223_s14  }
  0x24   : > { %p239_p1 = scmp.ne.s32.totalorder %s5585_s28, %s5581_s27  ;;  %s6729_s26 = sadd.s32 4294967294, %s5629_s17  }
  0x25   : > { %6727 = sst [smem:[#allocation21_spill]] %s5814_s25  ;;  %p240_p2 = scmp.eq.s32.totalorder %s6729_s26, 3 }
  0x26   : > { %p5822_p4 = por %p234_p0, %p233_p13  ;;  %p4293_p6 = scmp.ge.s32.totalorder %s5629_s17, 4 }
  0x27   : > { %p5826_p5 = por %p240_p2, %p239_p1 }
  0x28   : > { %274 = sbr.rel (%p4293_p6) target bundleno = 77 (0x4d), region = 40 }
  0x2d   : > { %277 = sbr.rel (!%p5781_p3) target bundleno = 63 (0x3f), region = 44  ;;  %s279_s14 = sand.u32 (%p5781_p3), 1, %s5609_s12  }
  0x2e   : > { %s5218_s19 = smul.u32 (%p5781_p3), 28, %s5625_s16  ;;  %s6732_s0 = sld [smem:[#allocation22_spill]] (%p5781_p3) }
  0x2f   : > { %s5217_s20 = smul.u32 (%p5781_p3), 56, %s279_s14 }
  0x30   : > { %s283_s21 = sadd.s32 (%p5781_p3), %s5621_s15, %s5218_s19 }
  0x31   : > { %s4294_s22 = sshll.u32 (%p5781_p3), %s283_s21, 2  ;;  %s281_s25 = scalar_lea.vmem (%p5781_p3), [#allocation3], %s5217_s20 }
  0x34   : > { %s285_s7 = scalar_lea.vmem %s6732_s0, %s4294_s22 }
  0x35   : > { %v302_v0 = vld [vmem:[%s285_s7] sm:$0xf]  ;;  %v304_v1 = vld [vmem:[%s285_s7 + $0x8] sm:$0xf]  ;;  %v306_v2 = vld [vmem:[%s285_s7 + $0x10] sm:$0xf] }
  0x36   : > { %303 = vst [vmem:[%s281_s25] sm:$0xf] %v302_v0  ;;  %305 = vst [vmem:[%s281_s25 + $0x4] sm:$0xf] %v304_v1  ;;  %v308_v3 = vld [vmem:[%s285_s7 + $0x18] sm:$0xf] }
  0x37   : > { %307 = vst [vmem:[%s281_s25 + $0x8] sm:$0xf] %v306_v2  ;;  %v310_v4 = vld [vmem:[%s285_s7 + $0x20] sm:$0xf]  ;;  %v312_v5 = vld [vmem:[%s285_s7 + $0x28] sm:$0xf] }
  0x38   : > { %309 = vst [vmem:[%s281_s25 + $0xc] sm:$0xf] %v308_v3  ;;  %311 = vst [vmem:[%s281_s25 + $0x10] sm:$0xf] %v310_v4  ;;  %v314_v6 = vld [vmem:[%s285_s7 + $0x30] sm:$0xf] }
  0x39   : > { %313 = vst [vmem:[%s281_s25 + $0x14] sm:$0xf] %v312_v5  ;;  %v316_v7 = vld [vmem:[%s285_s7 + $0x38] sm:$0xf]  ;;  %v318_v8 = vld [vmem:[%s285_s7 + $0x40] sm:$0xf] }
  0x3a   : > { %315 = vst [vmem:[%s281_s25 + $0x18] sm:$0xf] %v314_v6  ;;  %317 = vst [vmem:[%s281_s25 + $0x1c] sm:$0xf] %v316_v7  ;;  %v320_v9 = vld [vmem:[%s285_s7 + $0x48] sm:$0xf] }
  0x3b   : > { %319 = vst [vmem:[%s281_s25 + $0x20] sm:$0xf] %v318_v8  ;;  %v322_v10 = vld [vmem:[%s285_s7 + $0x50] sm:$0xf]  ;;  %v324_v11 = vld [vmem:[%s285_s7 + $0x58] sm:$0xf] }
  0x3c   : > { %321 = vst [vmem:[%s281_s25 + $0x24] sm:$0xf] %v320_v9  ;;  %323 = vst [vmem:[%s281_s25 + $0x28] sm:$0xf] %v322_v10  ;;  %v326_v12 = vld [vmem:[%s285_s7 + $0x60] sm:$0xf] }
  0x3d   : > { %325 = vst [vmem:[%s281_s25 + $0x2c] sm:$0xf] %v324_v11  ;;  %v328_v13 = vld [vmem:[%s285_s7 + $0x68] sm:$0xf]  ;;  %327 = vst [vmem:[%s281_s25 + $0x30] sm:$0xf] %v326_v12 }
  0x3e   : > { %329 = vst [vmem:[%s281_s25 + $0x34] sm:$0xf] %v328_v13 }
  0x3f PF: > { %s382_s24 = sand.u32 1, %s5601_s10   ;;  %s4604_s19 = sshll.u32 %s5621_s15, 10 }
  0x40   : > { %s5219_s14 = smul.u32 576, %s382_s24  ;;  %s5631_s20 = smov 2048  }
  0x41   : > { %5223 = sst [smem:[#allocation9]] (%p5795_p7), %s5631_s20  ;;  %s392_s22 = scalar_lea.hbm %s6695_s1, %s4604_s19 }
  0x42   : > { %s5222_s7 = scalar_select %p5795_p7, [#allocation0], [#allocation10] }
  0x43   : > { %s386_s26 = scalar_lea.vmem [#allocation4], %s5219_s14  ;;  %s5632_s16 = smov 1024  }
  0x44   : > { %s397_s23 = sld [smem:[%s5222_s7]]   ;;  %s405_s0 = sshll.u32 %s386_s26, 4  ;;  %s406_s0 = int_to_ptr.vmem [resolvable:$true] %s405_s0 }
  0x45   : > { %5224 = sst [smem:[#allocation9 + $0x1]] (%p5795_p7), %s5632_s16  ;;  %s5633_s12 = smov 16  }
  0x46   : > { %5225 = sst [smem:[#allocation9 + $0x2]] (%p5795_p7), %s5633_s12  ;;  %s5634_s15 = smov 64  }
  0x47   : > { %5226 = sst [smem:[#allocation9 + $0x3]] (%p5795_p7), %s5634_s15  ;;  %s5635_s20 = smov 4  }
  0x48   : > { %5227 = sst [smem:[#allocation9 + $0x4]] (%p5795_p7), %s5634_s15  ;;  %s383_s14 = scalar_lea.sflag [#allocation5], %s382_s24 }
  0x49   : > { %5228 = sst [smem:[#allocation9 + $0x5]] (%p5795_p7), %s5635_s20  ;;  %s5636_s21 = smov 131072  }
  0x4a   : > { %s4297_s19 = sshll.u32 %s397_s23, 26 }
  0x4b   : > { %s4298_s7 = sadd.s32 134217728, %s4297_s19 }
  0x4c   : > { %5229 = dma.general (%p5795_p7), %s392_s22, 9216, %s406_s0, %s383_s14, %s5636_s21, [#allocation9], %s4298_s7, 0  }
  0x4d PF: > { %p4299_p3 = scmp.ge.s32.totalorder %s5629_s17, 1  ;;  %p426_p8 = scmp.lt.s32.totalorder %s5629_s17, 5 }
  0x4f   : > { %p427_p9 = pnand %p4299_p3, %p426_p8 }
  0x50   : > { %s433_s12 = sand.u32 (!%p427_p9), 1, %s5605_s11   ;;  %s439_s15 = sand.u32 (!%p427_p9), 1, %s5597_s9  }
  0x51   : > { %430 = sbr.rel (%p427_p9) target bundleno = 1824 (0x720), region = 89  ;;  %s440_s24 = scalar_lea.sflag (!%p427_p9), [#allocation5], %s439_s15 }
  0x52   : > { %s5220_s16 = smul.u32 (!%p427_p9), 56, %s433_s12 }
  0x53   : > { %s5221_s25 = smul.u32 (!%p427_p9), 576, %s439_s15 }
  0x54   : > { %s5864_s23 = scalar_lea.vmem (!%p427_p9), [#allocation3], %s5220_s16 }
  0x55   : > { %s5866_s26 = scalar_lea.vmem (!%p427_p9), [#allocation4], %s5221_s25 }
  0x56   : > { %5572 = dma.done.wait (%p5807_p12), %s440_s24, 9216  }
  0x57   : > { %5574 = vsyncadd (%p5807_p12), %s440_s24, 4294958080  ;;  %s477_s0 = sand.u32 1, %s5585_s28   ;;  %p4301_p7 = scmp.ne.s32.totalorder %s5613_s13, 0 }
  0x58   : > { %s4300_s18 = sshll.u32 %s477_s0, 7 }
  0x59   : > { %s5875_s22 = scalar_lea.vmem [#allocation7], %s4300_s18  ;;  %485 = sbr.rel (%p4301_p7) target bundleno = 100 (0x64), region = 101 }
  0x5e   : > { %v5637_v14 = vmov 0.0  }
  0x5f   : > { %486 = vst [vmem:[#allocation2 + $0x30] sm:$0xff] %v5637_v14  ;;  %487 = vst [vmem:[#allocation2] sm:$0xff] %v5637_v14 }
  0x60   : > { %488 = vst [vmem:[#allocation2 + $0x18] sm:$0xff] %v5637_v14  ;;  %489 = vst [vmem:[#allocation2 + $0x10] sm:$0xff] %v5637_v14 }
  0x61   : > { %490 = vst [vmem:[#allocation2 + $0x48] sm:$0xff] %v5637_v14  ;;  %491 = vst [vmem:[#allocation2 + $0x28] sm:$0xff] %v5637_v14 }
  0x62   : > { %492 = vst [vmem:[#allocation2 + $0x8] sm:$0xff] %v5637_v14  ;;  %493 = vst [vmem:[#allocation2 + $0x20] sm:$0xff] %v5637_v14 }
  0x63   : > { %494 = vst [vmem:[#allocation2 + $0x40] sm:$0xff] %v5637_v14  ;;  %495 = vst [vmem:[#allocation2 + $0x38] sm:$0xff] %v5637_v14 }
  0x64 PF: > { %v5368_v15 = vld [vmem:[%s5866_s26 + $0x38] sm:$0xff]   ;;  %v5638_v16 = vmov 0.0   ;;  %v5370_v18 = vld [vmem:[%s5866_s26 + $0x30] sm:$0xff]   ;;  %vm5639_vm0 = vmmov 0   ;;  %v5372_v20 = vld [vmem:[%s5866_s26 + $0x28] sm:$0xff]   ;;  %vm1026_vm2 = vcmask 1046528  }
  0x65   : > { %4779 = vmatprep.subr.bf16.mxu0 %v5638_v16  ;;  %4815 = vmatprep.subr.bf16.mxu1 %v5638_v16  ;;  %v5369_v17 = vld [vmem:[%s5866_s26 + $0x78] sm:$0xff]   ;;  %v5371_v19 = vld [vmem:[%s5866_s26 + $0x70] sm:$0xff]   ;;  %v5373_v21 = vld [vmem:[%s5866_s26 + $0x68] sm:$0xff]   ;;  %vm769_vm1 = vsmask.f32 7424  ;;  %vm1739_vm4 = vcmask 1045504  }
  0x66   : > { %4780 = vmatpush3.bf16.msra.mxu0 %v5368_v15  ;;  %4795 = vmatprep.mubr.msk.bf16.mxu0 %vm5639_vm0, %v5638_v16  ;;  %v5374_v22 = vld [vmem:[%s5866_s26 + $0x20] sm:$0xff]   ;;  %v5376_v24 = vld [vmem:[%s5866_s26 + $0x18] sm:$0xff]   ;;  %v5378_v26 = vld [vmem:[%s5866_s26 + $0x10] sm:$0xff]   ;;  %vm1473_vm3 = vsmask.f32 6400  ;;  %vm2452_vm6 = vcmask 1044480  }
  0x67   : > { %4781 = vmatprep.subr.bf16.mxu0 %v5638_v16  ;;  %4816 = vmatpush3.bf16.msra.mxu1 %v5369_v17  ;;  %v5375_v23 = vld [vmem:[%s5866_s26 + $0x60] sm:$0xff]   ;;  %v5377_v25 = vld [vmem:[%s5866_s26 + $0x58] sm:$0xff]   ;;  %v5379_v27 = vld [vmem:[%s5866_s26 + $0x50] sm:$0xff]   ;;  %vm2186_vm5 = vsmask.f32 5376  ;;  %p4555_p10 = scmp.ne.s32.totalorder %s5613_s13, 1 }
  0x68   : > { %4817 = vmatprep.subr.bf16.mxu1 %v5638_v16  ;;  %4831 = vmatprep.mubr.msk.bf16.mxu1 %vm5639_vm0, %v5638_v16  ;;  %v5386_v28 = vld [vmem:[%s5864_s23] sm:$0xff]   ;;  %v5387_v29 = vld [vmem:[%s5864_s23 + $0x8] sm:$0xff]   ;;  %v5382_v36 = vld [vmem:[%s5866_s26] sm:$0xff]   ;;  %s5642_s21 = smov (!%p4555_p10), 24   ;;  %s5643_s12 = smov (!%p4555_p10), 16  }
  0x69   : > { %v5380_v30 = vld [vmem:[%s5866_s26 + $0x8] sm:$0xff]   ;;  %v773_v31 = vshll.u32 %v5386_v28, 16  ;;  %v771_v33 = vshrl.u32 %v5386_v28, 16  ;;  %v778_v35 = vshll.u32 %v5387_v29, 16  ;;  %v5384_v37 = vld [vmem:[%s5866_s26 + $0x40] sm:$0xff]   ;;  %v5385_v42 = vld [vmem:[%s5866_s26 + $0xb8] sm:$0xff]  }
  0x6a   : > { %4782 = vmatpush3.bf16.msra.mxu0 %v5370_v18  ;;  %v5381_v32 = vld [vmem:[%s5866_s26 + $0x48] sm:$0xff]   ;;  %v5391_v40 = vld [vmem:[%s5864_s23 + $0x10] sm:$0xff]   ;;  %v782_v44 = vshrl.u32 %v5387_v29, 16  ;;  %v5388_v47 = vld [vmem:[%s5866_s26 + $0xb0] sm:$0xff]   ;;  %s5644_s13 = smov (!%p4555_p10), 32   ;;  %s5645_s15 = smov (!%p4555_p10), 40  }
  0x6b   : > { %4783 = vmatprep.subr.bf16.mxu0 %v5638_v16  ;;  %4818 = vmatpush3.bf16.msra.mxu1 %v5371_v19  ;;  %v775_v34 = vrot.slane %v773_v31, 1  ;;  %v780_v39 = vrot.slane %v778_v35, 1  ;;  %v5383_v41 = vld [vmem:[%s5864_s23] sm:$0xff]   ;;  %v786_v45 = vshll.u32 %v5391_v40, 16  ;;  %v5390_v46 = vld [vmem:[%s5866_s26 + $0xf8] sm:$0xff]   ;;  %v5396_v50 = vld [vmem:[%s5864_s23 + $0x18] sm:$0xff]  }
  0x6c   : > { %4819 = vmatprep.subr.bf16.mxu1 %v5638_v16  ;;  %v5393_v51 = vld [vmem:[%s5866_s26 + $0xf0] sm:$0xff]   ;;  %v5392_v53 = vld [vmem:[%s5866_s26 + $0xa8] sm:$0xff]   ;;  %v790_v55 = vshrl.u32 %v5391_v40, 16  ;;  %v794_v56 = vshll.u32 %v5396_v50, 16  ;;  %v5395_v58 = vld [vmem:[%s5866_s26 + $0xa0] sm:$0xff]   ;;  %v798_v2 = vshrl.u32 %v5396_v50, 16 }
  0x6d   : > { %v776_v38 = vor.u32 %v775_v34, %v771_v33  ;;  %v784_v48 = vor.u32 %v782_v44, %v780_v39  ;;  %v788_v49 = vrot.slane %v786_v45, 1  ;;  %v5389_v52 = vld [vmem:[%s5864_s23 + $0x8] sm:$0xff]   ;;  %v5397_v57 = vld [vmem:[%s5866_s26 + $0xe8] sm:$0xff]   ;;  %v5400_v62 = vld [vmem:[%s5866_s26 + $0xe0] sm:$0xff]   ;;  %s5646_s24 = smov (!%p4555_p10), 48   ;;  %s5648_s18 = smov (!%p4555_p10), 64  }
  0x6e   : > { %4784 = vmatpush3.bf16.msra.mxu0 %v5372_v20  ;;  %v796_v60 = vrot.slane %v794_v56, 1  ;;  %v5402_v61 = vld [vmem:[%s5864_s23 + $0x20] sm:$0xff]   ;;  %v5394_v63 = vld [vmem:[%s5864_s23 + $0x10] sm:$0xff]   ;;  %v5407_v5 = vld [vmem:[%s5864_s23 + $0x28] ss:$0 sps:$4 sm:$0x11]  }
  0x6f   : > { %4785 = vmatprep.subr.bf16.mxu0 %v5638_v16  ;;  %4820 = vmatpush3.bf16.msra.mxu1 %v5373_v21  ;;  %v781_v43 = vsel %vm769_vm1, %v776_v38, %v780_v39  ;;  %v789_v54 = vsel %vm769_vm1, %v784_v48, %v788_v49  ;;  %v792_v59 = vor.u32 %v790_v55, %v788_v49  ;;  %v5398_v0 = vld [vmem:[%s5866_s26 + $0x98] sm:$0xff]   ;;  %v802_v3 = vshll.u32 %v5402_v61, 16  ;;  %v5401_v6 = vld [vmem:[%s5866_s26 + $0x90] sm:$0xff]   ;;  %v5399_v10 = vld [vmem:[%s5864_s23 + $0x18] sm:$0xff]   ;;  %s5649_s6 = smov (!%p4555_p10), 56   ;;  %s5650_s11 = smov (!%p4555_p10), 72  }
  0x70   : > { %4821 = vmatprep.subr.bf16.mxu1 %v5638_v16  ;;  %v5403_v4 = vld [vmem:[%s5866_s26 + $0xd8] sm:$0xff]   ;;  %v800_v7 = vor.u32 %v798_v2, %v796_v60  ;;  %v5406_v9 = vld [vmem:[%s5866_s26 + $0xd0] sm:$0xff]   ;;  %v5404_v11 = vld [vmem:[%s5866_s26 + $0x88] sm:$0xff]   ;;  %v806_v13 = vshrl.u32 %v5402_v61, 16  ;;  %v810_v14 = vshll.u32 %v5407_v5, 16  ;;  %s5652_s7 = smov (!%p4555_p10), 80  }
  0x71   : > { %v797_v1 = vsel %vm769_vm1, %v792_v59, %v796_v60  ;;  %v804_v8 = vrot.slane %v802_v3, 1  ;;  %v5409_v15 = vld [vmem:[%s5866_s26 + $0xc8] sm:$0xff]   ;;  %v5408_v20 = vld [vmem:[%s5866_s26 + $0x80] sm:$0xff]   ;;  %v5411_v21 = vld [vmem:[%s5864_s23 + $0x8] sm:$0xff]   ;;  %s5653_s14 = smov (!%p4555_p10), 96   ;;  %s6734_s16 = sld [smem:[#allocation24_spill]] (!%p4555_p10) }
  0x72   : > { %4786 = vmatpush3.bf16.msra.mxu0 %v5374_v22  ;;  %v5405_v17 = vld [vmem:[%s5864_s23 + $0x20] sm:$0xff]   ;;  %v812_v19 = vrot.slane %v810_v14, 1  ;;  %v5412_v22 = vld [vmem:[%s5866_s26 + $0xc0] sm:$0xff]   ;;  %v1028_v28 = vrot.slane %v5411_v21, 1  ;;  %v5413_v31 = vld [vmem:[%s5866_s26 + $0x138] sm:$0xff]  }
  0x73   : > { %4787 = vmatprep.subr.bf16.mxu0 %v5638_v16  ;;  %4822 = vmatpush3.bf16.msra.mxu1 %v5375_v23  ;;  %v805_v12 = vsel %vm769_vm1, %v800_v7, %v804_v8  ;;  %v808_v18 = vor.u32 %v806_v13, %v804_v8  ;;  %v5410_v23 = vld [vmem:[%s5864_s23] sm:$0xfe]   ;;  %v5419_v35 = vld [vmem:[%s5864_s23 + $0x14] sm:$0xff]   ;;  %v5433_v61 = vld [vmem:[%s5864_s23 + $0x28] ss:$0 sps:$4 sm:$0x11]  }
  0x74   : > { %4823 = vmatprep.subr.bf16.mxu1 %v5638_v16  ;;  %v1253_v39 = vrot.slane %v5419_v35, 1  ;;  %v5421_v40 = vld [vmem:[%s5866_s26 + $0x170] sm:$0xff]   ;;  %v5423_v48 = vld [vmem:[%s5866_s26 + $0x120] sm:$0xff]   ;;  %v5431_v56 = vld [vmem:[%s5866_s26 + $0x158] sm:$0xff]   ;;  %v1036_v8 = vrot.slane %v5433_v61, 1 }
  0x75   : > { %v5424_v45 = vld [vmem:[%s5864_s23 + $0x1c] sm:$0xff]   ;;  %v5447_v35 = vld [vmem:[%s5864_s23 + $0x14] sm:$0xff]  }
  0x76   : > { %4788 = vmatpush3.bf16.msra.mxu0 %v5376_v24  ;;  %v5414_v24 = vld [vmem:[%s5864_s23 + $0x4] sm:$0xfe]   ;;  %v1255_v49 = vrot.slane %v5424_v45, 1  ;;  %v5428_v50 = vld [vmem:[%s5866_s26 + $0x160] sm:$0xff]  }
  0x77   : > { %4789 = vmatprep.subr.bf16.mxu0 %v5638_v16  ;;  %4824 = vmatpush3.bf16.msra.mxu1 %v5377_v25  ;;  %v813_v25 = vsel %vm769_vm1, %v808_v18, %v812_v19  ;;  %v1250_v29 = vrot.slane %v5414_v24, 1  ;;  %v5434_v59 = vld [vmem:[%s5866_s26 + $0x150] sm:$0xff]   ;;  %v5432_v3 = vld [vmem:[%s5866_s26 + $0x108] sm:$0xff]   ;;  %v5440_v13 = vld [vmem:[%s5866_s26 + $0x140] sm:$0xff]   ;;  %s6735_s25 = smov (!%p4555_p10), %s6734_s16 }
  0x78   : > { %4825 = vmatprep.subr.bf16.mxu1 %v5638_v16  ;;  %v1256_v55 = vsel %vm1026_vm2, %v1253_v39, %v1255_v49  ;;  %v5437_v5 = vld [vmem:[%s5866_s26 + $0x148] sm:$0xff]  }
  0x79   : > { %v5448_v45 = vld [vmem:[%s5866_s26 + $0x1a8] sm:$0xff]  }
  0x7a   : > { %4790 = vmatpush3.bf16.msra.mxu0 %v5378_v26  ;;  %v5415_v26 = vld [vmem:[%s5864_s23 + $0xc] sm:$0xff]  }
  0x7b   : > { %4791 = vmatprep.subr.bf16.mxu0 %v5638_v16  ;;  %4826 = vmatpush3.bf16.msra.mxu1 %v5379_v27  ;;  %v1027_v27 = vrot.slane %v5410_v23, 1 }
  0x7c   : > { %4827 = vmatprep.subr.bf16.mxu1 %v5638_v16 }
  0x7d   : > { %v1029_v33 = vsel %vm1026_vm2, %v1027_v27, %v1028_v28 }
  0x7e   : > { %4792 = vmatpush3.bf16.msra.mxu0 %v5380_v30  ;;  %v1251_v30 = vrot.slane %v5415_v26, 1 }
  0x7f   : > { %4793 = vmatprep.subr.bf16.mxu0 %v5638_v16  ;;  %4828 = vmatpush3.bf16.msra.mxu1 %v5381_v32  ;;  %v5417_v32 = vld [vmem:[%s5864_s23 + $0x10] sm:$0xff]  }
  0x80   : > { %4829 = vmatprep.subr.bf16.mxu1 %v5638_v16  ;;  %v1252_v34 = vsel %vm1026_vm2, %v1250_v29, %v1251_v30  ;;  %v1030_v38 = vrot.slane %v5417_v32, 1  ;;  %v1254_v44 = vsel %vm1026_vm2, %v1251_v30, %v1253_v39  ;;  %v5441_v30 = vld [vmem:[%s5866_s26 + $0x1b8] sm:$0xff]  }
  0x82   : > { %4794 = vmatpush3.bf16.msra.mxu0 %v5382_v36  ;;  %v5418_v36 = vld [vmem:[%s5866_s26 + $0x178] sm:$0xff]  }
  0x83   : > { %4830 = vmatpush3.bf16.msra.mxu1 %v5384_v37  ;;  %4851 = vmatprep.subr.bf16.mxu0 %v5638_v16  ;;  %v5416_v37 = vld [vmem:[%s5866_s26 + $0x130] sm:$0xff]  }
  0x84   : > { %4887 = vmatprep.subr.bf16.mxu1 %v5638_v16 }
  0x85   : > { %4796 = vmatmul.mubr.bf16.vlgmr.msra.gmra.mxu0 %v5383_v41  ;;  %v5422_v41 = vld [vmem:[%s5864_s23 + $0x18] sm:$0xff]  }
  0x86   : > { %4852 = vmatpush3.bf16.msra.mxu0 %v5385_v42  ;;  %4832 = vmatmul.mubr.bf16.vlgmr.msra.gmra.mxu1 %v781_v43  ;;  %v1031_v42 = vsel %vm1026_vm2, %v1028_v28, %v1030_v38  ;;  %v5420_v43 = vld [vmem:[%s5866_s26 + $0x128] sm:$0xff]  }
  0x87   : > { %4853 = vmatprep.subr.bf16.mxu0 %v5638_v16  ;;  %4799 = vmatprep.mubr.msk.bf16.mxu0 %vm5639_vm0, %v5638_v16 }
  0x88   : > { %4888 = vmatpush3.bf16.msra.mxu1 %v5390_v46  ;;  %4835 = vmatprep.mubr.msk.bf16.mxu1 %vm5639_vm0, %v5638_v16  ;;  %v5425_v46 = vld [vmem:[%s5866_s26 + $0x168] sm:$0xff]  }
  0x89   : > { %4889 = vmatprep.subr.bf16.mxu1 %v5638_v16 }
  0x8a   : > { %4854 = vmatpush3.bf16.msra.mxu0 %v5388_v47  ;;  %v1032_v47 = vrot.slane %v5422_v41, 1  ;;  %v1743_v41 = vrot.slane %v5447_v35, 2 }
  0x8b   : > { %4855 = vmatprep.subr.bf16.mxu0 %v5638_v16 }
  0x8c   : > { %4890 = vmatpush3.bf16.msra.mxu1 %v5393_v51  ;;  %v5426_v51 = vld [vmem:[%s5866_s26 + $0x118] sm:$0xff]  }
  0x8d   : > { %4800 = vmatmul.mubr.bf16.gmra.mxu0 %v5389_v52  ;;  %4891 = vmatprep.subr.bf16.mxu1 %v5638_v16  ;;  %v1033_v52 = vsel %vm1026_vm2, %v1030_v38, %v1032_v47 }
  0x8e   : > { %4836 = vmatmul.mubr.bf16.gmra.mxu1 %v789_v54  ;;  %4856 = vmatpush3.bf16.msra.mxu0 %v5392_v53  ;;  %v5427_v53 = vld [vmem:[%s5864_s23 + $0x20] sm:$0xff]  }
  0x8f   : > { %4803 = vmatprep.mubr.msk.bf16.mxu0 %vm5639_vm0, %v5638_v16  ;;  %4857 = vmatprep.subr.bf16.mxu0 %v5638_v16  ;;  %v5430_v54 = vld [vmem:[%s5864_s23 + $0x24] sm:$0xff]  }
  0x90   : > { %4839 = vmatprep.mubr.msk.bf16.mxu1 %vm5639_vm0, %v5638_v16  ;;  %4892 = vmatpush3.bf16.msra.mxu1 %v5397_v57  ;;  %v5429_v57 = vld [vmem:[%s5866_s26 + $0x110] sm:$0xff]   ;;  %v1257_v60 = vrot.slane %v5430_v54, 1  ;;  %v5451_v54 = vld [vmem:[%s5866_s26 + $0x1a0] sm:$0xff]  }
  0x91   : > { %4893 = vmatprep.subr.bf16.mxu1 %v5638_v16 }
  0x92   : > { %4858 = vmatpush3.bf16.msra.mxu0 %v5395_v58  ;;  %v1034_v58 = vrot.slane %v5427_v53, 1  ;;  %v1258_v2 = vsel %vm1026_vm2, %v1255_v49, %v1257_v60  ;;  %v5452_v49 = vld [vmem:[%s5864_s23 + $0x1c] sm:$0xff]  }
  0x93   : > { %4859 = vmatprep.subr.bf16.mxu0 %v5638_v16 }
  0x94   : > { %4894 = vmatpush3.bf16.msra.mxu1 %v5400_v62  ;;  %v5439_v62 = vld [vmem:[%s5864_s23 + $0xc] sm:$0xff]   ;;  %v1037_v18 = vsel %vm1026_vm2, %v1034_v58, %v1036_v8 }
  0x95   : > { %4804 = vmatmul.mubr.bf16.gmra.mxu0 %v5394_v63  ;;  %4895 = vmatprep.subr.bf16.mxu1 %v5638_v16  ;;  %v5438_v63 = vld [vmem:[%s5864_s23 + $0x4] sm:$0xfe]   ;;  %v1486_v7 = vshll.u32 %v5439_v62, 16 }
  0x96   : > { %4840 = vmatmul.mubr.bf16.gmra.mxu1 %v797_v1  ;;  %4860 = vmatpush3.bf16.msra.mxu0 %v5398_v0  ;;  %v5435_v0 = vld [vmem:[%s5864_s23 + $0x2c] ss:$0 sps:$4 sm:$0x11]   ;;  %v1035_v1 = vsel %vm1026_vm2, %v1032_v47, %v1034_v58 }
  0x97   : > { %4807 = vmatprep.mubr.msk.bf16.mxu0 %vm5639_vm0, %v5638_v16  ;;  %4861 = vmatprep.subr.bf16.mxu0 %v5638_v16 }
  0x98   : > { %4843 = vmatprep.mubr.msk.bf16.mxu1 %vm5639_vm0, %v5638_v16  ;;  %4896 = vmatpush3.bf16.msra.mxu1 %v5403_v4  ;;  %v1483_v4 = vshrl.u32 %v5439_v62, 16 }
  0x99   : > { %4897 = vmatprep.subr.bf16.mxu1 %v5638_v16 }
  0x9a   : > { %4862 = vmatpush3.bf16.msra.mxu0 %v5401_v6  ;;  %v1475_v6 = vshrl.u32 %v5438_v63, 16 }
  0x9b   : > { %4863 = vmatprep.subr.bf16.mxu0 %v5638_v16 }
  0x9c   : > { %4898 = vmatpush3.bf16.msra.mxu1 %v5406_v9  ;;  %v5436_v9 = vld [vmem:[%s5866_s26 + $0x100] sm:$0xff]   ;;  %v1477_v14 = vrot.slane %v1475_v6, 1  ;;  %v5462_v6 = vld [vmem:[%s5866_s26 + $0x1d0] sm:$0xff]  }
  0x9d   : > { %4808 = vmatmul.mubr.bf16.gmra.mxu0 %v5399_v10  ;;  %4899 = vmatprep.subr.bf16.mxu1 %v5638_v16  ;;  %v1259_v10 = vrot.slane %v5435_v0, 1  ;;  %v5459_v0 = vld [vmem:[%s5866_s26 + $0x1d8] sm:$0xff]  }
  0x9e   : > { %4844 = vmatmul.mubr.bf16.gmra.mxu1 %v805_v12  ;;  %4811 = vmatprep.mubr.msk.bf16.mxu0 %vm5639_vm0, %v5638_v16  ;;  %v1485_v12 = vrot.slane %v1483_v4, 1 }
  0x9f   : > { %4864 = vmatpush3.bf16.msra.mxu0 %v5404_v11  ;;  %4847 = vmatprep.mubr.msk.bf16.mxu1 %vm5639_vm0, %v5638_v16  ;;  %v1478_v11 = vshll.u32 %v5438_v63, 16  ;;  %v1260_v21 = vsel %vm1026_vm2, %v1257_v60, %v1259_v10  ;;  %v5461_v60 = vld [vmem:[%s5864_s23 + $0x2c] ss:$0 sps:$4 sm:$0x33]   ;;  %v5458_v63 = vld [vmem:[%s5864_s23 + $0x24] sm:$0xff]  }
  0xa0   : > { %4865 = vmatprep.subr.bf16.mxu0 %v5638_v16  ;;  %4900 = vmatpush3.bf16.msra.mxu1 %v5409_v15  ;;  %v1488_v15 = vrot.slane %v1486_v7, 2  ;;  %v1522_v4 = vshll.u32 %v5461_v60, 16  ;;  %v5463_v10 = vld [vmem:[%s5864_s23 + $0x2c] ss:$0 sps:$4 sm:$0x33]  }
  0xa1   : > { %4901 = vmatprep.subr.bf16.mxu1 %v5638_v16  ;;  %v1480_v19 = vrot.slane %v1478_v11, 2 }
  0xa2   : > { %v1489_v24 = vor.u32 %v1488_v15, %v1485_v12  ;;  %v5460_v12 = vld [vmem:[%s5866_s26 + $0x188] sm:$0xff]  }
  0xa3   : > { %4866 = vmatpush3.bf16.msra.mxu0 %v5408_v20  ;;  %v5445_v20 = vld [vmem:[%s5864_s23 + $0x14] sm:$0xff]   ;;  %v1481_v23 = vor.u32 %v1480_v19, %v1477_v14 }
  0xa4   : > { %4902 = vmatpush3.bf16.msra.mxu1 %v5412_v22  ;;  %4923 = vmatprep.subr.bf16.mxu0 %v5638_v16  ;;  %v5443_v22 = vld [vmem:[%s5864_s23 + $0xc] sm:$0xff]   ;;  %v1495_v26 = vshll.u32 %v5445_v20, 16  ;;  %v5465_v15 = vld [vmem:[%s5866_s26 + $0x1c8] sm:$0xff]  }
  0xa5   : > { %4812 = vmatmul.mubr.bf16.gmra.mxu0 %v5405_v17  ;;  %4959 = vmatprep.subr.bf16.mxu1 %v5638_v16  ;;  %v5442_v17 = vld [vmem:[%s5864_s23 + $0x4] sm:$0xfc]   ;;  %v1741_v28 = vrot.slane %v5443_v22, 2  ;;  %v1490_v29 = vsel %vm1473_vm3, %v1481_v23, %v1489_v24  ;;  %v5471_v14 = vld [vmem:[%s5864_s23 + $0x10] sm:$0xff]  }
  0xa6   : > { %4848 = vmatmul.mubr.bf16.gmra.mxu1 %v813_v25  ;;  %4867 = vmatprep.mubr.msk.bf16.mxu0 %vm5639_vm0, %v5638_v16  ;;  %v1492_v25 = vshrl.u32 %v5445_v20, 16  ;;  %v1740_v27 = vrot.slane %v5442_v17, 2  ;;  %v1497_v32 = vrot.slane %v1495_v26, 2  ;;  %v5464_v19 = vld [vmem:[%s5866_s26 + $0x180] sm:$0xff]   ;;  %v2196_v22 = vshrl.u32 %v5471_v14, 16 }
  0xa7   : > { %4903 = vmatprep.mubr.msk.bf16.mxu1 %vm5639_vm0, %v5638_v16  ;;  %v2199_v23 = vshll.u32 %v5471_v14, 16 }
  0xad   : > { %4868 = vmatmul.mubr.bf16.vlgmr.msra.gmra.mxu0 %v1029_v33  ;;  %v5450_v33 = vld [vmem:[%s5864_s23 + $0x1c] sm:$0xff]  }
  0xae   : > { %4924 = vmatpush3.bf16.msra.mxu0 %v5413_v31  ;;  %4904 = vmatmul.mubr.bf16.vlgmr.msra.gmra.mxu1 %v1252_v34  ;;  %v1494_v31 = vrot.slane %v1492_v25, 1  ;;  %v1742_v34 = vsel %vm1739_vm4, %v1740_v27, %v1741_v28  ;;  %v1501_v39 = vshrl.u32 %v5450_v33, 16  ;;  %v5466_v27 = vld [vmem:[%s5864_s23 + $0x8] sm:$0xfc]  }
  0xaf   : > { %4925 = vmatprep.subr.bf16.mxu0 %v5638_v16  ;;  %4871 = vmatprep.mubr.msk.bf16.mxu0 %vm5639_vm0, %v5638_v16 }
  0xb0   : > { %4960 = vmatpush3.bf16.msra.mxu1 %v5418_v36  ;;  %4907 = vmatprep.mubr.msk.bf16.mxu1 %vm5639_vm0, %v5638_v16  ;;  %v5446_v36 = vld [vmem:[%s5866_s26 + $0x1f8] sm:$0xff]   ;;  %v1498_v38 = vor.u32 %v1497_v32, %v1494_v31  ;;  %v2198_v31 = vrot.slane %v2196_v22, 2  ;;  %v2201_v32 = vrot.slane %v2199_v23, 3 }
  0xb1   : > { %4961 = vmatprep.subr.bf16.mxu1 %v5638_v16  ;;  %v5487_v23 = vld [vmem:[%s5864_s23 + $0x8] sm:$0xf8]  }
  0xb2   : > { %4926 = vmatpush3.bf16.msra.mxu0 %v5416_v37  ;;  %v5444_v37 = vld [vmem:[%s5866_s26 + $0x1b0] sm:$0xff]  }
  0xb3   : > { %4927 = vmatprep.subr.bf16.mxu0 %v5638_v16 }
  0xb4   : > { %4962 = vmatpush3.bf16.msra.mxu1 %v5421_v40  ;;  %v1504_v40 = vshll.u32 %v5450_v33, 16  ;;  %v5474_v33 = vld [vmem:[%s5864_s23 + $0x18] sm:$0xff]  }
  0xb5   : > { %4872 = vmatmul.mubr.bf16.gmra.mxu0 %v1031_v42  ;;  %4963 = vmatprep.subr.bf16.mxu1 %v5638_v16  ;;  %v5449_v42 = vld [vmem:[%s5866_s26 + $0x1f0] sm:$0xff]  }
  0xb6   : > { %4908 = vmatmul.mubr.bf16.gmra.mxu1 %v1254_v44  ;;  %4928 = vmatpush3.bf16.msra.mxu0 %v5420_v43  ;;  %v5455_v43 = vld [vmem:[%s5864_s23 + $0x24] sm:$0xff]   ;;  %v1499_v44 = vsel %vm1473_vm3, %v1489_v24, %v1498_v38  ;;  %v1506_v47 = vrot.slane %v1504_v40, 2  ;;  %v5468_v24 = vld [vmem:[%s5866_s26 + $0x1c0] sm:$0xff]  }
  0xb7   : > { %4875 = vmatprep.mubr.msk.bf16.mxu0 %vm5639_vm0, %v5638_v16  ;;  %4929 = vmatprep.subr.bf16.mxu0 %v5638_v16 }
  0xb8   : > { %4911 = vmatprep.mubr.msk.bf16.mxu1 %vm5639_vm0, %v5638_v16  ;;  %4964 = vmatpush3.bf16.msra.mxu1 %v5425_v46  ;;  %v1503_v46 = vrot.slane %v1501_v39, 1  ;;  %v2208_v39 = vshll.u32 %v5474_v33, 16 }
  0xb9   : > { %4965 = vmatprep.subr.bf16.mxu1 %v5638_v16 }
  0xba   : > { %4930 = vmatpush3.bf16.msra.mxu0 %v5423_v48  ;;  %v1744_v48 = vsel %vm1739_vm4, %v1741_v28, %v1743_v41  ;;  %v1507_v53 = vor.u32 %v1506_v47, %v1503_v46  ;;  %v5467_v28 = vld [vmem:[%s5864_s23 + $0x10] sm:$0xff]   ;;  %v5478_v46 = vld [vmem:[%s5864_s23 + $0x20] sm:$0xff]  }
  0xbb   : > { %4931 = vmatprep.subr.bf16.mxu0 %v5638_v16  ;;  %v1964_v35 = vrot.slane %v5467_v28, 2  ;;  %v5472_v47 = vld [vmem:[%s5866_s26 + $0x230] sm:$0xff]   ;;  %v2453_v28 = vrot.slane %v5487_v23, 3 }
  0xbc   : > { %4966 = vmatpush3.bf16.msra.mxu1 %v5428_v50  ;;  %v5453_v50 = vld [vmem:[%s5866_s26 + $0x1e8] sm:$0xff]   ;;  %v1508_v61 = vsel %vm1473_vm3, %v1498_v38, %v1507_v53  ;;  %v2205_v38 = vshrl.u32 %v5474_v33, 16 }
  0xbd   : > { %4876 = vmatmul.mubr.bf16.gmra.mxu0 %v1033_v52  ;;  %4967 = vmatprep.subr.bf16.mxu1 %v5638_v16  ;;  %v1513_v52 = vshll.u32 %v5455_v43, 16  ;;  %v5491_v33 = vld [vmem:[%s5864_s23 + $0x18] sm:$0xff]  }
  0xbe   : > { %4912 = vmatmul.mubr.bf16.gmra.mxu1 %v1256_v55  ;;  %4932 = vmatpush3.bf16.msra.mxu0 %v5426_v51  ;;  %v1510_v51 = vshrl.u32 %v5455_v43, 16  ;;  %v1745_v55 = vrot.slane %v5452_v49, 2 }
  0xbf   : > { %4879 = vmatprep.mubr.msk.bf16.mxu0 %vm5639_vm0, %v5638_v16  ;;  %4933 = vmatprep.subr.bf16.mxu0 %v5638_v16 }
  0xc0   : > { %4915 = vmatprep.mubr.msk.bf16.mxu1 %vm5639_vm0, %v5638_v16  ;;  %4968 = vmatpush3.bf16.msra.mxu1 %v5431_v56  ;;  %v5456_v56 = vld [vmem:[%s5866_s26 + $0x1e0] sm:$0xff]   ;;  %v1512_v58 = vrot.slane %v1510_v51, 1  ;;  %v1746_v62 = vsel %vm1739_vm4, %v1743_v41, %v1745_v55  ;;  %v5469_v41 = vld [vmem:[%s5866_s26 + $0x238] sm:$0xff]   ;;  %v2217_v51 = vshll.u32 %v5478_v46, 16 }
  0xc1   : > { %4969 = vmatprep.subr.bf16.mxu1 %v5638_v16 }
  0xc2   : > { %4934 = vmatpush3.bf16.msra.mxu0 %v5429_v57  ;;  %v5454_v57 = vld [vmem:[%s5866_s26 + $0x198] sm:$0xff]  }
  0xc3   : > { %4935 = vmatprep.subr.bf16.mxu0 %v5638_v16 }
  0xc4   : > { %4970 = vmatpush3.bf16.msra.mxu1 %v5434_v59  ;;  %v1515_v59 = vrot.slane %v1513_v52, 2 }
  0xc5   : > { %4880 = vmatmul.mubr.bf16.gmra.mxu0 %v1035_v1  ;;  %4971 = vmatprep.subr.bf16.mxu1 %v5638_v16 }
  0xc6   : > { %4916 = vmatmul.mubr.bf16.gmra.mxu1 %v1258_v2  ;;  %4883 = vmatprep.mubr.msk.bf16.mxu0 %vm5639_vm0, %v5638_v16  ;;  %v1516_v1 = vor.u32 %v1515_v59, %v1512_v58  ;;  %v5457_v2 = vld [vmem:[%s5866_s26 + $0x190] sm:$0xff]  }
  0xc7   : > { %4936 = vmatpush3.bf16.msra.mxu0 %v5432_v3  ;;  %4919 = vmatprep.mubr.msk.bf16.mxu1 %vm5639_vm0, %v5638_v16  ;;  %v1519_v3 = vshrl.u32 %v5461_v60, 16  ;;  %v5482_v58 = vld [vmem:[%s5864_s23 + $0x28] sm:$0xff]   ;;  %v5477_v60 = vld [vmem:[%s5866_s26 + $0x220] sm:$0xff]  }
  0xc8   : > { %4937 = vmatprep.subr.bf16.mxu0 %v5638_v16  ;;  %4972 = vmatpush3.bf16.msra.mxu1 %v5437_v5  ;;  %v1747_v5 = vrot.slane %v5458_v63, 2  ;;  %v1517_v7 = vsel %vm1473_vm3, %v1507_v53, %v1516_v1  ;;  %v5475_v53 = vld [vmem:[%s5866_s26 + $0x228] sm:$0xff]   ;;  %v2226_v63 = vshll.u32 %v5482_v58, 16 }
  0xc9   : > { %4973 = vmatprep.subr.bf16.mxu1 %v5638_v16  ;;  %v1521_v8 = vrot.slane %v1519_v3, 1 }
  0xca   : > { %v1748_v11 = vsel %vm1739_vm4, %v1745_v55, %v1747_v5 }
  0xcb   : > { %4938 = vmatpush3.bf16.msra.mxu0 %v5436_v9  ;;  %v1524_v9 = vrot.slane %v1522_v4, 2 }
  0xcc   : > { %4974 = vmatpush3.bf16.msra.mxu1 %v5440_v13  ;;  %4995 = vmatprep.subr.bf16.mxu0 %v5638_v16  ;;  %v5470_v13 = vld [vmem:[%s5864_s23 + $0x8] sm:$0xfc]  }
  0xcd   : > { %4884 = vmatmul.mubr.bf16.gmra.mxu0 %v1037_v18  ;;  %5031 = vmatprep.subr.bf16.mxu1 %v5638_v16  ;;  %v1525_v17 = vor.u32 %v1524_v9, %v1521_v8  ;;  %v1749_v18 = vrot.slane %v5463_v10, 2  ;;  %v2188_v20 = vshrl.u32 %v5470_v13, 16  ;;  %v5481_v8 = vld [vmem:[%s5866_s26 + $0x210] sm:$0xff]  }
  0xce   : > { %4920 = vmatmul.mubr.bf16.gmra.mxu1 %v1260_v21  ;;  %4939 = vmatprep.mubr.msk.bf16.mxu0 %vm5639_vm0, %v5638_v16  ;;  %v2191_v21 = vshll.u32 %v5470_v13, 16  ;;  %v5484_v13 = vld [vmem:[%s5864_s23 + $0x30] ss:$0 sps:$4 sm:$0x33]  }
  0xcf   : > { %4975 = vmatprep.mubr.msk.bf16.mxu1 %vm5639_vm0, %v5638_v16  ;;  %v1526_v25 = vsel %vm1473_vm3, %v1516_v1, %v1525_v17  ;;  %v1750_v26 = vsel %vm1739_vm4, %v1747_v5, %v1749_v18  ;;  %v5479_v1 = vld [vmem:[%s5866_s26 + $0x218] sm:$0xff]   ;;  %v2228_v5 = vrot.slane %v2226_v63, 3 }
  0xd5   : > { %4940 = vmatmul.mubr.bf16.vlgmr.msra.gmra.mxu0 %v1490_v29  ;;  %v2190_v29 = vrot.slane %v2188_v20, 2 }
  0xd6   : > { %4996 = vmatpush3.bf16.msra.mxu0 %v5441_v30  ;;  %4976 = vmatmul.mubr.bf16.vlgmr.msra.gmra.mxu1 %v1742_v34  ;;  %v2193_v30 = vrot.slane %v2191_v21, 3  ;;  %v1963_v34 = vrot.slane %v5466_v27, 2  ;;  %v5486_v21 = vld [vmem:[%s5866_s26 + $0x200] sm:$0xff]   ;;  %v5490_v27 = vld [vmem:[%s5864_s23 + $0x28] sm:$0xff]  }
  0xd7   : > { %4997 = vmatprep.subr.bf16.mxu0 %v5638_v16  ;;  %4943 = vmatprep.mubr.msk.bf16.mxu0 %vm5639_vm0, %v5638_v16 }
  0xd8   : > { %5032 = vmatpush3.bf16.msra.mxu1 %v5446_v36  ;;  %4979 = vmatprep.mubr.msk.bf16.mxu1 %vm5639_vm0, %v5638_v16  ;;  %v2194_v36 = vor.u32 %v2193_v30, %v2190_v29  ;;  %v1965_v40 = vsel %vm1739_vm4, %v1963_v34, %v1964_v35 }
  0xd9   : > { %5033 = vmatprep.subr.bf16.mxu1 %v5638_v16 }
  0xda   : > { %4998 = vmatpush3.bf16.msra.mxu0 %v5444_v37  ;;  %v2202_v37 = vor.u32 %v2201_v32, %v2198_v31  ;;  %v2460_v31 = vrot.slane %v5490_v27, 3 }
  0xdb   : > { %4999 = vmatprep.subr.bf16.mxu0 %v5638_v16 }
  0xdc   : > { %5034 = vmatpush3.bf16.msra.mxu1 %v5449_v42  ;;  %v5473_v42 = vld [vmem:[%s5864_s23 + $0x18] sm:$0xff]   ;;  %v2203_v43 = vsel %vm2186_vm5, %v2194_v36, %v2202_v37  ;;  %v2456_v36 = vrot.slane %v5491_v33, 3 }
  0xdd   : > { %4944 = vmatmul.mubr.bf16.gmra.mxu0 %v1499_v44  ;;  %5035 = vmatprep.subr.bf16.mxu1 %v5638_v16  ;;  %v2207_v44 = vrot.slane %v2205_v38, 2 }
  0xde   : > { %4980 = vmatmul.mubr.bf16.gmra.mxu1 %v1744_v48  ;;  %5000 = vmatpush3.bf16.msra.mxu0 %v5448_v45  ;;  %v2210_v45 = vrot.slane %v2208_v39, 3  ;;  %v1966_v48 = vrot.slane %v5473_v42, 2 }
  0xdf   : > { %4947 = vmatprep.mubr.msk.bf16.mxu0 %vm5639_vm0, %v5638_v16  ;;  %5001 = vmatprep.subr.bf16.mxu0 %v5638_v16 }
  0xe0   : > { %4983 = vmatprep.mubr.msk.bf16.mxu1 %vm5639_vm0, %v5638_v16  ;;  %5036 = vmatpush3.bf16.msra.mxu1 %v5453_v50  ;;  %v2211_v49 = vor.u32 %v2210_v45, %v2207_v44  ;;  %v2214_v50 = vshrl.u32 %v5478_v46, 16  ;;  %v1967_v52 = vsel %vm1739_vm4, %v1964_v35, %v1966_v48  ;;  %v5492_v35 = vld [vmem:[%s5864_s23 + $0x30] ss:$0 sps:$4 sm:$0x77]  }
  0xe1   : > { %5037 = vmatprep.subr.bf16.mxu1 %v5638_v16  ;;  %v507_v46 = vld [vmem:[#allocation2] sm:$0xff] }
  0xe2   : > { %5002 = vmatpush3.bf16.msra.mxu0 %v5451_v54  ;;  %v5476_v54 = vld [vmem:[%s5864_s23 + $0x20] sm:$0xff]   ;;  %v2212_v55 = vsel %vm2186_vm5, %v2202_v37, %v2211_v49  ;;  %v2462_v37 = vrot.slane %v5492_v35, 3 }
  0xe3   : > { %5003 = vmatprep.subr.bf16.mxu0 %v5638_v16  ;;  %v1968_v59 = vrot.slane %v5476_v54, 2 }
  0xe4   : > { %5038 = vmatpush3.bf16.msra.mxu1 %v5456_v56  ;;  %v2216_v56 = vrot.slane %v2214_v50, 2  ;;  %v2463_v39 = vsel %vm2452_vm6, %v2460_v31, %v2462_v37 }
  0xe5   : > { %4948 = vmatmul.mubr.bf16.gmra.mxu0 %v1508_v61  ;;  %5039 = vmatprep.subr.bf16.mxu1 %v5638_v16 }
  0xe6   : > { %4984 = vmatmul.mubr.bf16.gmra.mxu1 %v1746_v62  ;;  %5004 = vmatpush3.bf16.msra.mxu0 %v5454_v57  ;;  %v2219_v57 = vrot.slane %v2217_v51, 3  ;;  %v2223_v62 = vshrl.u32 %v5482_v58, 16 }
  0xe7   : > { %4951 = vmatprep.mubr.msk.bf16.mxu0 %vm5639_vm0, %v5638_v16  ;;  %5005 = vmatprep.subr.bf16.mxu0 %v5638_v16 }
  0xe8   : > { %4987 = vmatprep.mubr.msk.bf16.mxu1 %vm5639_vm0, %v5638_v16  ;;  %5040 = vmatpush3.bf16.msra.mxu1 %v5459_v0  ;;  %v2220_v61 = vor.u32 %v2219_v57, %v2216_v56  ;;  %v1969_v0 = vsel %vm1739_vm4, %v1966_v48, %v1968_v59  ;;  %v2225_v4 = vrot.slane %v2223_v62, 2 }
  0xe9   : > { %5041 = vmatprep.subr.bf16.mxu1 %v5638_v16 }
  0xea   : > { %5006 = vmatpush3.bf16.msra.mxu0 %v5457_v2  ;;  %v5480_v2 = vld [vmem:[%s5864_s23 + $0x28] sm:$0xff]   ;;  %v2221_v3 = vsel %vm2186_vm5, %v2211_v49, %v2220_v61  ;;  %v2229_v9 = vor.u32 %v2228_v5, %v2225_v4 }
  0xeb   : > { %5007 = vmatprep.subr.bf16.mxu0 %v5638_v16 }
  0xec   : > { %5042 = vmatpush3.bf16.msra.mxu1 %v5462_v6  ;;  %v5485_v6 = vld [vmem:[%s5864_s23 + $0x30] ss:$0 sps:$4 sm:$0x77]   ;;  %v2230_v14 = vsel %vm2186_vm5, %v2220_v61, %v2229_v9 }
  0xed   : > { %4952 = vmatmul.mubr.bf16.gmra.mxu0 %v1517_v7  ;;  %5043 = vmatprep.subr.bf16.mxu1 %v5638_v16  ;;  %v1970_v7 = vrot.slane %v5480_v2, 2  ;;  %v2232_v10 = vshrl.u32 %v5485_v6, 16  ;;  %v510_v2 = vld [vmem:[#allocation2 + $0x48] sm:$0xff] }
  0xee   : > { %4988 = vmatmul.mubr.bf16.gmra.mxu1 %v1748_v11  ;;  %4955 = vmatprep.mubr.msk.bf16.mxu0 %vm5639_vm0, %v5638_v16  ;;  %v2235_v11 = vshll.u32 %v5485_v6, 16 }
  0xef   : > { %5008 = vmatpush3.bf16.msra.mxu0 %v5460_v12  ;;  %4991 = vmatprep.mubr.msk.bf16.mxu1 %vm5639_vm0, %v5638_v16  ;;  %v1971_v12 = vsel %vm1739_vm4, %v1968_v59, %v1970_v7  ;;  %v2234_v17 = vrot.slane %v2232_v10, 2  ;;  %v509_v59 = vld [vmem:[#allocation2 + $0x10] sm:$0xff] }
  0xf0   : > { %5009 = vmatprep.subr.bf16.mxu0 %v5638_v16  ;;  %5044 = vmatpush3.bf16.msra.mxu1 %v5465_v15  ;;  %v5483_v15 = vld [vmem:[%s5866_s26 + $0x208] sm:$0xff]   ;;  %v2237_v18 = vrot.slane %v2235_v11, 3  ;;  %s5647_s26 = smov (!%p4555_p10), 8  }
  0xf1   : > { %5045 = vmatprep.subr.bf16.mxu1 %v5638_v16 }
  0xf2   : > { %v2238_v20 = vor.u32 %v2237_v18, %v2234_v17  ;;  %v512_v17 = vld [vmem:[#allocation2 + $0x8] sm:$0xff] }
  0xf3   : > { %5010 = vmatpush3.bf16.msra.mxu0 %v5464_v19  ;;  %v1972_v19 = vrot.slane %v5484_v13, 2 }
  0xf4   : > { %5046 = vmatpush3.bf16.msra.mxu1 %v5468_v24  ;;  %5067 = vmatprep.subr.bf16.mxu0 %v5638_v16  ;;  %v5488_v24 = vld [vmem:[%s5864_s23 + $0x10] sm:$0xff]  }
  0xf5   : > { %4956 = vmatmul.mubr.bf16.gmra.mxu0 %v1526_v25  ;;  %5197 = vmatprep.subr.bf16.mxu1 %v5638_v16  ;;  %v1973_v22 = vsel %vm1739_vm4, %v1970_v7, %v1972_v19  ;;  %v2239_v25 = vsel %vm2186_vm5, %v2229_v9, %v2238_v20  ;;  %v2454_v29 = vrot.slane %v5488_v24, 3  ;;  %v511_v9 = vld [vmem:[#allocation2 + $0x28] sm:$0xff]  ;;  %v513_v24 = vld [vmem:[#allocation2 + $0x20] sm:$0xff] }
  0xf6   : > { %4992 = vmatmul.mubr.bf16.gmra.mxu1 %v1750_v26  ;;  %5011 = vmatprep.mubr.msk.bf16.mxu0 %vm5639_vm0, %v5638_v16  ;;  %v5489_v26 = vld [vmem:[%s5864_s23 + $0x20] sm:$0xff]   ;;  %s6733_s23 = sld [smem:[#allocation23_spill]] (!%p4555_p10) }
  0xf7   : > { %5047 = vmatprep.mubr.msk.bf16.mxu1 %vm5639_vm0, %v5638_v16  ;;  %v2458_v30 = vrot.slane %v5489_v26, 3  ;;  %v2455_v32 = vsel %vm2452_vm6, %v2453_v28, %v2454_v29  ;;  %v2457_v38 = vsel %vm2452_vm6, %v2454_v29, %v2456_v36 }
  0xf9   : > { %v2461_v34 = vsel %vm2452_vm6, %v2458_v30, %v2460_v31  ;;  %v514_v31 = vld [vmem:[#allocation2 + $0x40] sm:$0xff] }
  0xfd   : > { %5012 = vmatmul.mubr.bf16.vlgmr.msra.gmra.mxu0 %v1965_v40  ;;  %v2459_v40 = vsel %vm2452_vm6, %v2456_v36, %v2458_v30 }
  0xfe   : > { %5068 = vmatpush3.bf16.msra.mxu0 %v5469_v41  ;;  %5048 = vmatmul.mubr.bf16.vlgmr.msra.gmra.mxu1 %v2203_v43 }
  0xff   : > { %5069 = vmatprep.subr.bf16.mxu0 %v5638_v16  ;;  %5015 = vmatprep.mubr.msk.bf16.mxu0 %vm5639_vm0, %v5638_v16 }
 0x100   : > { %5205 = vmatpush3.bf16.msra.mxu1 %v5469_v41  ;;  %5051 = vmatprep.mubr.msk.bf16.mxu1 %vm5639_vm0, %v5638_v16  ;;  %v506_v41 = vld [vmem:[#allocation2 + $0x30] sm:$0xff] }
 0x101   : > { %5198 = vmatprep.subr.bf16.mxu1 %v5638_v16 }
 0x102   : > { %5070 = vmatpush3.bf16.msra.mxu0 %v5472_v47 }
 0x103   : > { %5071 = vmatprep.subr.bf16.mxu0 %v5638_v16 }
 0x104   : > { %5206 = vmatpush3.bf16.msra.mxu1 %v5472_v47 }
 0x105   : > { %5016 = vmatmul.mubr.bf16.gmra.mxu0 %v1967_v52  ;;  %5199 = vmatprep.subr.bf16.mxu1 %v5638_v16 }
 0x106   : > { %5052 = vmatmul.mubr.bf16.gmra.mxu1 %v2212_v55  ;;  %5072 = vmatpush3.bf16.msra.mxu0 %v5475_v53 }
 0x107   : > { %5019 = vmatprep.mubr.msk.bf16.mxu0 %vm5639_vm0, %v5638_v16  ;;  %5073 = vmatprep.subr.bf16.mxu0 %v5638_v16 }
 0x108   : > { %5055 = vmatprep.mubr.msk.bf16.mxu1 %vm5639_vm0, %v5638_v16  ;;  %5207 = vmatpush3.bf16.msra.mxu1 %v5475_v53  ;;  %v508_v53 = vld [vmem:[#allocation2 + $0x18] sm:$0xff] }
 0x109   : > { %5200 = vmatprep.subr.bf16.mxu1 %v5638_v16 }
 0x10a   : > { %5074 = vmatpush3.bf16.msra.mxu0 %v5477_v60 }
 0x10b   : > { %5075 = vmatprep.subr.bf16.mxu0 %v5638_v16 }
 0x10c   : > { %5208 = vmatpush3.bf16.msra.mxu1 %v5477_v60 }
 0x10d   : > { %5020 = vmatmul.mubr.bf16.gmra.mxu0 %v1969_v0  ;;  %5201 = vmatprep.subr.bf16.mxu1 %v5638_v16 }
 0x10e   : > { %5056 = vmatmul.mubr.bf16.gmra.mxu1 %v2221_v3  ;;  %5076 = vmatpush3.bf16.msra.mxu0 %v5479_v1 }
 0x10f   : > { %5023 = vmatprep.mubr.msk.bf16.mxu0 %vm5639_vm0, %v5638_v16  ;;  %5077 = vmatprep.subr.bf16.mxu0 %v5638_v16 }
 0x110   : > { %5059 = vmatprep.mubr.msk.bf16.mxu1 %vm5639_vm0, %v5638_v16  ;;  %5209 = vmatpush3.bf16.msra.mxu1 %v5479_v1 }
 0x111   : > { %5202 = vmatprep.subr.bf16.mxu1 %v5638_v16 }
 0x112   : > { %5078 = vmatpush3.bf16.msra.mxu0 %v5481_v8 }
 0x113   : > { %5079 = vmatprep.subr.bf16.mxu0 %v5638_v16 }
 0x114   : > { %5210 = vmatpush3.bf16.msra.mxu1 %v5481_v8 }
 0x115   : > { %5024 = vmatmul.mubr.bf16.gmra.mxu0 %v1971_v12  ;;  %5203 = vmatprep.subr.bf16.mxu1 %v5638_v16 }
 0x116   : > { %5060 = vmatmul.mubr.bf16.gmra.mxu1 %v2230_v14  ;;  %5027 = vmatprep.mubr.msk.bf16.mxu0 %vm5639_vm0, %v5638_v16 }
 0x117   : > { %5080 = vmatpush3.bf16.msra.mxu0 %v5483_v15  ;;  %5063 = vmatprep.mubr.msk.bf16.mxu1 %vm5639_vm0, %v5638_v16 }
 0x118   : > { %5081 = vmatprep.subr.bf16.mxu0 %v5638_v16  ;;  %5211 = vmatpush3.bf16.msra.mxu1 %v5483_v15 }
 0x119   : > { %5204 = vmatprep.subr.bf16.mxu1 %v5638_v16 }
 0x11b   : > { %5082 = vmatpush3.bf16.msra.mxu0 %v5486_v21 }
 0x11c   : > { %5212 = vmatpush3.bf16.msra.mxu1 %v5486_v21 }
 0x11d   : > { %5028 = vmatmul.mubr.bf16.gmra.mxu0 %v1973_v22 }
 0x11e   : > { %5064 = vmatmul.mubr.bf16.gmra.mxu1 %v2239_v25  ;;  %5083 = vmatprep.mubr.msk.bf16.mxu0 %vm5639_vm0, %v5638_v16 }
 0x11f   : > { %5095 = vmatprep.mubr.msk.bf16.mxu1 %vm5639_vm0, %v5638_v16 }
 0x125   : > { %5084 = vmatmul.mubr.bf16.vlgmr.msra.gmra.mxu0 %v2455_v32 }
 0x126   : > { %5096 = vmatmul.mubr.bf16.vlgmr.msra.gmra.mxu1 %v2461_v34  ;;  %5087 = vmatprep.mubr.msk.bf16.mxu0 %vm5639_vm0, %v5638_v16 }
 0x127   : > { %5099 = vmatprep.mubr.msk.bf16.mxu1 %vm5639_vm0, %v5638_v16 }
 0x12d   : > { %5088 = vmatmul.mubr.bf16.gmra.mxu0 %v2457_v38  ;;  %v515_v38 = vld [vmem:[#allocation2 + $0x38] sm:$0xff] }
 0x12e   : > { %5100 = vmatmul.mubr.bf16.gmra.mxu1 %v2463_v39  ;;  %5091 = vmatprep.mubr.msk.bf16.mxu0 %vm5639_vm0, %v5638_v16 }
 0x135   : > { %5092 = vmatmul.mubr.bf16.gmra.mxu0 %v2459_v40 }
 0x145   : > { %v644_v42 = vpop.f32.mrf.mxu0 }
 0x146   : > { %v683_v43 = vadd.f32 %v644_v42, %v506_v41  ;;  %v901_v44 = vpop.f32.mrf.mxu1 }
 0x147   : > { %v4797_v45 = vpop.f32.mrf.mxu0 }
 0x148   : > { %v6213_v47 = vadd.f32 %v901_v44, %v683_v43  ;;  %v4833_v48 = vpop.f32.mrf.mxu1 }
 0x149   : > { %v647_v49 = vpop.f32.mrf.mxu0 }
 0x14a   : > { %v684_v50 = vadd.f32 %v647_v49, %v507_v46  ;;  %v904_v51 = vpop.f32.mrf.mxu1 }
 0x14b   : > { %v4798_v52 = vpop.f32.mrf.mxu0 }
 0x14c   : > { %v6215_v54 = vadd.f32 %v904_v51, %v684_v50  ;;  %v4834_v16 = vpop.f32.mrf.mxu1 }
 0x14d   : > { %v652_v55 = vpop.f32.mrf.mxu0 }
 0x14e   : > { %v685_v56 = vadd.f32 %v652_v55, %v508_v53  ;;  %v909_v57 = vpop.f32.mrf.mxu1 }
 0x14f   : > { %v4801_v58 = vpop.f32.mrf.mxu0 }
 0x150   : > { %v6217_v60 = vadd.f32 %v909_v57, %v685_v56  ;;  %v4837_v61 = vpop.f32.mrf.mxu1 }
 0x151   : > { %v655_v62 = vpop.f32.mrf.mxu0 }
 0x152   : > { %v686_v63 = vadd.f32 %v655_v62, %v509_v59  ;;  %v912_v0 = vpop.f32.mrf.mxu1 }
 0x153   : > { %v4802_v1 = vpop.f32.mrf.mxu0 }
 0x154   : > { %v943_v3 = vadd.f32 %v912_v0, %v686_v63  ;;  %v4838_v4 = vpop.f32.mrf.mxu1 }
 0x155   : > { %v660_v5 = vpop.f32.mrf.mxu0 }
 0x156   : > { %v687_v6 = vadd.f32 %v660_v5, %v510_v2  ;;  %v917_v7 = vpop.f32.mrf.mxu1 }
 0x157   : > { %v4805_v8 = vpop.f32.mrf.mxu0 }
 0x158   : > { %v944_v10 = vadd.f32 %v917_v7, %v687_v6  ;;  %v4841_v11 = vpop.f32.mrf.mxu1 }
 0x159   : > { %v663_v12 = vpop.f32.mrf.mxu0 }
 0x15a   : > { %v688_v13 = vadd.f32 %v663_v12, %v511_v9  ;;  %v920_v14 = vpop.f32.mrf.mxu1 }
 0x15b   : > { %v4806_v15 = vpop.f32.mrf.mxu0 }
 0x15c   : > { %v945_v18 = vadd.f32 %v920_v14, %v688_v13  ;;  %v4842_v19 = vpop.f32.mrf.mxu1 }
 0x15d   : > { %v668_v20 = vpop.f32.mrf.mxu0 }
 0x15e   : > { %v689_v21 = vadd.f32 %v668_v20, %v512_v17  ;;  %v925_v22 = vpop.f32.mrf.mxu1 }
 0x15f   : > { %v4809_v23 = vpop.f32.mrf.mxu0 }
 0x160   : > { %v946_v25 = vadd.f32 %v925_v22, %v689_v21  ;;  %v4845_v26 = vpop.f32.mrf.mxu1 }
 0x161   : > { %v671_v27 = vpop.f32.mrf.mxu0 }
 0x162   : > { %v690_v28 = vadd.f32 %v671_v27, %v513_v24  ;;  %v928_v29 = vpop.f32.mrf.mxu1 }
 0x163   : > { %v4810_v30 = vpop.f32.mrf.mxu0 }
 0x164   : > { %v947_v32 = vadd.f32 %v928_v29, %v690_v28  ;;  %v4846_v33 = vpop.f32.mrf.mxu1 }
 0x165   : > { %v676_v34 = vpop.f32.mrf.mxu0 }
 0x166   : > { %v691_v35 = vadd.f32 %v676_v34, %v514_v31  ;;  %v933_v36 = vpop.f32.mrf.mxu1 }
 0x167   : > { %v4813_v37 = vpop.f32.mrf.mxu0 }
 0x168   : > { %v948_v39 = vadd.f32 %v933_v36, %v691_v35  ;;  %v4849_v40 = vpop.f32.mrf.mxu1 }
 0x169   : > { %v679_v41 = vpop.f32.mrf.mxu0 }
 0x16a   : > { %v692_v42 = vadd.f32 %v679_v41, %v515_v38  ;;  %v936_v43 = vpop.f32.mrf.mxu1 }
 0x16b   : > { %v4814_v44 = vpop.f32.mrf.mxu0 }
 0x16c   : > { %v949_v45 = vadd.f32 %v936_v43, %v692_v42  ;;  %v4850_v46 = vpop.f32.mrf.mxu1 }
 0x16d   : > { %v1125_v48 = vpop.f32.mrf.mxu0 }
 0x16e   : > { %v1164_v49 = vadd.f32 %v1125_v48, %v6213_v47  ;;  %v1348_v50 = vpop.f32.mrf.mxu1 }
 0x16f   : > { %v4869_v51 = vpop.f32.mrf.mxu0 }
 0x170   : > { %v1387_v52 = vadd.f32 %v1348_v50, %v1164_v49  ;;  %v4905_v53 = vpop.f32.mrf.mxu1 }
 0x171   : > { %v1128_v16 = vpop.f32.mrf.mxu0 }
 0x172   : > { %v1165_v55 = vadd.f32 %v1128_v16, %v6215_v54  ;;  %v1351_v56 = vpop.f32.mrf.mxu1 }
 0x173   : > { %v4870_v57 = vpop.f32.mrf.mxu0 }
 0x174   : > { %v1388_v58 = vadd.f32 %v1351_v56, %v1165_v55  ;;  %v4906_v59 = vpop.f32.mrf.mxu1 }
 0x175   : > { %v1133_v61 = vpop.f32.mrf.mxu0 }
 0x176   : > { %v1166_v62 = vadd.f32 %v1133_v61, %v6217_v60  ;;  %v1356_v63 = vpop.f32.mrf.mxu1 }
 0x177   : > { %v4873_v0 = vpop.f32.mrf.mxu0 }
 0x178   : > { %v1389_v1 = vadd.f32 %v1356_v63, %v1166_v62  ;;  %v4909_v2 = vpop.f32.mrf.mxu1 }
 0x179   : > { %v1136_v4 = vpop.f32.mrf.mxu0 }
 0x17a   : > { %v1167_v47 = vadd.f32 %v1136_v4, %v943_v3  ;;  %v1359_v5 = vpop.f32.mrf.mxu1 }
 0x17b   : > { %v4874_v6 = vpop.f32.mrf.mxu0 }
 0x17c   : > { %v1390_v7 = vadd.f32 %v1359_v5, %v1167_v47  ;;  %v4910_v8 = vpop.f32.mrf.mxu1 }
 0x17d   : > { %v1141_v9 = vpop.f32.mrf.mxu0 }
 0x17e   : > { %v1168_v11 = vadd.f32 %v1141_v9, %v944_v10  ;;  %v1364_v54 = vpop.f32.mrf.mxu1 }
 0x17f   : > { %v4877_v12 = vpop.f32.mrf.mxu0 }
 0x180   : > { %v1391_v13 = vadd.f32 %v1364_v54, %v1168_v11  ;;  %v4913_v14 = vpop.f32.mrf.mxu1 }
 0x181   : > { %v1144_v15 = vpop.f32.mrf.mxu0 }
 0x182   : > { %v1169_v17 = vadd.f32 %v1144_v15, %v945_v18  ;;  %v1367_v19 = vpop.f32.mrf.mxu1 }
 0x183   : > { %v4878_v60 = vpop.f32.mrf.mxu0 }
 0x184   : > { %v1392_v20 = vadd.f32 %v1367_v19, %v1169_v17  ;;  %v4914_v21 = vpop.f32.mrf.mxu1 }
 0x185   : > { %v1149_v22 = vpop.f32.mrf.mxu0 }
 0x186   : > { %v1170_v23 = vadd.f32 %v1149_v22, %v946_v25  ;;  %v1372_v24 = vpop.f32.mrf.mxu1 }
 0x187   : > { %v4881_v3 = vpop.f32.mrf.mxu0 }
 0x188   : > { %v6222_v26 = vadd.f32 %v1372_v24, %v1170_v23  ;;  %v4917_v27 = vpop.f32.mrf.mxu1 }
 0x189   : > { %v1152_v28 = vpop.f32.mrf.mxu0 }
 0x18a   : > { %v1171_v29 = vadd.f32 %v1152_v28, %v947_v32  ;;  %v1375_v10 = vpop.f32.mrf.mxu1 }
 0x18b   : > { %v4882_v30 = vpop.f32.mrf.mxu0 }
 0x18c   : > { %v6224_v31 = vadd.f32 %v1375_v10, %v1171_v29  ;;  %v4918_v33 = vpop.f32.mrf.mxu1 }
 0x18d   : > { %v1157_v34 = vpop.f32.mrf.mxu0 }
 0x18e   : > { %v1172_v18 = vadd.f32 %v1157_v34, %v948_v39  ;;  %v1380_v35 = vpop.f32.mrf.mxu1 }
 0x18f   : > { %v4885_v36 = vpop.f32.mrf.mxu0 }
 0x190   : > { %v6226_v37 = vadd.f32 %v1380_v35, %v1172_v18  ;;  %v4921_v38 = vpop.f32.mrf.mxu1 }
 0x191   : > { %v1160_v25 = vpop.f32.mrf.mxu0 }
 0x192   : > { %v1173_v40 = vadd.f32 %v1160_v25, %v949_v45  ;;  %v1383_v41 = vpop.f32.mrf.mxu1 }
 0x193   : > { %v4886_v42 = vpop.f32.mrf.mxu0 }
 0x194   : > { %v6228_v43 = vadd.f32 %v1383_v41, %v1173_v40  ;;  %v4922_v44 = vpop.f32.mrf.mxu1 }
 0x195   : > { %v1614_v32 = vpop.f32.mrf.mxu0 }
 0x196   : > { %v1653_v46 = vadd.f32 %v1614_v32, %v1387_v52  ;;  %v1838_v48 = vpop.f32.mrf.mxu1 }
 0x197   : > { %v4941_v49 = vpop.f32.mrf.mxu0 }
 0x198   : > { %v6230_v50 = vadd.f32 %v1838_v48, %v1653_v46  ;;  %v4977_v51 = vpop.f32.mrf.mxu1 }
 0x199   : > { %v1617_v39 = vpop.f32.mrf.mxu0 }
 0x19a   : > { %v1654_v53 = vadd.f32 %v1617_v39, %v1388_v58  ;;  %v1841_v16 = vpop.f32.mrf.mxu1 }
 0x19b   : > { %v4942_v55 = vpop.f32.mrf.mxu0 }
 0x19c   : > { %v6232_v56 = vadd.f32 %v1841_v16, %v1654_v53  ;;  %v4978_v57 = vpop.f32.mrf.mxu1 }
 0x19d   : > { %v1622_v45 = vpop.f32.mrf.mxu0 }
 0x19e   : > { %v1655_v59 = vadd.f32 %v1622_v45, %v1389_v1  ;;  %v1846_v61 = vpop.f32.mrf.mxu1 }
 0x19f   : > { %v4945_v62 = vpop.f32.mrf.mxu0 }
 0x1a0   : > { %v6234_v63 = vadd.f32 %v1846_v61, %v1655_v59  ;;  %v4981_v0 = vpop.f32.mrf.mxu1 }
 0x1a1   : > { %v1625_v52 = vpop.f32.mrf.mxu0 }
 0x1a2   : > { %v1656_v2 = vadd.f32 %v1625_v52, %v1390_v7  ;;  %v1849_v4 = vpop.f32.mrf.mxu1 }
 0x1a3   : > { %v4946_v47 = vpop.f32.mrf.mxu0 }
 0x1a4   : > { %v6236_v5 = vadd.f32 %v1849_v4, %v1656_v2  ;;  %v4982_v6 = vpop.f32.mrf.mxu1 }
 0x1a5   : > { %v1630_v58 = vpop.f32.mrf.mxu0 }
 0x1a6   : > { %v1657_v8 = vadd.f32 %v1630_v58, %v1391_v13  ;;  %v1854_v9 = vpop.f32.mrf.mxu1 }
 0x1a7   : > { %v4949_v11 = vpop.f32.mrf.mxu0 }
 0x1a8   : > { %v6238_v54 = vadd.f32 %v1854_v9, %v1657_v8  ;;  %v4985_v12 = vpop.f32.mrf.mxu1 }
 0x1a9   : > { %v1633_v1 = vpop.f32.mrf.mxu0 }
 0x1aa   : > { %v1658_v14 = vadd.f32 %v1633_v1, %v1392_v20  ;;  %v1857_v15 = vpop.f32.mrf.mxu1 }
 0x1ab   : > { %v4950_v17 = vpop.f32.mrf.mxu0 }
 0x1ac   : > { %v6240_v19 = vadd.f32 %v1857_v15, %v1658_v14  ;;  %v4986_v60 = vpop.f32.mrf.mxu1 }
 0x1ad   : > { %v1638_v7 = vpop.f32.mrf.mxu0 }
 0x1ae   : > { %v1862_v21 = vpop.f32.mrf.mxu1  ;;  %v1659_v9 = vadd.f32 %v1638_v7, %v6222_v26 }
 0x1af   : > { %v4953_v22 = vpop.f32.mrf.mxu0 }
 0x1b0   : > { %v4989_v23 = vpop.f32.mrf.mxu1  ;;  %v1883_v15 = vadd.f32 %v1862_v21, %v1659_v9 }
 0x1b1   : > { %v1641_v24 = vpop.f32.mrf.mxu0 }
 0x1b2   : > { %v1865_v3 = vpop.f32.mrf.mxu1  ;;  %v1660_v17 = vadd.f32 %v1641_v24, %v6224_v31 }
 0x1b3   : > { %v4954_v27 = vpop.f32.mrf.mxu0 }
 0x1b4   : > { %v4990_v13 = vpop.f32.mrf.mxu1 }
 0x1b5   : > { %v1646_v28 = vpop.f32.mrf.mxu0 }
 0x1b6   : > { %v1870_v29 = vpop.f32.mrf.mxu1 }
 0x1b7   : > { %v4957_v10 = vpop.f32.mrf.mxu0 }
 0x1b8   : > { %v4993_v30 = vpop.f32.mrf.mxu1 }
 0x1b9   : > { %v1649_v33 = vpop.f32.mrf.mxu0  ;;  %v1884_v30 = vadd.f32 %v1865_v3, %v1660_v17 }
 0x1ba   : > { %v6242_v34 = vpop.f32.mrf.mxu1 }
 0x1bb   : > { %v4958_v20 = vpop.f32.mrf.mxu0 }
 0x1bc   : > { %v4994_v18 = vpop.f32.mrf.mxu1  ;;  %v1661_v20 = vadd.f32 %v1646_v28, %v6226_v37 }
 0x1bd   : > { %v2061_v35 = vpop.f32.mrf.mxu0 }
 0x1be   : > { %v2327_v36 = vpop.f32.mrf.mxu1  ;;  %v2100_v22 = vadd.f32 %v2061_v35, %v6230_v50  ;;  %v1885_v24 = vadd.f32 %v1870_v29, %v1661_v20  ;;  %v1662_v50 = vadd.f32 %v1649_v33, %v6228_v43 }
 0x1bf   : > { %v5013_v38 = vpop.f32.mrf.mxu0 }
 0x1c0   : > { %v5049_v25 = vpop.f32.mrf.mxu1  ;;  %v2366_v38 = vadd.f32 %v2327_v36, %v2100_v22 }
 0x1c1   : > { %v2064_v40 = vpop.f32.mrf.mxu0 }
 0x1c2   : > { %v2330_v41 = vpop.f32.mrf.mxu1  ;;  %v2101_v26 = vadd.f32 %v2064_v40, %v6232_v56 }
 0x1c3   : > { %v5014_v42 = vpop.f32.mrf.mxu0 }
 0x1c4   : > { %v5050_v44 = vpop.f32.mrf.mxu1 }
 0x1c5   : > { %v2069_v32 = vpop.f32.mrf.mxu0 }
 0x1c6   : > { %v2335_v46 = vpop.f32.mrf.mxu1  ;;  %v2102_v3 = vadd.f32 %v2069_v32, %v6234_v63 }
 0x1c7   : > { %v5017_v48 = vpop.f32.mrf.mxu0 }
 0x1c8   : > { %v5053_v49 = vpop.f32.mrf.mxu1  ;;  %v2368_v29 = vadd.f32 %v2335_v46, %v2102_v3 }
 0x1c9   : > { %v2072_v51 = vpop.f32.mrf.mxu0  ;;  %v2367_v49 = vadd.f32 %v2330_v41, %v2101_v26 }
 0x1ca   : > { %v6244_v39 = vpop.f32.mrf.mxu1  ;;  %v2103_v43 = vadd.f32 %v2072_v51, %v6236_v5 }
 0x1cb   : > { %v5018_v53 = vpop.f32.mrf.mxu0 }
 0x1cc   : > { %v5054_v16 = vpop.f32.mrf.mxu1 }
 0x1cd   : > { %v6246_v55 = vpop.f32.mrf.mxu0  ;;  %v1886_v16 = vadd.f32 %v6242_v34, %v1662_v50 }
 0x1ce   : > { %v6248_v57 = vpop.f32.mrf.mxu1  ;;  %v2104_v34 = vadd.f32 %v6246_v55, %v6238_v54 }
 0x1cf   : > { %v5021_v45 = vpop.f32.mrf.mxu0 }
 0x1d0   : > { %v5057_v59 = vpop.f32.mrf.mxu1 }
 0x1d1   : > { %v6250_v61 = vpop.f32.mrf.mxu0 }
 0x1d2   : > { %v6252_v62 = vpop.f32.mrf.mxu1 }
 0x1d3   : > { %v5022_v0 = vpop.f32.mrf.mxu0 }
 0x1d4   : > { %v5058_v52 = vpop.f32.mrf.mxu1 }
 0x1d5   : > { %v2085_v2 = vpop.f32.mrf.mxu0 }
 0x1d6   : > { %v2351_v4 = vpop.f32.mrf.mxu1  ;;  %v2106_v27 = vadd.f32 %v2085_v2, %v1883_v15 }
 0x1d7   : > { %v5025_v47 = vpop.f32.mrf.mxu0 }
 0x1d8   : > { %v5061_v6 = vpop.f32.mrf.mxu1  ;;  %v2372_v25 = vadd.f32 %v2351_v4, %v2106_v27  ;;  %v2369_v47 = vadd.f32 %v6244_v39, %v2103_v43 }
 0x1d9   : > { %v2088_v58 = vpop.f32.mrf.mxu0 }
 0x1da   : > { %v2354_v8 = vpop.f32.mrf.mxu1  ;;  %v2107_v42 = vadd.f32 %v2088_v58, %v1884_v30 }
 0x1db   : > { %v5026_v11 = vpop.f32.mrf.mxu0 }
 0x1dc   : > { %v5062_v12 = vpop.f32.mrf.mxu1  ;;  %v2373_v28 = vadd.f32 %v2354_v8, %v2107_v42  ;;  %v2370_v11 = vadd.f32 %v6248_v57, %v2104_v34 }
 0x1dd   : > { %v2093_v1 = vpop.f32.mrf.mxu0  ;;  %v2105_v12 = vadd.f32 %v6250_v61, %v6240_v19 }
 0x1de   : > { %v2359_v14 = vpop.f32.mrf.mxu1  ;;  %v2108_v36 = vadd.f32 %v2093_v1, %v1885_v24 }
 0x1df   : > { %v5029_v60 = vpop.f32.mrf.mxu0  ;;  %v2371_v55 = vadd.f32 %v6252_v62, %v2105_v12 }
 0x1e0   : > { %v5065_v23 = vpop.f32.mrf.mxu1  ;;  %v2374_v41 = vadd.f32 %v2359_v14, %v2108_v36 }
 0x1e1   : > { %v2096_v13 = vpop.f32.mrf.mxu0 }
 0x1e2   : > { %v2362_v10 = vpop.f32.mrf.mxu1  ;;  %v2109_v0 = vadd.f32 %v2096_v13, %v1886_v16 }
 0x1e3   : > { %v5030_v18 = vpop.f32.mrf.mxu0 }
 0x1e4   : > { %v5066_v7 = vpop.f32.mrf.mxu1  ;;  %v2375_v46 = vadd.f32 %v2362_v10, %v2109_v0 }
 0x1e5   : > { %v2551_v21 = vpop.f32.mrf.mxu0 }
 0x1e6   : > { %v2590_v44 = vadd.f32 %v2551_v21, %v2366_v38  ;;  %v2575_v31 = vpop.f32.mrf.mxu1 }
 0x1e7   : > { %v5085_v35 = vpop.f32.mrf.mxu0  ;;  %v2596_v48 = vadd.f32 %v2575_v31, %v2372_v25 }
 0x1e8   : > { %2600 = vst [vmem:[#allocation2 + $0x30] sm:$0xff] %v2590_v44  ;;  %v5097_v37 = vpop.f32.mrf.mxu1 }
 0x1e9   : > { %2606 = vst [vmem:[#allocation2 + $0x8] sm:$0xff] %v2596_v48  ;;  %v2554_v56 = vpop.f32.mrf.mxu0 }
 0x1ea   : > { %v2591_v40 = vadd.f32 %v2554_v56, %v2367_v49  ;;  %v2578_v53 = vpop.f32.mrf.mxu1 }
 0x1eb   : > { %v5086_v45 = vpop.f32.mrf.mxu0  ;;  %v2597_v59 = vadd.f32 %v2578_v53, %v2373_v28 }
 0x1ec   : > { %2601 = vst [vmem:[#allocation2] sm:$0xff] %v2591_v40  ;;  %v5098_v33 = vpop.f32.mrf.mxu1 }
 0x1ed   : > { %2607 = vst [vmem:[#allocation2 + $0x20] sm:$0xff] %v2597_v59  ;;  %v2559_v63 = vpop.f32.mrf.mxu0 }
 0x1ee   : > { %v2592_v32 = vadd.f32 %v2559_v63, %v2368_v29  ;;  %v2583_v52 = vpop.f32.mrf.mxu1 }
 0x1ef   : > { %v5089_v2 = vpop.f32.mrf.mxu0  ;;  %v2598_v4 = vadd.f32 %v2583_v52, %v2374_v41 }
 0x1f0   : > { %2602 = vst [vmem:[#allocation2 + $0x18] sm:$0xff] %v2592_v32  ;;  %v5101_v6 = vpop.f32.mrf.mxu1 }
 0x1f1   : > { %2608 = vst [vmem:[#allocation2 + $0x40] sm:$0xff] %v2598_v4  ;;  %v2562_v5 = vpop.f32.mrf.mxu0 }
 0x1f2   : > { %v2593_v51 = vadd.f32 %v2562_v5, %v2369_v47  ;;  %v2586_v58 = vpop.f32.mrf.mxu1 }
 0x1f3   : > { %v5090_v8 = vpop.f32.mrf.mxu0  ;;  %v2599_v9 = vadd.f32 %v2586_v58, %v2375_v46 }
 0x1f4   : > { %2603 = vst [vmem:[#allocation2 + $0x10] sm:$0xff] %v2593_v51  ;;  %v5102_v1 = vpop.f32.mrf.mxu1 }
 0x1f5   : > { %2609 = vst [vmem:[#allocation2 + $0x38] sm:$0xff] %v2599_v9  ;;  %v2567_v39 = vpop.f32.mrf.mxu0 }
 0x1f6   : > { %v2594_v14 = vadd.f32 %v2567_v39, %v2370_v11 }
 0x1f7   : > { %v5093_v54 = vpop.f32.mrf.mxu0 }
 0x1f8   : > { %2604 = vst [vmem:[#allocation2 + $0x48] sm:$0xff] %v2594_v14  ;;  %2613 = sbr.rel (%p4555_p10) target bundleno = 1799 (0x707), region = 105 }
 0x1f9   : > { %v2570_v15 = vpop.f32.mrf.mxu0 }
 0x1fa   : > { %v2595_v17 = vadd.f32 %v2570_v15, %v2371_v55 }
 0x1fb   : > { %v5094_v60 = vpop.f32.mrf.mxu0 }
 0x1fc   : > { %2605 = vst [vmem:[#allocation2 + $0x28] sm:$0xff] %v2595_v17 }
 0x1fd   : > { %v2683_v19 = vld [vmem:[%s6698_s4 + $0x78] sm:$0xff]  ;;  %v2682_v57 = vld [vmem:[%s6698_s4 + $0x70] sm:$0xff]  ;;  %v2681_v61 = vld [vmem:[%s6698_s4 + $0x68] sm:$0xff]  ;;  %v5640_v14 = vmov 1983009808   ;;  %v2820_v55 = vlaneseq  ;;  %vm3446_vm7 = vcmask 64512  }
 0x1fe   : > { %5103 = vmatprep.subr.mxu0 %v2683_v19  ;;  %v2680_v62 = vld [vmem:[%s6698_s4 + $0x60] sm:$0xff]  ;;  %v2614_v22 = vld [vmem:[#allocation2 + $0x30] sm:$0xff]  ;;  %v2679_v27 = vld [vmem:[%s6698_s4 + $0x58] sm:$0xff]  ;;  %v2818_v54 = vunpack.c.l.s4 %v5640_v14  ;;  %vm3448_vm8 = vcmask 130048   ;;  %vm3450_vm9 = vcmask 195584   ;;  %vm3452_vm10 = vcmask 261120  }
 0x1ff   : > { %5104 = vmatpush3.msra.mxu0 %v2683_v19  ;;  %v6286_v23 = vld [vmem:[%s6696_s2] ss:$0 sm:$0xff]  ;;  %v2678_v30 = vld [vmem:[%s6698_s4 + $0x50] sm:$0xff]  ;;  %v2677_v18 = vld [vmem:[%s6698_s4 + $0x48] sm:$0xff]  ;;  %v2821_v17 = vshrl.u32 %v2820_v55, 7  ;;  %vm3454_vm11 = vcmask 326656  }
 0x200   : > { %5105 = vmatprep.subr.mxu0 %v2682_v57  ;;  %v2631_v13 = vmul.f32 %v6286_v23, %v2614_v22  ;;  %v6295_v10 = vld [vmem:[%s6697_s3] ss:$0 sm:$0xff]  ;;  %v2675_v7 = vld [vmem:[%s6698_s4 + $0x38] sm:$0xff]  ;;  %v2674_v25 = vld [vmem:[%s6698_s4 + $0x30] sm:$0xff]  ;;  %v2819_v15 = vunpack.c.0.s8 %v2818_v54  ;;  %v5641_v19 = vmov 1934713408  }
 0x201   : > { %5106 = vmatpush3.msra.mxu0 %v2682_v57  ;;  %v2676_v26 = vld [vmem:[%s6698_s4 + $0x40] sm:$0xff]  ;;  %v2673_v42 = vld [vmem:[%s6698_s4 + $0x28] sm:$0xff]  ;;  %v2616_v44 = vld [vmem:[#allocation2 + $0x18] sm:$0xff]  ;;  %v3030_v57 = vunpack.c.l.s4 %v5641_v19  ;;  %vm3456_vm12 = vcmask 392192   ;;  %vm3458_vm13 = vcmask 457728   ;;  %vm3460_vm14 = vcmask 523264  }
 0x202   : > { %5107 = vmatprep.subr.mxu0 %v2681_v61  ;;  %v2648_v20 = vadd.f32 %v6295_v10, %v2631_v13  ;;  %v2615_v21 = vld [vmem:[#allocation2] sm:$0xff]  ;;  %v2671_v50 = vld [vmem:[%s6698_s4 + $0x18] sm:$0xff]  ;;  %v2633_v35 = vmul.f32 %v6286_v23, %v2616_v44  ;;  %v2617_v48 = vld [vmem:[#allocation2 + $0x10] sm:$0xff]  ;;  %vm3462_vm15 = vcmask 588800   ;;  %vm3956_vm0 = vcmask 80896  }
 0x203   : > { %5108 = vmatpush3.msra.mxu0 %v2681_v61  ;;  %v2672_v31 = vld [vmem:[%s6698_s4 + $0x20] sm:$0xff]  ;;  %v2632_v24 = vmul.f32 %v6286_v23, %v2615_v21  ;;  %v2618_v49 = vld [vmem:[#allocation2 + $0x48] sm:$0xff]  ;;  %v2670_v3 = vld [vmem:[%s6698_s4 + $0x10] sm:$0xff]  ;;  %v2634_v28 = vmul.f32 %v6286_v23, %v2617_v48  ;;  %v6354_v61 = vsub.s32 %v2819_v15, %v2821_v17  ;;  %vm3915_vm1 = vcmask 654336  }
 0x204   : > { %5109 = vmatprep.subr.mxu0 %v2680_v62  ;;  %v2658_v38 = vmax.f32 %v2648_v20, 0.0  ;;  %v2669_v36 = vld [vmem:[%s6698_s4 + $0x8] sm:$0xff]  ;;  %v2650_v56 = vadd.f32 %v6295_v10, %v2633_v35  ;;  %v2635_v40 = vmul.f32 %v6286_v23, %v2618_v49  ;;  %v2668_v45 = vld [vmem:[%s6698_s4] sm:$0xff]  ;;  %v2623_v46 = vld [vmem:[#allocation2 + $0x38] sm:$0xff]  ;;  %vm3918_vm2 = vcmask 785408  }
 0x205   : > { %5110 = vmatpush3.msra.mxu0 %v2680_v62  ;;  %v2649_v37 = vadd.f32 %v6295_v10, %v2632_v24  ;;  %v2619_v53 = vld [vmem:[#allocation2 + $0x28] sm:$0xff]  ;;  %v2651_v29 = vadd.f32 %v6295_v10, %v2634_v28  ;;  %v2621_v63 = vld [vmem:[#allocation2 + $0x20] sm:$0xff]  ;;  %v2640_v58 = vmul.f32 %v6286_v23, %v2623_v46  ;;  %vm3921_vm3 = vcmask 916480  }
 0x206   : > { %5111 = vmatprep.subr.mxu0 %v2679_v27  ;;  %5135 = vmatprep.mubr.f32.mxu0 %v2658_v38  ;;  %v2620_v16 = vld [vmem:[#allocation2 + $0x8] sm:$0xff]  ;;  %v2636_v43 = vmul.f32 %v6286_v23, %v2619_v53  ;;  %v2660_v33 = vmax.f32 %v2650_v56, 0.0  ;;  %v2652_v41 = vadd.f32 %v6295_v10, %v2635_v40  ;;  %v2622_v32 = vld [vmem:[#allocation2 + $0x40] sm:$0xff]  ;;  %v2638_v4 = vmul.f32 %v6286_v23, %v2621_v63 }
 0x207   : > { %5112 = vmatpush3.msra.mxu0 %v2679_v27  ;;  %v2659_v59 = vmax.f32 %v2649_v37, 0.0  ;;  %v2637_v0 = vmul.f32 %v6286_v23, %v2620_v16  ;;  %v2661_v52 = vmax.f32 %v2651_v29, 0.0  ;;  %v2639_v6 = vmul.f32 %v6286_v23, %v2622_v32  ;;  %v6352_v60 = vld [vmem:[%s6699_s5] ss:$0 sm:$0xff] }
 0x208   : > { %5113 = vmatprep.subr.mxu0 %v2678_v30  ;;  %v2653_v2 = vadd.f32 %v6295_v10, %v2636_v43  ;;  %v2662_v47 = vmax.f32 %v2652_v41, 0.0  ;;  %v2655_v51 = vadd.f32 %v6295_v10, %v2638_v4  ;;  %v2657_v12 = vadd.f32 %v6295_v10, %v2640_v58 }
 0x209   : > { %5114 = vmatpush3.msra.mxu0 %v2678_v30  ;;  %v2654_v34 = vadd.f32 %v6295_v10, %v2637_v0  ;;  %v2656_v9 = vadd.f32 %v6295_v10, %v2639_v6  ;;  %v3031_v27 = vunpack.c.0.s8 %v3030_v57 }
 0x20a   : > { %5115 = vmatprep.subr.mxu0 %v2677_v18  ;;  %v2663_v5 = vmax.f32 %v2653_v2, 0.0  ;;  %v2665_v11 = vmax.f32 %v2655_v51, 0.0  ;;  %v2667_v39 = vmax.f32 %v2657_v12, 0.0 }
 0x20b   : > { %5116 = vmatpush3.msra.mxu0 %v2677_v18  ;;  %v2664_v8 = vmax.f32 %v2654_v34, 0.0  ;;  %v2666_v1 = vmax.f32 %v2656_v9, 0.0 }
 0x20c   : > { %5117 = vmatprep.subr.mxu0 %v2676_v26 }
 0x20d   : > { %5118 = vmatpush3.msra.mxu0 %v2676_v26 }
 0x20e   : > { %5119 = vmatprep.subr.mxu0 %v2675_v7 }
 0x20f   : > { %5120 = vmatpush3.msra.mxu0 %v2675_v7 }
 0x210   : > { %5121 = vmatprep.subr.mxu0 %v2674_v25 }
 0x211   : > { %5122 = vmatpush3.msra.mxu0 %v2674_v25  ;;  %v6361_v25 = vsub.s32 %v3031_v27, %v2821_v17 }
 0x212   : > { %5123 = vmatprep.subr.mxu0 %v2673_v42 }
 0x213   : > { %5124 = vmatpush3.msra.mxu0 %v2673_v42 }
 0x214   : > { %5125 = vmatprep.subr.mxu0 %v2672_v31 }
 0x215   : > { %5126 = vmatpush3.msra.mxu0 %v2672_v31 }
 0x216   : > { %5127 = vmatprep.subr.mxu0 %v2671_v50 }
 0x217   : > { %5128 = vmatpush3.msra.mxu0 %v2671_v50 }
 0x218   : > { %5129 = vmatprep.subr.mxu0 %v2670_v3 }
 0x219   : > { %5130 = vmatpush3.msra.mxu0 %v2670_v3 }
 0x21a   : > { %5131 = vmatprep.subr.mxu0 %v2669_v36 }
 0x21b   : > { %5132 = vmatpush3.msra.mxu0 %v2669_v36 }
 0x21c   : > { %5133 = vmatprep.subr.mxu0 %v2668_v45 }
 0x21d   : > { %5134 = vmatpush3.msra.mxu0 %v2668_v45 }
 0x21e   : > { %5136 = vmatmul.mubr.f32.vlgmr.msra.gmra.mxu0 %v2659_v59 }
 0x21f   : > { %5138 = vmatprep.mubr.f32.mxu0 %v2660_v33 }
 0x222   : > { %5139 = vmatmul.mubr.f32.gmra.mxu0 %v2661_v52 }
 0x223   : > { %5141 = vmatprep.mubr.f32.mxu0 %v2662_v47 }
 0x226   : > { %5142 = vmatmul.mubr.f32.gmra.mxu0 %v2663_v5 }
 0x227   : > { %5144 = vmatprep.mubr.f32.mxu0 %v2664_v8 }
 0x22a   : > { %5145 = vmatmul.mubr.f32.gmra.mxu0 %v2665_v11 }
 0x22b   : > { %5147 = vmatprep.mubr.f32.mxu0 %v2666_v1 }
 0x22e   : > { %5148 = vmatmul.mubr.f32.gmra.mxu0 %v2667_v39 }
 0x2de   : > { %v5137_v62 = vpop.f32.mrf.mxu0 }
 0x2df   : > { %v2763_v22 = vadd.f32 %v5137_v62, %v6352_v60 }
 0x2e0   : > { %v2757_v23 = vpop.f32.mrf.mxu0 }
 0x2e1   : > { %v2833_v13 = vcombine.high %v2763_v22, %v2763_v22  ;;  %v2840_v10 = vrot.slane %v2763_v22, %v6354_v61  ;;  %v2758_v30 = vadd.f32 %v6352_v60, %v2757_v23 }
 0x2e2   : > { %v5140_v20 = vpop.f32.mrf.mxu0 }
 0x2e3   : > { %v2847_v18 = vrot.slane %v2833_v13, %v6354_v61  ;;  %v2848_v38 = vcombine.high %v2840_v10, %v2840_v10  ;;  %v2816_v26 = vcombine.high %v2758_v30, %v2758_v30  ;;  %v2823_v7 = vrot.slane %v2758_v30, %v6354_v61 }
 0x2e4   : > { %v2773_v42 = vadd.f32 %v5140_v20, %v6352_v60  ;;  %v2767_v21 = vpop.f32.mrf.mxu0 }
 0x2e5   : > { %v2849_v44 = vcombine.high %v2847_v18, %v2847_v18  ;;  %v2830_v31 = vrot.slane %v2816_v26, %v6354_v61  ;;  %v2831_v24 = vcombine.high %v2823_v7, %v2823_v7  ;;  %v3028_v50 = vcombine.low %v2823_v7, %v2848_v38 }
 0x2e6   : > { %v2867_v35 = vcombine.high %v2773_v42, %v2773_v42  ;;  %v2768_v48 = vadd.f32 %v6352_v60, %v2767_v21  ;;  %v5143_v49 = vpop.f32.mrf.mxu0  ;;  %v2874_v37 = vrot.slane %v2773_v42, %v6354_v61 }
 0x2e7   : > { %v3064_v3 = vcombine.low %v2831_v24, %v2847_v18  ;;  %v2832_v28 = vcombine.high %v2830_v31, %v2830_v31  ;;  %v3100_v36 = vcombine.low %v2830_v31, %v2849_v44  ;;  %v6370_v45 = vrot.slane %v3028_v50, %v6361_v25 }
 0x2e8   : > { %v2881_v56 = vrot.slane %v2867_v35, %v6354_v61  ;;  %v2850_v40 = vcombine.high %v2768_v48, %v2768_v48  ;;  %v2857_v53 = vrot.slane %v2768_v48, %v6354_v61  ;;  %v2777_v16 = vpop.f32.mrf.mxu0  ;;  %v2783_v59 = vadd.f32 %v5143_v49, %v6352_v60 }
 0x2e9   : > { %v2778_v29 = vadd.f32 %v6352_v60, %v2777_v16  ;;  %v6378_v47 = vrot.slane %v3100_v36, %v6361_v25  ;;  %v2882_v34 = vcombine.high %v2874_v37, %v2874_v37  ;;  %v6381_v5 = vrot.slane %v3064_v3, %v6361_v25 }
 0x2ea   : > { %v2883_v43 = vcombine.high %v2881_v56, %v2881_v56  ;;  %v2864_v33 = vrot.slane %v2850_v40, %v6354_v61  ;;  %v2865_v41 = vcombine.high %v2857_v53, %v2857_v53  ;;  %v3136_v0 = vcombine.low %v2832_v28, %v2857_v53  ;;  %v5146_v63 = vpop.f32.mrf.mxu0 }
 0x2eb   : > { %v2901_v32 = vcombine.high %v2783_v59, %v2783_v59  ;;  %v2908_v52 = vrot.slane %v2783_v59, %v6354_v61  ;;  %v2884_v2 = vcombine.high %v2778_v29, %v2778_v29  ;;  %v2891_v4 = vrot.slane %v2778_v29, %v6354_v61 }
 0x2ec   : > { %v2866_v6 = vcombine.high %v2864_v33, %v2864_v33  ;;  %v2787_v46 = vpop.f32.mrf.mxu0  ;;  %v3037_v51 = vcombine.low %v2864_v33, %v2883_v43  ;;  %v6386_v11 = vrot.slane %v3136_v0, %v6361_v25  ;;  %v6388_v12 = vcombine.low %v2840_v10, %v2865_v41 }
 0x2ed   : > { %v2915_v58 = vrot.slane %v2901_v32, %v6354_v61  ;;  %v2898_v8 = vrot.slane %v2884_v2, %v6354_v61  ;;  %v2899_v9 = vcombine.high %v2891_v4, %v2891_v4  ;;  %v2793_v39 = vadd.f32 %v5146_v63, %v6352_v60 }
 0x2ee   : > { %v3073_v1 = vcombine.low %v2866_v6, %v2891_v4  ;;  %v5149_v14 = vpop.f32.mrf.mxu0  ;;  %v2916_v54 = vcombine.high %v2908_v52, %v2908_v52  ;;  %v2788_v22 = vadd.f32 %v6352_v60, %v2787_v46  ;;  %v6394_v27 = vrot.slane %v3037_v51, %v6361_v25 }
 0x2ef   : > { %v3109_v55 = vcombine.low %v2874_v37, %v2899_v9  ;;  %v3145_v15 = vcombine.low %v2882_v34, %v2898_v8  ;;  %v2917_v17 = vcombine.high %v2915_v58, %v2915_v58  ;;  %v2900_v19 = vcombine.high %v2898_v8, %v2898_v8 }
 0x2f0   : > { %v2935_v57 = vcombine.high %v2793_v39, %v2793_v39  ;;  %v2942_v62 = vrot.slane %v2793_v39, %v6354_v61  ;;  %v2797_v23 = vpop.f32.mrf.mxu0  ;;  %v3080_v13 = vrot.slane %v3073_v1, %v6361_v25  ;;  %v2803_v30 = vadd.f32 %v5149_v14, %v6352_v60 }
 0x2f1   : > { %v3116_v10 = vrot.slane %v3109_v55, %v6361_v25  ;;  %v6400_v20 = vrot.slane %v3145_v15, %v6361_v25  ;;  %v2918_v26 = vcombine.high %v2788_v22, %v2788_v22  ;;  %v2925_v7 = vrot.slane %v2788_v22, %v6354_v61 }
 0x2f2   : > { %v2949_v18 = vrot.slane %v2935_v57, %v6354_v61  ;;  %v3154_v38 = vcombine.low %v2917_v17, %v2942_v62  ;;  %v2969_v42 = vcombine.high %v2803_v30, %v2803_v30  ;;  %v2976_v21 = vrot.slane %v2803_v30, %v6354_v61 }
 0x2f3   : > { %v2798_v44 = vadd.f32 %v6352_v60, %v2797_v23  ;;  %v6406_v31 = vcombine.low %v2881_v56, %v2900_v19  ;;  %v2950_v24 = vcombine.high %v2942_v62, %v2942_v62  ;;  %v2932_v50 = vrot.slane %v2918_v26, %v6354_v61 }
 0x2f4   : > { %v2951_v35 = vcombine.high %v2949_v18, %v2949_v18  ;;  %v6410_v48 = vrot.slane %v3154_v38, %v6361_v25  ;;  %v2933_v49 = vcombine.high %v2925_v7, %v2925_v7  ;;  %v2983_v3 = vrot.slane %v2969_v42, %v6354_v61 }
 0x2f5   : > { %v2984_v37 = vcombine.high %v2976_v21, %v2976_v21  ;;  %v2934_v28 = vcombine.high %v2932_v50, %v2932_v50  ;;  %v3082_v36 = vcombine.low %v2916_v54, %v2932_v50  ;;  %v2952_v53 = vcombine.high %v2798_v44, %v2798_v44 }
 0x2f6   : > { %v3091_v40 = vcombine.low %v2951_v35, %v2976_v21  ;;  %v3046_v16 = vcombine.low %v2908_v52, %v2933_v49  ;;  %v2985_v59 = vcombine.high %v2983_v3, %v2983_v3  ;;  %v2959_v60 = vrot.slane %v2798_v44, %v6354_v61 }
 0x2f7   : > { %v4561_v56 = vcombine.high %v6381_v5, %v3080_v13  ;;  %v3118_v29 = vcombine.low %v2915_v58, %v2934_v28  ;;  %v2966_v33 = vrot.slane %v2952_v53, %v6354_v61  ;;  %v3089_v41 = vrot.slane %v3082_v36, %v6361_v25 }
 0x2f8   : > { %v3098_v43 = vrot.slane %v3091_v40, %v6361_v25  ;;  %v6419_v0 = vrot.slane %v3046_v16, %v6361_v25  ;;  %v3190_v63 = vcombine.low %v2925_v7, %v2950_v24  ;;  %v2967_v32 = vcombine.high %v2959_v60, %v2959_v60 }
 0x2f9   : > { %v3127_v2 = vcombine.low %v2959_v60, %v2984_v37  ;;  %v2968_v4 = vcombine.high %v2966_v33, %v2966_v33  ;;  %v3199_v52 = vcombine.low %v2966_v33, %v2985_v59  ;;  %v3258_v6 = vcombine.low %v6381_v5, %v3080_v13 }
 0x2fa   : > { %v4562_v34 = vcombine.high %v3089_v41, %v3098_v43  ;;  %v3163_v51 = vcombine.low %v2967_v32, %v2983_v3  ;;  %v3259_v58 = vcombine.low %v3089_v41, %v3098_v43  ;;  %v3125_v8 = vrot.slane %v3118_v29, %v6361_v25 }
 0x2fb   : > { %v3134_v46 = vrot.slane %v3127_v2, %v6361_v25  ;;  %v3055_v9 = vcombine.low %v2949_v18, %v2968_v4  ;;  %v3290_v1 = vrot.slane %v4561_v56, %v6354_v61  ;;  %v3266_v14 = vrot.slane %v3258_v6, %v6354_v61 }
 0x2fc   : > { %v3297_v39 = vrot.slane %v4562_v34, %v6354_v61  ;;  %v3170_v54 = vrot.slane %v3163_v51, %v6361_v25  ;;  %v3273_v55 = vrot.slane %v3259_v58, %v6354_v61  ;;  %v4563_v15 = vcombine.high %v6378_v47, %v3116_v10 }
 0x2fd   : > { %v4564_v5 = vcombine.high %v3125_v8, %v3134_v46  ;;  %v3306_v19 = vcombine.low %v6378_v47, %v3116_v10  ;;  %v3307_v57 = vcombine.low %v3125_v8, %v3134_v46  ;;  %v3062_v62 = vrot.slane %v3055_v9, %v6361_v25 }
 0x2fe   : > { %v3298_v17 = vcombine.low %v3290_v1, %v3297_v39  ;;  %v3206_v22 = vrot.slane %v3199_v52, %v6361_v25  ;;  %v3274_v23 = vcombine.low %v3266_v14, %v3273_v55  ;;  %v3338_v13 = vrot.slane %v4563_v15, %v6354_v61  ;;  %v3026_v55 = vld [vmem:[%s6733_s23] sm:$0xff] }
 0x2ff   : > { %v3345_v30 = vrot.slane %v4564_v5, %v6354_v61  ;;  %v3314_v18 = vrot.slane %v3306_v19, %v6354_v61  ;;  %v3321_v38 = vrot.slane %v3307_v57, %v6354_v61  ;;  %v4560_v26 = vcombine.high %v6419_v0, %v3062_v62 }
 0x300   : > { %3299 = vrot.lane.b32.xlu1 %v3298_v17, %s5642_s21  ;;  %v3354_v47 = vcombine.low %v6386_v11, %v6400_v20  ;;  %v3197_v10 = vrot.slane %v3190_v63, %v6361_v25  ;;  %3275 = vrot.lane.b32.xlu0 %v3274_v23, %s5643_s12  ;;  %v4559_v7 = vcombine.high %v6370_v45, %v6394_v27 }
 0x301   : > { %v3355_v42 = vcombine.low %v6410_v48, %v3170_v54  ;;  %v3179_v21 = vrot.slane %v6388_v12, %v6361_v25  ;;  %v3346_v44 = vcombine.low %v3338_v13, %v3345_v30  ;;  %v3322_v24 = vcombine.low %v3314_v18, %v3321_v38 }
 0x302   : > { %v3249_v50 = vrot.slane %v4560_v26, %v6354_v61  ;;  %v4566_v49 = vcombine.high %v6410_v48, %v3170_v54  ;;  %v3188_v3 = vrot.slane %v6406_v31, %v6361_v25  ;;  %v3403_v37 = vcombine.low %v3197_v10, %v3206_v22  ;;  %v3027_v31 = vld [vmem:[%s6733_s23 + $0x8] sm:$0xff] }
 0x303   : > { %v3369_v35 = vrot.slane %v3355_v42, %v6354_v61  ;;  %v3362_v28 = vrot.slane %v3354_v47, %v6354_v61  ;;  %v3212_v12 = vcombine.low %v6370_v45, %v6394_v27  ;;  %v3242_v36 = vrot.slane %v4559_v7, %v6354_v61  ;;  %5150 = vmatprep.subr.msk.mxu0 %vm3446_vm7, %v3027_v31 }
 0x304   : > { %3323 = vrot.lane.b32.xlu1 %v3322_v24, %s5644_s13  ;;  %3347 = vrot.lane.b32.xlu0 %v3346_v44, %s5645_s15  ;;  %v4565_v40 = vcombine.high %v6386_v11, %v6400_v20  ;;  %v3402_v48 = vcombine.low %v3179_v21, %v3188_v3  ;;  %v3417_v16 = vrot.slane %v3403_v37, %v6354_v61 }
 0x305   : > { %v3370_v53 = vcombine.low %v3362_v28, %v3369_v35  ;;  %v3213_v59 = vcombine.low %v6419_v0, %v3062_v62  ;;  %v3250_v60 = vcombine.low %v3242_v36, %v3249_v50  ;;  %v3393_v45 = vrot.slane %v4566_v49, %v6354_v61  ;;  %5151 = vmatpush3.xpose.msk.msra.mxu0 %vm3446_vm7, %v3027_v31 }
 0x306   : > { %v4568_v27 = vcombine.high %v3197_v10, %v3206_v22  ;;  %v3410_v11 = vrot.slane %v3402_v48, %v6354_v61  ;;  %v3220_v20 = vrot.slane %v3212_v12, %v6354_v61  ;;  %v3386_v29 = vrot.slane %v4565_v40, %v6354_v61  ;;  %5213 = vmatprep.subr.msk.mxu1 %vm3446_vm7, %v3027_v31 }
 0x307   : > { %v3227_v56 = vrot.slane %v3213_v59, %v6354_v61  ;;  %v4567_v43 = vcombine.high %v3179_v21, %v3188_v3  ;;  %5215 = vmatpush3.xpose.msk.msra.mxu1 %vm3446_vm7, %v3027_v31  ;;  %5152 = vmatprep.subr.msk.mxu0 %vm3446_vm7, %v3026_v55 }
 0x308   : > { %3371 = vrot.lane.b32.xlu1 %v3370_v53, %s5646_s24  ;;  %3251 = vrot.lane.b32.xlu0 %v3250_v60, %s5647_s26  ;;  %v3418_v33 = vcombine.low %v3410_v11, %v3417_v16  ;;  %v3394_v0 = vcombine.low %v3386_v29, %v3393_v45  ;;  %v3441_v63 = vrot.slane %v4568_v27, %v6354_v61 }
 0x309   : > { %v3228_v41 = vcombine.low %v3220_v20, %v3227_v56  ;;  %v3434_v32 = vrot.slane %v4567_v43, %v6354_v61  ;;  %5214 = vmatprep.subr.msk.mxu1 %vm3446_vm7, %v3026_v55  ;;  %5153 = vmatpush3.xpose.msk.msra.mxu0 %vm3446_vm7, %v3026_v55  ;;  %v5651_v43 = vmov 0.0  }
 0x30b   : > { %v3442_v2 = vcombine.low %v3434_v32, %v3441_v63  ;;  %5216 = vmatpush3.xpose.msk.msra.mxu1 %vm3446_vm7, %v3026_v55 }
 0x30c   : > { %3419 = vrot.lane.b32.xlu1 %v3418_v33, %s5648_s18  ;;  %3395 = vrot.lane.b32.xlu0 %v3394_v0, %s5649_s6 }
 0x310   : > { %3443 = vrot.lane.b32.xlu0 %v3442_v2, %s5650_s11 }
 0x372   : > { %v3300_v4 = vpop.permute.xlu1 %3299  ;;  %v3276_v52 = vpop.permute.xlu0 %3275 }
 0x376   : > { %v3324_v34 = vpop.permute.xlu1 %3323  ;;  %v3348_v6 = vpop.permute.xlu0 %3347 }
 0x37a   : > { %v3252_v46 = vpop.permute.xlu0 %3251  ;;  %v3372_v58 = vpop.permute.xlu1 %3371 }
 0x37b   : > { %v3447_v51 = vsel %vm3446_vm7, %v3228_v41, %v3252_v46 }
 0x37c   : > { %v3449_v8 = vsel %vm3448_vm8, %v3447_v51, %v3276_v52 }
 0x37d   : > { %v3451_v9 = vsel %vm3450_vm9, %v3449_v8, %v3300_v4 }
 0x37e   : > { %v3453_v1 = vsel %vm3452_vm10, %v3451_v9, %v3324_v34  ;;  %v3396_v39 = vpop.permute.xlu0 %3395  ;;  %v3420_v5 = vpop.permute.xlu1 %3419 }
 0x37f   : > { %v3455_v14 = vsel %vm3454_vm11, %v3453_v1, %v3348_v6 }
 0x380   : > { %v3457_v54 = vsel %vm3456_vm12, %v3455_v14, %v3372_v58 }
 0x381   : > { %v3459_v15 = vsel %vm3458_vm13, %v3457_v54, %v3396_v39 }
 0x382   : > { %v3461_v17 = vsel %vm3460_vm14, %v3459_v15, %v3420_v5  ;;  %v3444_v19 = vpop.permute.xlu0 %3443 }
 0x383   : > { %v3463_v57 = vsel %vm3462_vm15, %v3461_v17, %v3444_v19 }
 0x384   : > { %3464 = vxpose.xlu1.b32.start.end [1/1] (short) (narrow) %v3463_v57, 80 }
 0x400   : > { %v3480_v62 = vpop.trf.xlu1 }
 0x401   : > { %5154 = vmatprep.mubr.msk.f32.mxu0 %vm3446_vm7, %v3480_v62 }
 0x404   : > { %v3481_v22 = vpop.trf.xlu1 }
 0x405   : > { %5155 = vmatmul.mubr.msk.f32.vlgmr.msra.gmra.mxu0 %vm3446_vm7, %v3481_v22 }
 0x408   : > { %v3482_v23 = vpop.trf.xlu1 }
 0x409   : > { %5157 = vmatprep.mubr.msk.f32.mxu1 %vm3446_vm7, %v3482_v23 }
 0x40c   : > { %v3483_v13 = vpop.trf.xlu1 }
 0x40d   : > { %5158 = vmatmul.mubr.msk.f32.vlgmr.msra.gmra.mxu1 %vm3446_vm7, %v3483_v13 }
 0x410   : > { %v3484_v30 = vpop.trf.xlu1 }
 0x411   : > { %5160 = vmatprep.mubr.msk.f32.mxu1 %vm3446_vm7, %v3484_v30 }
 0x414   : > { %v3485_v18 = vpop.trf.xlu1 }
 0x415   : > { %5161 = vmatmul.mubr.msk.f32.gmra.mxu1 %vm3446_vm7, %v3485_v18 }
 0x418   : > { %v3486_v38 = vpop.trf.xlu1 }
 0x419   : > { %5163 = vmatprep.mubr.msk.f32.mxu1 %vm3446_vm7, %v3486_v38 }
 0x41c   : > { %v3487_v26 = vpop.trf.xlu1 }
 0x41d   : > { %5164 = vmatmul.mubr.msk.f32.gmra.mxu1 %vm3446_vm7, %v3487_v26 }
 0x420   : > { %v3488_v47 = vpop.trf.xlu1 }
 0x421   : > { %5166 = vmatprep.mubr.msk.f32.mxu1 %vm3446_vm7, %v3488_v47 }
 0x424   : > { %v3489_v10 = vpop.trf.xlu1 }
 0x425   : > { %5167 = vmatmul.mubr.msk.f32.gmra.mxu1 %vm3446_vm7, %v3489_v10 }
 0x4c5   : > { %v5156_v42 = vpop.f32.mrf.mxu0 }
 0x4c7   : > { %v3598_v24 = vpop.f32.mrf.mxu0 }
 0x4cd   : > { %v5159_v7 = vpop.f32.mrf.mxu1 }
 0x4ce   : > { %v3665_v49 = vcombine.low %v5156_v42, %v5159_v7  ;;  %v3666_v0 = vcombine.high %v5156_v42, %v5159_v7 }
 0x4cf   : > { %v3608_v21 = vpop.f32.mrf.mxu1 }
 0x4d0   : > { %v3649_v50 = vcombine.low %v3598_v24, %v3608_v21  ;;  %v3673_v36 = vrot.slane %v3665_v49, %v6354_v61  ;;  %v3650_v45 = vcombine.high %v3598_v24, %v3608_v21  ;;  %v3680_v8 = vrot.slane %v3666_v0, %v6354_v61  ;;  %v3648_v21 = vld [vmem:[%s6734_s16 + $0x8] sm:$0xff] }
 0x4d1   : > { %5169 = vmatprep.subr.msk.mxu1 %vm3956_vm0, %v3648_v21 }
 0x4d2   : > { %v3657_v37 = vrot.slane %v3649_v50, %v6354_v61  ;;  %v3664_v34 = vrot.slane %v3650_v45, %v6354_v61  ;;  %5170 = vmatpush3.xpose.msk.msra.mxu1 %vm3956_vm0, %v3648_v21 }
 0x4d4   : > { %v3713_v48 = vcombine.low %v3657_v37, %v3673_v36  ;;  %v3714_v27 = vcombine.high %v3657_v37, %v3673_v36  ;;  %v3729_v14 = vcombine.low %v3664_v34, %v3680_v8  ;;  %v3730_v62 = vcombine.high %v3664_v34, %v3680_v8 }
 0x4d5   : > { %v5162_v44 = vpop.f32.mrf.mxu1 }
 0x4d6   : > { %v6504_v56 = vrot.slane %v3713_v48, %v6361_v25  ;;  %v3728_v46 = vrot.slane %v3714_v27, %v6361_v25  ;;  %v3737_v17 = vrot.slane %v3729_v14, %v6361_v25  ;;  %v3744_v18 = vrot.slane %v3730_v62, %v6361_v25 }
 0x4d7   : > { %v3618_v35 = vpop.f32.mrf.mxu1 }
 0x4dd   : > { %v5165_v3 = vpop.f32.mrf.mxu1 }
 0x4de   : > { %v3697_v28 = vcombine.low %v5162_v44, %v5165_v3  ;;  %v3698_v20 = vcombine.high %v5162_v44, %v5165_v3 }
 0x4df   : > { %v3628_v12 = vpop.f32.mrf.mxu1 }
 0x4e0   : > { %v3681_v40 = vcombine.low %v3618_v35, %v3628_v12  ;;  %v3705_v31 = vrot.slane %v3697_v28, %v6354_v61  ;;  %v3682_v16 = vcombine.high %v3618_v35, %v3628_v12  ;;  %v3712_v6 = vrot.slane %v3698_v20, %v6354_v61 }
 0x4e2   : > { %v3689_v53 = vrot.slane %v3681_v40, %v6354_v61  ;;  %v3696_v63 = vrot.slane %v3682_v16, %v6354_v61 }
 0x4e4   : > { %v3745_v59 = vcombine.low %v3689_v53, %v3705_v31  ;;  %v3746_v60 = vcombine.high %v3689_v53, %v3705_v31  ;;  %v3761_v9 = vcombine.low %v3696_v63, %v3712_v6  ;;  %v3762_v19 = vcombine.high %v3696_v63, %v3712_v6 }
 0x4e5   : > { %v5168_v11 = vpop.f32.mrf.mxu1 }
 0x4e6   : > { %v6507_v29 = vrot.slane %v3745_v59, %v6361_v25  ;;  %v3800_v33 = vcombine.high %v5168_v11, %v5651_v43  ;;  %v3760_v2 = vrot.slane %v3746_v60, %v6361_v25  ;;  %v3769_v15 = vrot.slane %v3761_v9, %v6361_v25 }
 0x4e7   : > { %v3638_v41 = vpop.f32.mrf.mxu1  ;;  %v3807_v22 = vrot.slane %v5168_v11, %v6354_v61  ;;  %v3776_v30 = vrot.slane %v3762_v19, %v6361_v25 }
 0x4e8   : > { %v3778_v32 = vcombine.high %v6504_v56, %v6507_v29  ;;  %v3814_v4 = vrot.slane %v3800_v33, %v6354_v61  ;;  %v3785_v52 = vcombine.high %v3638_v41, %v5651_v43  ;;  %v3777_v51 = vcombine.low %v6504_v56, %v6507_v29 }
 0x4e9   : > { %v3779_v1 = vcombine.low %v3728_v46, %v3760_v2  ;;  %v3780_v55 = vcombine.high %v3728_v46, %v3760_v2  ;;  %v3781_v57 = vcombine.low %v3737_v17, %v3769_v15  ;;  %v3792_v23 = vrot.slane %v3638_v41, %v6354_v61 }
 0x4ea   : > { %3853 = vrot.lane.b32.xlu0 %v3778_v32, %s5643_s12  ;;  %v3799_v58 = vrot.slane %v3785_v52, %v6354_v61  ;;  %v3782_v13 = vcombine.high %v3737_v17, %v3769_v15  ;;  %v3783_v47 = vcombine.low %v3744_v18, %v3776_v30  ;;  %v3784_v24 = vcombine.high %v3744_v18, %v3776_v30 }
 0x4eb   : > { %v3815_v38 = vcombine.low %v3792_v23, %v3807_v22  ;;  %v3816_v26 = vcombine.high %v3792_v23, %v3807_v22 }
 0x4ec   : > { %v3831_v39 = vcombine.low %v3799_v58, %v3814_v4  ;;  %v3832_v44 = vcombine.high %v3799_v58, %v3814_v4 }
 0x4ed   : > { %v3823_v10 = vrot.slane %v3815_v38, %v6361_v25  ;;  %v3830_v7 = vrot.slane %v3816_v26, %v6361_v25 }
 0x4ee   : > { %3861 = vrot.lane.b32.xlu0 %v3779_v1, %s5644_s13  ;;  %v3839_v54 = vrot.slane %v3831_v39, %v6361_v25  ;;  %v3846_v50 = vrot.slane %v3832_v44, %v6361_v25 }
 0x4ef   : > { %v3847_v42 = vcombine.high %v3823_v10, %v5651_v43  ;;  %v3848_v61 = vcombine.high %v3830_v7, %v5651_v43 }
 0x4f0   : > { %v3849_v5 = vcombine.high %v3839_v54, %v5651_v43  ;;  %v3850_v35 = vcombine.high %v3846_v50, %v5651_v43  ;;  %v3647_v43 = vld [vmem:[%s6735_s25] sm:$0xff] }
 0x4f1   : > { %5171 = vmatprep.subr.msk.mxu1 %vm3956_vm0, %v3647_v43 }
 0x4f2   : > { %3869 = vrot.lane.b32.xlu0 %v3780_v55, %s5646_s24  ;;  %3887 = vrot.lane.b32.xlu1 %v3849_v5, %s5652_s7 }
 0x4f3   : > { %5172 = vmatpush3.xpose.msk.msra.mxu1 %vm3956_vm0, %v3647_v43 }
 0x4f6   : > { %3877 = vrot.lane.b32.xlu0 %v3781_v57, %s5648_s18 }
 0x4fa   : > { %3885 = vrot.lane.b32.xlu0 %v3782_v13, %s5652_s7 }
 0x4fe   : > { %3893 = vrot.lane.b32.xlu0 %v3783_v47, %s5653_s14 }
 0x502   : > { %3863 = vrot.lane.b32.xlu0 %v3830_v7, %s5644_s13  ;;  %s5654_s13 = smov 112  }
 0x506   : > { %3855 = vrot.lane.b32.xlu0 %v3847_v42, %s5643_s12 }
 0x50a   : > { %3871 = vrot.lane.b32.xlu0 %v3848_v61, %s5646_s24 }
 0x50e   : > { %3879 = vrot.lane.b32.xlu0 %v3839_v54, %s5648_s18 }
 0x512   : > { %3901 = vrot.lane.b32.xlu0 %v3784_v24, %s5654_s13 }
 0x516   : > { %3895 = vrot.lane.b32.xlu0 %v3846_v50, %s5653_s14 }
 0x51a   : > { %3903 = vrot.lane.b32.xlu0 %v3850_v35, %s5654_s13 }
 0x55c   : > { %v3854_v49 = vpop.permute.xlu0 %3853 }
 0x55d   : > { %v3907_v53 = vsel %vm3448_vm8, %v3777_v51, %v3854_v49 }
 0x560   : > { %v3862_v3 = vpop.permute.xlu0 %3861 }
 0x561   : > { %v3909_v16 = vsel %vm3452_vm10, %v3907_v53, %v3862_v3 }
 0x564   : > { %v3870_v37 = vpop.permute.xlu0 %3869  ;;  %v3888_v63 = vpop.permute.xlu1 %3887 }
 0x565   : > { %v3911_v25 = vsel %vm3456_vm12, %v3909_v16, %v3870_v37 }
 0x568   : > { %v3878_v28 = vpop.permute.xlu0 %3877 }
 0x569   : > { %v3913_v60 = vsel %vm3460_vm14, %v3911_v25, %v3878_v28 }
 0x56c   : > { %v3886_v12 = vpop.permute.xlu0 %3885 }
 0x56d   : > { %v3916_v45 = vsel %vm3915_vm1, %v3913_v60, %v3886_v12 }
 0x570   : > { %v3894_v36 = vpop.permute.xlu0 %3893 }
 0x571   : > { %v3919_v11 = vsel %vm3918_vm2, %v3916_v45, %v3894_v36 }
 0x574   : > { %v3864_v40 = vpop.permute.xlu0 %3863 }
 0x578   : > { %v3856_v48 = vpop.permute.xlu0 %3855 }
 0x579   : > { %v3908_v27 = vsel %vm3448_vm8, %v3823_v10, %v3856_v48 }
 0x57a   : > { %v3910_v29 = vsel %vm3452_vm10, %v3908_v27, %v3864_v40 }
 0x57c   : > { %v3872_v31 = vpop.permute.xlu0 %3871 }
 0x57d   : > { %v3912_v33 = vsel %vm3456_vm12, %v3910_v29, %v3872_v31 }
 0x580   : > { %v3880_v59 = vpop.permute.xlu0 %3879 }
 0x581   : > { %v3914_v41 = vsel %vm3460_vm14, %v3912_v33, %v3880_v59 }
 0x582   : > { %v3917_v32 = vsel %vm3915_vm1, %v3914_v41, %v3888_v63 }
 0x584   : > { %v3902_v20 = vpop.permute.xlu0 %3901 }
 0x585   : > { %v3922_v56 = vsel %vm3921_vm3, %v3919_v11, %v3902_v20 }
 0x586   : > { %3924 = vxpose.xlu0.b32.start [1/2] (short) %v3922_v56, 128 }
 0x588   : > { %v3896_v0 = vpop.permute.xlu0 %3895 }
 0x589   : > { %v3920_v2 = vsel %vm3918_vm2, %v3917_v32, %v3896_v0 }
 0x58c   : > { %v3904_v4 = vpop.permute.xlu0 %3903 }
 0x58d   : > { %v3923_v52 = vsel %vm3921_vm3, %v3920_v2, %v3904_v4 }
 0x58e   : > { %3925 = vxpose.xlu0.b32.end [2/2] (short) %v3923_v52, 128 }
 0x606   : > { %v3940_v34 = vpop.trf.xlu0 }
 0x607   : > { %5173 = vmatprep.mubr.msk.f32.mxu1 %vm3956_vm0, %v3940_v34 }
 0x60a   : > { %v3941_v6 = vpop.trf.xlu0 }
 0x60b   : > { %5174 = vmatmul.mubr.msk.f32.vlgmr.msra.gmra.mxu1 %vm3956_vm0, %v3941_v6 }
 0x60e   : > { %v3942_v46 = vpop.trf.xlu0 }
 0x60f   : > { %5176 = vmatprep.mubr.msk.f32.mxu1 %vm3956_vm0, %v3942_v46 }
 0x612   : > { %v3943_v51 = vpop.trf.xlu0 }
 0x613   : > { %5177 = vmatmul.mubr.msk.f32.gmra.mxu1 %vm3956_vm0, %v3943_v51 }
 0x616   : > { %v3944_v58 = vpop.trf.xlu0 }
 0x617   : > { %5179 = vmatprep.mubr.msk.f32.mxu1 %vm3956_vm0, %v3944_v58 }
 0x61a   : > { %v3945_v8 = vpop.trf.xlu0 }
 0x61b   : > { %5180 = vmatmul.mubr.msk.f32.gmra.mxu1 %vm3956_vm0, %v3945_v8 }
 0x61e   : > { %v3946_v9 = vpop.trf.xlu0 }
 0x61f   : > { %5182 = vmatprep.mubr.msk.f32.mxu1 %vm3956_vm0, %v3946_v9 }
 0x622   : > { %v3947_v1 = vpop.trf.xlu0 }
 0x623   : > { %5183 = vmatmul.mubr.msk.f32.gmra.mxu1 %vm3956_vm0, %v3947_v1 }
 0x626   : > { %v3948_v39 = vpop.trf.xlu0 }
 0x627   : > { %5185 = vmatprep.mubr.msk.f32.mxu1 %vm3956_vm0, %v3948_v39 }
 0x62a   : > { %v3949_v14 = vpop.trf.xlu0 }
 0x62b   : > { %5186 = vmatmul.mubr.msk.f32.gmra.mxu1 %vm3956_vm0, %v3949_v14 }
 0x62e   : > { %v3950_v54 = vpop.trf.xlu0 }
 0x62f   : > { %5188 = vmatprep.mubr.msk.f32.mxu1 %vm3956_vm0, %v3950_v54 }
 0x632   : > { %v3951_v55 = vpop.trf.xlu0 }
 0x633   : > { %5189 = vmatmul.mubr.msk.f32.gmra.mxu1 %vm3956_vm0, %v3951_v55 }
 0x636   : > { %v3952_v15 = vpop.trf.xlu0 }
 0x637   : > { %5191 = vmatprep.mubr.msk.f32.mxu1 %vm3956_vm0, %v3952_v15 }
 0x63a   : > { %v3953_v5 = vpop.trf.xlu0 }
 0x63b   : > { %5192 = vmatmul.mubr.msk.f32.gmra.mxu1 %vm3956_vm0, %v3953_v5 }
 0x63e   : > { %v3954_v17 = vpop.trf.xlu0 }
 0x63f   : > { %5194 = vmatprep.mubr.msk.f32.mxu1 %vm3956_vm0, %v3954_v17 }
 0x642   : > { %v3955_v19 = vpop.trf.xlu0 }
 0x643   : > { %5195 = vmatmul.mubr.msk.f32.gmra.mxu1 %vm3956_vm0, %v3955_v19 }
 0x6cb   : > { %v5175_v57 = vpop.f32.mrf.mxu1 }
 0x6cc   : > { %4157 = vst.msk [vmem:[%s5875_s22 + $0x8] sm:$0xff] %vm3448_vm8, %v5175_v57 }
 0x6cd   : > { %v4077_v62 = vpop.f32.mrf.mxu1 }
 0x6ce   : > { %4156 = vst.msk [vmem:[%s5875_s22] sm:$0xff] %vm3448_vm8, %v4077_v62 }
 0x6d3   : > { %v5178_v22 = vpop.f32.mrf.mxu1 }
 0x6d4   : > { %4159 = vst.msk [vmem:[%s5875_s22 + $0x18] sm:$0xff] %vm3448_vm8, %v5178_v22 }
 0x6d5   : > { %v4087_v23 = vpop.f32.mrf.mxu1 }
 0x6d6   : > { %4158 = vst.msk [vmem:[%s5875_s22 + $0x10] sm:$0xff] %vm3448_vm8, %v4087_v23 }
 0x6db   : > { %v5181_v13 = vpop.f32.mrf.mxu1 }
 0x6dc   : > { %4161 = vst.msk [vmem:[%s5875_s22 + $0x28] sm:$0xff] %vm3448_vm8, %v5181_v13 }
 0x6dd   : > { %v4097_v30 = vpop.f32.mrf.mxu1 }
 0x6de   : > { %4160 = vst.msk [vmem:[%s5875_s22 + $0x20] sm:$0xff] %vm3448_vm8, %v4097_v30 }
 0x6e3   : > { %v5184_v18 = vpop.f32.mrf.mxu1 }
 0x6e4   : > { %4163 = vst.msk [vmem:[%s5875_s22 + $0x38] sm:$0xff] %vm3448_vm8, %v5184_v18 }
 0x6e5   : > { %v4107_v38 = vpop.f32.mrf.mxu1 }
 0x6e6   : > { %4162 = vst.msk [vmem:[%s5875_s22 + $0x30] sm:$0xff] %vm3448_vm8, %v4107_v38 }
 0x6eb   : > { %v5187_v26 = vpop.f32.mrf.mxu1 }
 0x6ec   : > { %4165 = vst.msk [vmem:[%s5875_s22 + $0x48] sm:$0xff] %vm3448_vm8, %v5187_v26 }
 0x6ed   : > { %v4117_v47 = vpop.f32.mrf.mxu1 }
 0x6ee   : > { %4164 = vst.msk [vmem:[%s5875_s22 + $0x40] sm:$0xff] %vm3448_vm8, %v4117_v47 }
 0x6f3   : > { %v5190_v10 = vpop.f32.mrf.mxu1 }
 0x6f4   : > { %4167 = vst.msk [vmem:[%s5875_s22 + $0x58] sm:$0xff] %vm3448_vm8, %v5190_v10 }
 0x6f5   : > { %v4127_v7 = vpop.f32.mrf.mxu1 }
 0x6f6   : > { %4166 = vst.msk [vmem:[%s5875_s22 + $0x50] sm:$0xff] %vm3448_vm8, %v4127_v7 }
 0x6fb   : > { %v5193_v42 = vpop.f32.mrf.mxu1 }
 0x6fc   : > { %4169 = vst.msk [vmem:[%s5875_s22 + $0x68] sm:$0xff] %vm3448_vm8, %v5193_v42 }
 0x6fd   : > { %v4137_v61 = vpop.f32.mrf.mxu1 }
 0x6fe   : > { %4168 = vst.msk [vmem:[%s5875_s22 + $0x60] sm:$0xff] %vm3448_vm8, %v4137_v61 }
 0x703   : > { %v5196_v21 = vpop.f32.mrf.mxu1 }
 0x704   : > { %4171 = vst.msk [vmem:[%s5875_s22 + $0x78] sm:$0xff] %vm3448_vm8, %v5196_v21 }
 0x705   : > { %v4147_v44 = vpop.f32.mrf.mxu1 }
 0x706   : > { %4170 = vst.msk [vmem:[%s5875_s22 + $0x70] sm:$0xff] %vm3448_vm8, %v4147_v44 }
 0x707 PF: > { %s6736_s26 = sld [smem:[#allocation14_spill]]  ;;  %s4186_s7 = sshll.u32 %s5875_s22, 4  ;;  %s6618_s7 = int_to_ptr.vmem [resolvable:$true] %s4186_s7 }
 0x708   : > { %s6737_s20 = sld [smem:[#allocation25_spill]]  ;;  %s6622_s14 = scalar_lea.sflag [#allocation6], %s477_s0 }
 0x709   : > { %s5493_s21 = scalar_lea.vmem %s6618_s7, 2048  ;;  %s5655_s15 = smov [#allocation7]  }
 0x70a   : > { %p5494_p11 = scmp.ne.s32.totalorder %s6618_s7, %s5493_s21  ;;  %s5497_s16 = sshll.u32 %s5655_s15, 4  ;;  %s5498_s16 = int_to_ptr.vmem [resolvable:$false] %s5497_s16 }
 0x70b   : > { %s5499_s13 = scalar_lea.vmem %s5498_s16, 4096  ;;  %p5500_p0 = scmp.lt.s32.totalorder %s6618_s7, %s5498_s16 }
 0x70c   : > { %p5495_p12 = pnand %p5494_p11, %p5822_p4  ;;  %p5501_p1 = scmp.lt.s32.totalorder %s5499_s13, %s5493_s21 }
 0x70d   : > { %s4605_s18 = sshll.u32 %s6736_s26, 11 }
 0x70e   : > { %s6615_s19 = scalar_lea.hbm %s6737_s20, %s4605_s18  ;;  %p5496_p13 = pneg %p5495_p12 }
 0x70f   : > { %p5502_p2 = por %p5501_p1, %p5500_p0 }
 0x711   : > { %p5503_p6 = pnand %p5502_p2, %p5496_p13 }
 0x713   : > { %5506 = shalt.err (!%p5503_p6)
}
 0x714   : > { %s5507_s0 = scalar_lea.hbm %s6615_s19, 2048  ;;  %s5511_s24 = scalar_lea.hbm %s6737_s20, 4096 }
 0x715   : > { %p5508_p3 = scmp.ne.s32.totalorder %s6615_s19, %s5507_s0  ;;  %p5512_p7 = scmp.lt.s32.totalorder %s6615_s19, %s6737_s20 }
 0x716   : > { %p5513_p10 = scmp.lt.s32.totalorder %s5511_s24, %s5507_s0 }
 0x717   : > { %p5509_p8 = pnand %p5508_p3, %p5822_p4 }
 0x718   : > { %p5514_p11 = por %p5513_p10, %p5512_p7 }
 0x719   : > { %p5510_p9 = pneg %p5509_p8 }
 0x71b   : > { %p5515_p12 = pnand %p5514_p11, %p5510_p9 }
 0x71d   : > { %5518 = shalt.err (!%p5515_p12)
}
 0x71e   : > { %s5656_s6 = smov 128   ;;  %s5657_s11 = smov 8  }
 0x71f   : > { %5231 = dma.vmem_to_hbm [thread:$0]  (%p5822_p4), %s6618_s7, 2048, %s6615_s19, %s6622_s14, %s5656_s6, %s5656_s6, %s5657_s11  }
 0x720 PF: > { %p5237_p13 = scmp.ge.s32.totalorder %s5629_s17, 2  ;;  %s4201_s21 = sand.u32 1, %s5581_s27  }
 0x721   : > { %s4202_s15 = scalar_lea.sflag [#allocation6], %s4201_s21 }
 0x722   : > { %p5234_p0 = pnand %p5237_p13, %p5826_p5 }
 0x724   : > { %p5235_p1 = pneg %p5234_p0 }
 0x726   : > { %5576 = dma.done.wait (%p5235_p1), %s4202_s15, 2048  }
 0x727   : > { %5578 = vsyncadd (%p5235_p1), %s4202_s15, 4294965248  ;;  %s24_s17 = sadd.s32 1, %s5629_s17   ;;  %s6739_s30 = sld [smem:[#allocation21_spill]] }
 0x728   : > { %p6650_p2 = scmp.ge.s32.totalorder %s24_s17, 6   ;;  %s6740_s19 = sld [smem:[#allocation19_spill]] }
 0x729   : > { %s6741_s11 = sld [smem:[#allocation13_spill]]  ;;  %s6748_s27 = smov %s5585_s28 }
 0x72a   : > { %s6742_s12 = sld [smem:[#allocation20_spill]]  ;;  %s6749_s28 = smov %s5589_s29 }
 0x72b   : > { %s6743_s13 = sld [smem:[#allocation15_spill]] }
 0x72c   : > { %s6744_s14 = sld [smem:[#allocation16_spill]] }
 0x72d   : > { %s6745_s15 = sld [smem:[#allocation17_spill]]  ;;  %s6750_s29 = smov %s6739_s30 }
 0x72e   : > { %s6746_s8 = sld [smem:[#allocation18_spill]]  ;;  %s6751_s30 = smov %s5597_s9 }
 0x72f   : > { %s6752_s9 = smov %s5601_s10  ;;  %s6753_s10 = smov %s6740_s19 }
 0x730   :  { %23 = sbr.rel (!%p6650_p2) target bundleno = 15 (0xf), region = 167 }
 0x734   : > { %s6754_s16 = smov %s6746_s8 }
 0x735   :  { %4207 = vsyncpa [#allocation5], 1 }
 0x736   :  { %4209 = vsyncpa [#allocation5 + $0x1], 1 }
 0x737   :  { %4210 = vsyncpa [#allocation6], 1 }
 0x738   :  { %4212 = vsyncpa [#allocation6 + $0x1], 1 }

// kernel: tpu_custom_call.1
= control target key start
LH: loop header
LB: loop body
LE: loop exit
PB: predicated region body
PF: predicated region fallthrough
CT: control target
= control target key end

     0   :  { %s7831_s0 = inlined_call_operand.vmem [shape: bf16[2,110,256], index: 0, kind: input, shape index: {}]   ;;  %s7832_s1 = inlined_call_operand.hbm [shape: bf16[9,256,128], index: 1, kind: input, shape index: {}]   ;;  %s7833_s2 = inlined_call_operand.vmem [shape: f32[1,128], index: 2, kind: input, shape index: {}]   ;;  %s7834_s3 = inlined_call_operand.vmem [shape: f32[1,128], index: 3, kind: input, shape index: {}]   ;;  %s7835_s4 = inlined_call_operand.vmem [shape: f32[128,8], index: 4, kind: input, shape index: {}]   ;;  %s7836_s5 = inlined_call_operand.vmem [shape: f32[1,8], index: 5, kind: input, shape index: {}]   ;;  %s7837_s6 = inlined_call_operand.vmem [shape: f32[16,8], index: 6, kind: input, shape index: {}]   ;;  %s7838_s7 = inlined_call_operand.vmem [shape: f32[16,10], index: 7, kind: input, shape index: {}]   ;;  %s7839_s8 = inlined_call_operand.vmem [shape: f32[2,16,16,8], index: 8, kind: output, shape index: {}]  }
   0x1   :  { %7845 = sst [smem:[#allocation16_spill]] %s7831_s0 }
   0x2   :  { %13 = vsyncpa [#allocation5], 0 }
   0x3   :  { %15 = vsyncpa [#allocation5 + $0x1], 0  ;;  %s6844_s27 = smov 0   ;;  %s6846_s28 = smov 0  }
   0x4   :  { %s6848_s29 = smov 0   ;;  %s6850_s30 = smov 0  }
   0x5   :  { %s6852_s9 = smov 0   ;;  %s6854_s10 = smov 0  }
   0x6   :  { %s6856_s11 = smov 0   ;;  %s6858_s12 = smov 0  }
   0x7   :  { %s6860_s13 = smov 0   ;;  %s6862_s14 = smov 0  }
   0x8 LB: > { %7846 = sst [smem:[#allocation10_spill]] %s6750_s9  ;;  %s5554_s15 = sadd.s32 4294967295, %s6770_s14   ;;  %s6770_s14 = sphi %s6862_s14, %s21_s14   ;;  %s6766_s13 = sphi %s6860_s13, %s7861_s13   ;;  %s6762_s12 = sphi %s6858_s12, %s7860_s12   ;;  %s6758_s11 = sphi %s6856_s11, %s7859_s11   ;;  %s6754_s10 = sphi %s6854_s10, %s7858_s10   ;;  %s6750_s9 = sphi %s6852_s9, %s7857_s9   ;;  %s6746_s30 = sphi %s6850_s30, %s7856_s30   ;;  %s6742_s29 = sphi %s6848_s29, %s7864_s29   ;;  %s6738_s28 = sphi %s6846_s28, %s7863_s28   ;;  %s6734_s27 = sphi %s6844_s27, %s7862_s27  }
   0x9   : > { %7847 = sst [smem:[#allocation11_spill]] %s6762_s12  ;;  %s30_s16 = sadd.s32 1, %s6762_s12 }
   0xa   : > { %7848 = sst [smem:[#allocation12_spill]] %s6766_s13  ;;  %p31_p0 = scmp.ge.s32.totalorder %s30_s16, 2 }
   0xb   : > { %s33_s17 = sadd.s32 1, %s6766_s13  ;;  %s42_s18 = sadd.s32 1, %s6750_s9 }
   0xc   : > { %p49_p1 = scmp.ne.s32.totalorder %s6750_s9, %s6746_s30  ;;  %s7866_s16 = smov (%p31_p0, %s30_s16), 0 }
   0xd   : > { %7849 = sst [smem:[#allocation13_spill]] %s7866_s16  ;;  %s7868_s17 = smov (!%p31_p0, %s33_s17), %s6766_s13 }
   0xe   : > { %s38_s19 = ssub.s32 %s6762_s12, %s7866_s16  ;;  %p50_p2 = scmp.eq.s32.totalorder %s6770_s14, 0 }
   0xf   : > { %p35_p3 = scmp.ge.s32.totalorder %s7868_s17, 2  ;;  %p66_p4 = scmp.eq.s32.totalorder %s38_s19, 0 }
  0x10   : > { %p6906_p5 = por %p50_p2, %p49_p1  ;;  %s68_s21 = sadd.s32 1, %s6742_s29 }
  0x11   : > { %s7870_s17 = smov (%p35_p3, %s7868_s17), 0  ;;  %p75_p6 = scmp.ne.s32.totalorder %s6742_s29, %s6738_s28 }
  0x12   : > { %7851 = sst [smem:[#allocation14_spill]] %s7870_s17  ;;  %s37_s23 = ssub.s32 %s6766_s13, %s7870_s17 }
  0x13   : > { %s6914_s22 = scalar_select %p66_p4, %s6742_s29, %s68_s21  }
  0x14   : > { %s39_s24 = sor.u32 %s38_s19, %s37_s23  ;;  %p81_p7 = scmp.ne.s32.totalorder %s6738_s28, %s6734_s27 }
  0x15   : > { %p40_p8 = scmp.eq.s32.totalorder %s39_s24, 0  ;;  %p6922_p9 = por %p75_p6, %p50_p2 }
  0x16   : > { %p82_p10 = scmp.eq.s32.totalorder %s5554_s15, 0  ;;  %p5557_p12 = scmp.ge.s32.totalorder %s6770_s14, 4 }
  0x17   : > { %s6927_s26 = scalar_select %p40_p8, %s6750_s9, %s42_s18  }
  0x18   : > { %p6929_p11 = por %p82_p10, %p81_p7  ;;  %271 = sbr.rel (%p5557_p12) target bundleno = 61 (0x3d), region = 40 }
  0x19   : > { %7853 = sst [smem:[#allocation15_spill]] %s6927_s26 }
  0x1d   : > { %274 = sbr.rel (!%p6906_p5) target bundleno = 47 (0x2f), region = 44  ;;  %s276_s27 = sand.u32 (%p6906_p5), 1, %s6750_s9  }
  0x1e   : > { %s6443_s19 = smul.u32 (%p6906_p5), 28, %s6766_s13  ;;  %s7855_s0 = sld [smem:[#allocation16_spill]] (%p6906_p5) }
  0x1f   : > { %s6442_s21 = smul.u32 (%p6906_p5), 56, %s276_s27 }
  0x20   : > { %s280_s23 = sadd.s32 (%p6906_p5), %s6762_s12, %s6443_s19 }
  0x21   : > { %s5558_s15 = sshll.u32 (%p6906_p5), %s280_s23, 2  ;;  %s278_s26 = scalar_lea.vmem (%p6906_p5), [#allocation3], %s6442_s21 }
  0x24   : > { %s282_s17 = scalar_lea.vmem %s7855_s0, %s5558_s15 }
  0x25   : > { %v299_v0 = vld [vmem:[%s282_s17] sm:$0xf]  ;;  %v301_v1 = vld [vmem:[%s282_s17 + $0x8] sm:$0xf]  ;;  %v303_v2 = vld [vmem:[%s282_s17 + $0x10] sm:$0xf] }
  0x26   : > { %300 = vst [vmem:[%s278_s26] sm:$0xf] %v299_v0  ;;  %302 = vst [vmem:[%s278_s26 + $0x4] sm:$0xf] %v301_v1  ;;  %v305_v3 = vld [vmem:[%s282_s17 + $0x18] sm:$0xf] }
  0x27   : > { %304 = vst [vmem:[%s278_s26 + $0x8] sm:$0xf] %v303_v2  ;;  %v307_v4 = vld [vmem:[%s282_s17 + $0x20] sm:$0xf]  ;;  %v309_v5 = vld [vmem:[%s282_s17 + $0x28] sm:$0xf] }
  0x28   : > { %306 = vst [vmem:[%s278_s26 + $0xc] sm:$0xf] %v305_v3  ;;  %308 = vst [vmem:[%s278_s26 + $0x10] sm:$0xf] %v307_v4  ;;  %v311_v6 = vld [vmem:[%s282_s17 + $0x30] sm:$0xf] }
  0x29   : > { %310 = vst [vmem:[%s278_s26 + $0x14] sm:$0xf] %v309_v5  ;;  %v313_v7 = vld [vmem:[%s282_s17 + $0x38] sm:$0xf]  ;;  %v315_v8 = vld [vmem:[%s282_s17 + $0x40] sm:$0xf] }
  0x2a   : > { %312 = vst [vmem:[%s278_s26 + $0x18] sm:$0xf] %v311_v6  ;;  %314 = vst [vmem:[%s278_s26 + $0x1c] sm:$0xf] %v313_v7  ;;  %v317_v9 = vld [vmem:[%s282_s17 + $0x48] sm:$0xf] }
  0x2b   : > { %316 = vst [vmem:[%s278_s26 + $0x20] sm:$0xf] %v315_v8  ;;  %v319_v10 = vld [vmem:[%s282_s17 + $0x50] sm:$0xf]  ;;  %v321_v11 = vld [vmem:[%s282_s17 + $0x58] sm:$0xf] }
  0x2c   : > { %318 = vst [vmem:[%s278_s26 + $0x24] sm:$0xf] %v317_v9  ;;  %320 = vst [vmem:[%s278_s26 + $0x28] sm:$0xf] %v319_v10  ;;  %v323_v12 = vld [vmem:[%s282_s17 + $0x60] sm:$0xf] }
  0x2d   : > { %322 = vst [vmem:[%s278_s26 + $0x2c] sm:$0xf] %v321_v11  ;;  %v325_v13 = vld [vmem:[%s282_s17 + $0x68] sm:$0xf]  ;;  %324 = vst [vmem:[%s278_s26 + $0x30] sm:$0xf] %v323_v12 }
  0x2e   : > { %326 = vst [vmem:[%s278_s26 + $0x34] sm:$0xf] %v325_v13 }
  0x2f PF: > { %s379_s20 = sand.u32 1, %s6742_s29   ;;  %s5856_s19 = sshll.u32 %s6762_s12, 10 }
  0x30   : > { %s6444_s27 = smul.u32 576, %s379_s20  ;;  %s6772_s21 = smov 2048  }
  0x31   : > { %6448 = sst [smem:[#allocation7]] (%p6922_p9), %s6772_s21  ;;  %s389_s15 = scalar_lea.hbm %s7832_s1, %s5856_s19 }
  0x32   : > { %s6447_s17 = scalar_select %p6922_p9, [#allocation0], [#allocation8] }
  0x33   : > { %s383_s24 = scalar_lea.vmem [#allocation4], %s6444_s27  ;;  %s6773_s13 = smov 1024  }
  0x34   : > { %s394_s18 = sld [smem:[%s6447_s17]]   ;;  %s402_s0 = sshll.u32 %s383_s24, 4  ;;  %s403_s0 = int_to_ptr.vmem [resolvable:$true] %s402_s0 }
  0x35   : > { %6449 = sst [smem:[#allocation7 + $0x1]] (%p6922_p9), %s6773_s13  ;;  %s6774_s9 = smov 16  }
  0x36   : > { %6450 = sst [smem:[#allocation7 + $0x2]] (%p6922_p9), %s6774_s9  ;;  %s6775_s12 = smov 64  }
  0x37   : > { %6451 = sst [smem:[#allocation7 + $0x3]] (%p6922_p9), %s6775_s12  ;;  %s6776_s21 = smov 4  }
  0x38   : > { %6452 = sst [smem:[#allocation7 + $0x4]] (%p6922_p9), %s6775_s12  ;;  %s380_s27 = scalar_lea.sflag [#allocation5], %s379_s20 }
  0x39   : > { %6453 = sst [smem:[#allocation7 + $0x5]] (%p6922_p9), %s6776_s21  ;;  %s6777_s23 = smov 131072  }
  0x3a   : > { %s5561_s19 = sshll.u32 %s394_s18, 26 }
  0x3b   : > { %s5562_s17 = sadd.s32 134217728, %s5561_s19 }
  0x3c   : > { %6454 = dma.general (%p6922_p9), %s389_s15, 9216, %s403_s0, %s380_s27, %s6777_s23, [#allocation7], %s5562_s17, 0  }
  0x3d PF: > { %p5563_p13 = scmp.ge.s32.totalorder %s6770_s14, 1  ;;  %p423_p0 = scmp.lt.s32.totalorder %s6770_s14, 5 }
  0x3f   : > { %p424_p1 = pnand %p5563_p13, %p423_p0 }
  0x40   : > { %s430_s9 = sand.u32 (!%p424_p1), 1, %s6746_s30   ;;  %s436_s12 = sand.u32 (!%p424_p1), 1, %s6738_s28  }
  0x41   : > { %427 = sbr.rel (%p424_p1) target bundleno = 1920 (0x780), region = 89  ;;  %s437_s20 = scalar_lea.sflag (!%p424_p1), [#allocation5], %s436_s12 }
  0x42   : > { %s6445_s13 = smul.u32 (!%p424_p1), 56, %s430_s9 }
  0x43   : > { %s6446_s26 = smul.u32 (!%p424_p1), 576, %s436_s12 }
  0x44   : > { %s6967_s18 = scalar_lea.vmem (!%p424_p1), [#allocation3], %s6445_s13 }
  0x45   : > { %s6969_s24 = scalar_lea.vmem (!%p424_p1), [#allocation4], %s6446_s26 }
  0x46   : > { %6729 = dma.done.wait (%p6929_p11), %s437_s20, 9216  }
  0x47   : > { %6731 = vsyncadd (%p6929_p11), %s437_s20, 4294958080  ;;  %p478_p2 = scmp.lt.s32.totalorder %s6758_s11, 1  ;;  %p5566_p3 = scmp.ne.s32.totalorder %s6754_s10, 0 }
  0x49   : > { %s7872_s11 = smov (!%p478_p2, %s6758_s11), 1  ;;  %487 = sbr.rel (%p5566_p3) target bundleno = 84 (0x54), region = 101 }
  0x4a   : > { %s5857_s0 = sshll.u32 %s7872_s11, 8 }
  0x4b   : > { %s6980_s15 = scalar_lea.vmem %s7839_s8, %s5857_s0 }
  0x4e   : > { %v6778_v14 = vmov 0.0  }
  0x4f   : > { %488 = vst [vmem:[#allocation2 + $0x30] sm:$0xff] %v6778_v14  ;;  %489 = vst [vmem:[#allocation2] sm:$0xff] %v6778_v14 }
  0x50   : > { %490 = vst [vmem:[#allocation2 + $0x18] sm:$0xff] %v6778_v14  ;;  %491 = vst [vmem:[#allocation2 + $0x10] sm:$0xff] %v6778_v14 }
  0x51   : > { %492 = vst [vmem:[#allocation2 + $0x48] sm:$0xff] %v6778_v14  ;;  %493 = vst [vmem:[#allocation2 + $0x28] sm:$0xff] %v6778_v14 }
  0x52   : > { %494 = vst [vmem:[#allocation2 + $0x8] sm:$0xff] %v6778_v14  ;;  %495 = vst [vmem:[#allocation2 + $0x20] sm:$0xff] %v6778_v14 }
  0x53   : > { %496 = vst [vmem:[#allocation2 + $0x40] sm:$0xff] %v6778_v14  ;;  %497 = vst [vmem:[#allocation2 + $0x38] sm:$0xff] %v6778_v14 }
  0x54 PF: > { %v6563_v15 = vld [vmem:[%s6969_s24 + $0x38] sm:$0xff]   ;;  %v6779_v16 = vmov 0.0   ;;  %v6565_v18 = vld [vmem:[%s6969_s24 + $0x30] sm:$0xff]   ;;  %vm6780_vm0 = vmmov 0   ;;  %v6567_v20 = vld [vmem:[%s6969_s24 + $0x28] sm:$0xff]   ;;  %vm1028_vm2 = vcmask 1046528  }
  0x55   : > { %6022 = vmatprep.subr.bf16.mxu0 %v6779_v16  ;;  %6058 = vmatprep.subr.bf16.mxu1 %v6779_v16  ;;  %v6564_v17 = vld [vmem:[%s6969_s24 + $0x78] sm:$0xff]   ;;  %v6566_v19 = vld [vmem:[%s6969_s24 + $0x70] sm:$0xff]   ;;  %v6568_v21 = vld [vmem:[%s6969_s24 + $0x68] sm:$0xff]   ;;  %vm771_vm1 = vsmask.f32 7424  ;;  %vm1741_vm4 = vcmask 1045504  }
  0x56   : > { %6023 = vmatpush3.bf16.msra.mxu0 %v6563_v15  ;;  %6038 = vmatprep.mubr.msk.bf16.mxu0 %vm6780_vm0, %v6779_v16  ;;  %v6569_v22 = vld [vmem:[%s6969_s24 + $0x20] sm:$0xff]   ;;  %v6571_v24 = vld [vmem:[%s6969_s24 + $0x18] sm:$0xff]   ;;  %v6573_v26 = vld [vmem:[%s6969_s24 + $0x10] sm:$0xff]   ;;  %vm1475_vm3 = vsmask.f32 6400  ;;  %vm2454_vm6 = vcmask 1044480  }
  0x57   : > { %6024 = vmatprep.subr.bf16.mxu0 %v6779_v16  ;;  %6059 = vmatpush3.bf16.msra.mxu1 %v6564_v17  ;;  %v6570_v23 = vld [vmem:[%s6969_s24 + $0x60] sm:$0xff]   ;;  %v6572_v25 = vld [vmem:[%s6969_s24 + $0x58] sm:$0xff]   ;;  %v6574_v27 = vld [vmem:[%s6969_s24 + $0x50] sm:$0xff]   ;;  %vm2188_vm5 = vsmask.f32 5376  ;;  %p5820_p4 = scmp.ne.s32.totalorder %s6754_s10, 1 }
  0x58   : > { %6060 = vmatprep.subr.bf16.mxu1 %v6779_v16  ;;  %6074 = vmatprep.mubr.msk.bf16.mxu1 %vm6780_vm0, %v6779_v16  ;;  %v6581_v28 = vld [vmem:[%s6967_s18] sm:$0xff]   ;;  %v6582_v29 = vld [vmem:[%s6967_s18 + $0x8] sm:$0xff]   ;;  %v6577_v36 = vld [vmem:[%s6969_s24] sm:$0xff]   ;;  %s6783_s21 = smov (!%p5820_p4), 24   ;;  %s6784_s19 = smov (!%p5820_p4), 16  }
  0x59   : > { %v6575_v30 = vld [vmem:[%s6969_s24 + $0x8] sm:$0xff]   ;;  %v775_v31 = vshll.u32 %v6581_v28, 16  ;;  %v773_v33 = vshrl.u32 %v6581_v28, 16  ;;  %v780_v35 = vshll.u32 %v6582_v29, 16  ;;  %v6579_v37 = vld [vmem:[%s6969_s24 + $0x40] sm:$0xff]   ;;  %v6580_v42 = vld [vmem:[%s6969_s24 + $0xb8] sm:$0xff]  }
  0x5a   : > { %6025 = vmatpush3.bf16.msra.mxu0 %v6565_v18  ;;  %v6576_v32 = vld [vmem:[%s6969_s24 + $0x48] sm:$0xff]   ;;  %v6586_v40 = vld [vmem:[%s6967_s18 + $0x10] sm:$0xff]   ;;  %v784_v44 = vshrl.u32 %v6582_v29, 16  ;;  %v6583_v47 = vld [vmem:[%s6969_s24 + $0xb0] sm:$0xff]   ;;  %s6785_s17 = smov (!%p5820_p4), 32   ;;  %s6786_s27 = smov (!%p5820_p4), 40  }
  0x5b   : > { %6026 = vmatprep.subr.bf16.mxu0 %v6779_v16  ;;  %6061 = vmatpush3.bf16.msra.mxu1 %v6566_v19  ;;  %v777_v34 = vrot.slane %v775_v31, 1  ;;  %v782_v39 = vrot.slane %v780_v35, 1  ;;  %v6578_v41 = vld [vmem:[%s6967_s18] sm:$0xff]   ;;  %v788_v45 = vshll.u32 %v6586_v40, 16  ;;  %v6585_v46 = vld [vmem:[%s6969_s24 + $0xf8] sm:$0xff]   ;;  %v6591_v50 = vld [vmem:[%s6967_s18 + $0x18] sm:$0xff]  }
  0x5c   : > { %6062 = vmatprep.subr.bf16.mxu1 %v6779_v16  ;;  %v6588_v51 = vld [vmem:[%s6969_s24 + $0xf0] sm:$0xff]   ;;  %v6587_v53 = vld [vmem:[%s6969_s24 + $0xa8] sm:$0xff]   ;;  %v792_v55 = vshrl.u32 %v6586_v40, 16  ;;  %v796_v56 = vshll.u32 %v6591_v50, 16  ;;  %v6590_v58 = vld [vmem:[%s6969_s24 + $0xa0] sm:$0xff]   ;;  %v800_v2 = vshrl.u32 %v6591_v50, 16 }
  0x5d   : > { %v778_v38 = vor.u32 %v777_v34, %v773_v33  ;;  %v786_v48 = vor.u32 %v784_v44, %v782_v39  ;;  %v790_v49 = vrot.slane %v788_v45, 1  ;;  %v6584_v52 = vld [vmem:[%s6967_s18 + $0x8] sm:$0xff]   ;;  %v6592_v57 = vld [vmem:[%s6969_s24 + $0xe8] sm:$0xff]   ;;  %v6595_v62 = vld [vmem:[%s6969_s24 + $0xe0] sm:$0xff]   ;;  %s6787_s10 = smov (!%p5820_p4), 48   ;;  %s6788_s12 = smov (!%p5820_p4), 8  }
  0x5e   : > { %6027 = vmatpush3.bf16.msra.mxu0 %v6567_v20  ;;  %v798_v60 = vrot.slane %v796_v56, 1  ;;  %v6597_v61 = vld [vmem:[%s6967_s18 + $0x20] sm:$0xff]   ;;  %v6589_v63 = vld [vmem:[%s6967_s18 + $0x10] sm:$0xff]   ;;  %v6602_v5 = vld [vmem:[%s6967_s18 + $0x28] ss:$0 sps:$4 sm:$0x11]  }
  0x5f   : > { %6028 = vmatprep.subr.bf16.mxu0 %v6779_v16  ;;  %6063 = vmatpush3.bf16.msra.mxu1 %v6568_v21  ;;  %v783_v43 = vsel %vm771_vm1, %v778_v38, %v782_v39  ;;  %v791_v54 = vsel %vm771_vm1, %v786_v48, %v790_v49  ;;  %v794_v59 = vor.u32 %v792_v55, %v790_v49  ;;  %v6593_v0 = vld [vmem:[%s6969_s24 + $0x98] sm:$0xff]   ;;  %v804_v3 = vshll.u32 %v6597_v61, 16  ;;  %v6596_v6 = vld [vmem:[%s6969_s24 + $0x90] sm:$0xff]   ;;  %v6594_v10 = vld [vmem:[%s6967_s18 + $0x18] sm:$0xff]   ;;  %s6790_s13 = smov (!%p5820_p4), 64   ;;  %s6791_s26 = smov (!%p5820_p4), 56  }
  0x60   : > { %6064 = vmatprep.subr.bf16.mxu1 %v6779_v16  ;;  %v6598_v4 = vld [vmem:[%s6969_s24 + $0xd8] sm:$0xff]   ;;  %v802_v7 = vor.u32 %v800_v2, %v798_v60  ;;  %v6601_v9 = vld [vmem:[%s6969_s24 + $0xd0] sm:$0xff]   ;;  %v6599_v11 = vld [vmem:[%s6969_s24 + $0x88] sm:$0xff]   ;;  %v808_v13 = vshrl.u32 %v6597_v61, 16  ;;  %v812_v14 = vshll.u32 %v6602_v5, 16  ;;  %s6793_s0 = smov (!%p5820_p4), 112  }
  0x61   : > { %v799_v1 = vsel %vm771_vm1, %v794_v59, %v798_v60  ;;  %v806_v8 = vrot.slane %v804_v3, 1  ;;  %v6604_v15 = vld [vmem:[%s6969_s24 + $0xc8] sm:$0xff]   ;;  %v6603_v20 = vld [vmem:[%s6969_s24 + $0x80] sm:$0xff]   ;;  %v6606_v21 = vld [vmem:[%s6967_s18 + $0x8] sm:$0xff]   ;;  %s6794_s25 = smov (!%p5820_p4), 120   ;;  %s6795_s30 = smov (!%p5820_p4), 96  }
  0x62   : > { %6029 = vmatpush3.bf16.msra.mxu0 %v6569_v22  ;;  %v6600_v17 = vld [vmem:[%s6967_s18 + $0x20] sm:$0xff]   ;;  %v814_v19 = vrot.slane %v812_v14, 1  ;;  %v6607_v22 = vld [vmem:[%s6969_s24 + $0xc0] sm:$0xff]   ;;  %v1030_v28 = vrot.slane %v6606_v21, 1  ;;  %v6608_v31 = vld [vmem:[%s6969_s24 + $0x138] sm:$0xff]   ;;  %s6796_s11 = smov (!%p5820_p4), 104  }
  0x63   : > { %6030 = vmatprep.subr.bf16.mxu0 %v6779_v16  ;;  %6065 = vmatpush3.bf16.msra.mxu1 %v6570_v23  ;;  %v807_v12 = vsel %vm771_vm1, %v802_v7, %v806_v8  ;;  %v810_v18 = vor.u32 %v808_v13, %v806_v8  ;;  %v6605_v23 = vld [vmem:[%s6967_s18] sm:$0xfe]   ;;  %v6614_v35 = vld [vmem:[%s6967_s18 + $0x14] sm:$0xff]   ;;  %v6628_v61 = vld [vmem:[%s6967_s18 + $0x28] ss:$0 sps:$4 sm:$0x11]  }
  0x64   : > { %6066 = vmatprep.subr.bf16.mxu1 %v6779_v16  ;;  %v1255_v39 = vrot.slane %v6614_v35, 1  ;;  %v6616_v40 = vld [vmem:[%s6969_s24 + $0x170] sm:$0xff]   ;;  %v6618_v48 = vld [vmem:[%s6969_s24 + $0x120] sm:$0xff]   ;;  %v6626_v56 = vld [vmem:[%s6969_s24 + $0x158] sm:$0xff]   ;;  %v1038_v8 = vrot.slane %v6628_v61, 1  ;;  %s6797_s16 = smov (!%p5820_p4), 80  }
  0x65   : > { %v6619_v45 = vld [vmem:[%s6967_s18 + $0x1c] sm:$0xff]   ;;  %v6642_v35 = vld [vmem:[%s6967_s18 + $0x14] sm:$0xff]  }
  0x66   : > { %6031 = vmatpush3.bf16.msra.mxu0 %v6571_v24  ;;  %v6609_v24 = vld [vmem:[%s6967_s18 + $0x4] sm:$0xfe]   ;;  %v1257_v49 = vrot.slane %v6619_v45, 1  ;;  %v6623_v50 = vld [vmem:[%s6969_s24 + $0x160] sm:$0xff]  }
  0x67   : > { %6032 = vmatprep.subr.bf16.mxu0 %v6779_v16  ;;  %6067 = vmatpush3.bf16.msra.mxu1 %v6572_v25  ;;  %v815_v25 = vsel %vm771_vm1, %v810_v18, %v814_v19  ;;  %v1252_v29 = vrot.slane %v6609_v24, 1  ;;  %v6629_v59 = vld [vmem:[%s6969_s24 + $0x150] sm:$0xff]   ;;  %v6627_v3 = vld [vmem:[%s6969_s24 + $0x108] sm:$0xff]   ;;  %v6635_v13 = vld [vmem:[%s6969_s24 + $0x140] sm:$0xff]  }
  0x68   : > { %6068 = vmatprep.subr.bf16.mxu1 %v6779_v16  ;;  %v1258_v55 = vsel %vm1028_vm2, %v1255_v39, %v1257_v49  ;;  %v6632_v5 = vld [vmem:[%s6969_s24 + $0x148] sm:$0xff]  }
  0x69   : > { %v6643_v45 = vld [vmem:[%s6969_s24 + $0x1a8] sm:$0xff]  }
  0x6a   : > { %6033 = vmatpush3.bf16.msra.mxu0 %v6573_v26  ;;  %v6610_v26 = vld [vmem:[%s6967_s18 + $0xc] sm:$0xff]  }
  0x6b   : > { %6034 = vmatprep.subr.bf16.mxu0 %v6779_v16  ;;  %6069 = vmatpush3.bf16.msra.mxu1 %v6574_v27  ;;  %v1029_v27 = vrot.slane %v6605_v23, 1 }
  0x6c   : > { %6070 = vmatprep.subr.bf16.mxu1 %v6779_v16 }
  0x6d   : > { %v1031_v33 = vsel %vm1028_vm2, %v1029_v27, %v1030_v28 }
  0x6e   : > { %6035 = vmatpush3.bf16.msra.mxu0 %v6575_v30  ;;  %v1253_v30 = vrot.slane %v6610_v26, 1 }
  0x6f   : > { %6036 = vmatprep.subr.bf16.mxu0 %v6779_v16  ;;  %6071 = vmatpush3.bf16.msra.mxu1 %v6576_v32  ;;  %v6612_v32 = vld [vmem:[%s6967_s18 + $0x10] sm:$0xff]  }
  0x70   : > { %6072 = vmatprep.subr.bf16.mxu1 %v6779_v16  ;;  %v1254_v34 = vsel %vm1028_vm2, %v1252_v29, %v1253_v30  ;;  %v1032_v38 = vrot.slane %v6612_v32, 1  ;;  %v1256_v44 = vsel %vm1028_vm2, %v1253_v30, %v1255_v39  ;;  %v6636_v30 = vld [vmem:[%s6969_s24 + $0x1b8] sm:$0xff]  }
  0x72   : > { %6037 = vmatpush3.bf16.msra.mxu0 %v6577_v36  ;;  %v6613_v36 = vld [vmem:[%s6969_s24 + $0x178] sm:$0xff]  }
  0x73   : > { %6073 = vmatpush3.bf16.msra.mxu1 %v6579_v37  ;;  %6094 = vmatprep.subr.bf16.mxu0 %v6779_v16  ;;  %v6611_v37 = vld [vmem:[%s6969_s24 + $0x130] sm:$0xff]  }
  0x74   : > { %6130 = vmatprep.subr.bf16.mxu1 %v6779_v16 }
  0x75   : > { %6039 = vmatmul.mubr.bf16.vlgmr.msra.gmra.mxu0 %v6578_v41  ;;  %v6617_v41 = vld [vmem:[%s6967_s18 + $0x18] sm:$0xff]  }
  0x76   : > { %6095 = vmatpush3.bf16.msra.mxu0 %v6580_v42  ;;  %6075 = vmatmul.mubr.bf16.vlgmr.msra.gmra.mxu1 %v783_v43  ;;  %v1033_v42 = vsel %vm1028_vm2, %v1030_v28, %v1032_v38  ;;  %v6615_v43 = vld [vmem:[%s6969_s24 + $0x128] sm:$0xff]  }
  0x77   : > { %6096 = vmatprep.subr.bf16.mxu0 %v6779_v16  ;;  %6042 = vmatprep.mubr.msk.bf16.mxu0 %vm6780_vm0, %v6779_v16 }
  0x78   : > { %6131 = vmatpush3.bf16.msra.mxu1 %v6585_v46  ;;  %6078 = vmatprep.mubr.msk.bf16.mxu1 %vm6780_vm0, %v6779_v16  ;;  %v6620_v46 = vld [vmem:[%s6969_s24 + $0x168] sm:$0xff]  }
  0x79   : > { %6132 = vmatprep.subr.bf16.mxu1 %v6779_v16 }
  0x7a   : > { %6097 = vmatpush3.bf16.msra.mxu0 %v6583_v47  ;;  %v1034_v47 = vrot.slane %v6617_v41, 1  ;;  %v1745_v41 = vrot.slane %v6642_v35, 2 }
  0x7b   : > { %6098 = vmatprep.subr.bf16.mxu0 %v6779_v16 }
  0x7c   : > { %6133 = vmatpush3.bf16.msra.mxu1 %v6588_v51  ;;  %v6621_v51 = vld [vmem:[%s6969_s24 + $0x118] sm:$0xff]  }
  0x7d   : > { %6043 = vmatmul.mubr.bf16.gmra.mxu0 %v6584_v52  ;;  %6134 = vmatprep.subr.bf16.mxu1 %v6779_v16  ;;  %v1035_v52 = vsel %vm1028_vm2, %v1032_v38, %v1034_v47 }
  0x7e   : > { %6079 = vmatmul.mubr.bf16.gmra.mxu1 %v791_v54  ;;  %6099 = vmatpush3.bf16.msra.mxu0 %v6587_v53  ;;  %v6622_v53 = vld [vmem:[%s6967_s18 + $0x20] sm:$0xff]  }
  0x7f   : > { %6046 = vmatprep.mubr.msk.bf16.mxu0 %vm6780_vm0, %v6779_v16  ;;  %6100 = vmatprep.subr.bf16.mxu0 %v6779_v16  ;;  %v6625_v54 = vld [vmem:[%s6967_s18 + $0x24] sm:$0xff]  }
  0x80   : > { %6082 = vmatprep.mubr.msk.bf16.mxu1 %vm6780_vm0, %v6779_v16  ;;  %6135 = vmatpush3.bf16.msra.mxu1 %v6592_v57  ;;  %v6624_v57 = vld [vmem:[%s6969_s24 + $0x110] sm:$0xff]   ;;  %v1259_v60 = vrot.slane %v6625_v54, 1  ;;  %v6646_v54 = vld [vmem:[%s6969_s24 + $0x1a0] sm:$0xff]  }
  0x81   : > { %6136 = vmatprep.subr.bf16.mxu1 %v6779_v16 }
  0x82   : > { %6101 = vmatpush3.bf16.msra.mxu0 %v6590_v58  ;;  %v1036_v58 = vrot.slane %v6622_v53, 1  ;;  %v1260_v2 = vsel %vm1028_vm2, %v1257_v49, %v1259_v60  ;;  %v6647_v49 = vld [vmem:[%s6967_s18 + $0x1c] sm:$0xff]  }
  0x83   : > { %6102 = vmatprep.subr.bf16.mxu0 %v6779_v16 }
  0x84   : > { %6137 = vmatpush3.bf16.msra.mxu1 %v6595_v62  ;;  %v6634_v62 = vld [vmem:[%s6967_s18 + $0xc] sm:$0xff]   ;;  %v1039_v18 = vsel %vm1028_vm2, %v1036_v58, %v1038_v8 }
  0x85   : > { %6047 = vmatmul.mubr.bf16.gmra.mxu0 %v6589_v63  ;;  %6138 = vmatprep.subr.bf16.mxu1 %v6779_v16  ;;  %v6633_v63 = vld [vmem:[%s6967_s18 + $0x4] sm:$0xfe]   ;;  %v1488_v7 = vshll.u32 %v6634_v62, 16 }
  0x86   : > { %6083 = vmatmul.mubr.bf16.gmra.mxu1 %v799_v1  ;;  %6103 = vmatpush3.bf16.msra.mxu0 %v6593_v0  ;;  %v6630_v0 = vld [vmem:[%s6967_s18 + $0x2c] ss:$0 sps:$4 sm:$0x11]   ;;  %v1037_v1 = vsel %vm1028_vm2, %v1034_v47, %v1036_v58 }
  0x87   : > { %6050 = vmatprep.mubr.msk.bf16.mxu0 %vm6780_vm0, %v6779_v16  ;;  %6104 = vmatprep.subr.bf16.mxu0 %v6779_v16 }
  0x88   : > { %6086 = vmatprep.mubr.msk.bf16.mxu1 %vm6780_vm0, %v6779_v16  ;;  %6139 = vmatpush3.bf16.msra.mxu1 %v6598_v4  ;;  %v1485_v4 = vshrl.u32 %v6634_v62, 16 }
  0x89   : > { %6140 = vmatprep.subr.bf16.mxu1 %v6779_v16 }
  0x8a   : > { %6105 = vmatpush3.bf16.msra.mxu0 %v6596_v6  ;;  %v1477_v6 = vshrl.u32 %v6633_v63, 16 }
  0x8b   : > { %6106 = vmatprep.subr.bf16.mxu0 %v6779_v16 }
  0x8c   : > { %6141 = vmatpush3.bf16.msra.mxu1 %v6601_v9  ;;  %v6631_v9 = vld [vmem:[%s6969_s24 + $0x100] sm:$0xff]   ;;  %v1479_v14 = vrot.slane %v1477_v6, 1  ;;  %v6657_v6 = vld [vmem:[%s6969_s24 + $0x1d0] sm:$0xff]  }
  0x8d   : > { %6051 = vmatmul.mubr.bf16.gmra.mxu0 %v6594_v10  ;;  %6142 = vmatprep.subr.bf16.mxu1 %v6779_v16  ;;  %v1261_v10 = vrot.slane %v6630_v0, 1  ;;  %v6654_v0 = vld [vmem:[%s6969_s24 + $0x1d8] sm:$0xff]  }
  0x8e   : > { %6087 = vmatmul.mubr.bf16.gmra.mxu1 %v807_v12  ;;  %6054 = vmatprep.mubr.msk.bf16.mxu0 %vm6780_vm0, %v6779_v16  ;;  %v1487_v12 = vrot.slane %v1485_v4, 1 }
  0x8f   : > { %6107 = vmatpush3.bf16.msra.mxu0 %v6599_v11  ;;  %6090 = vmatprep.mubr.msk.bf16.mxu1 %vm6780_vm0, %v6779_v16  ;;  %v1480_v11 = vshll.u32 %v6633_v63, 16  ;;  %v1262_v21 = vsel %vm1028_vm2, %v1259_v60, %v1261_v10  ;;  %v6656_v60 = vld [vmem:[%s6967_s18 + $0x2c] ss:$0 sps:$4 sm:$0x33]   ;;  %v6653_v63 = vld [vmem:[%s6967_s18 + $0x24] sm:$0xff]  }
  0x90   : > { %6108 = vmatprep.subr.bf16.mxu0 %v6779_v16  ;;  %6143 = vmatpush3.bf16.msra.mxu1 %v6604_v15  ;;  %v1490_v15 = vrot.slane %v1488_v7, 2  ;;  %v1524_v4 = vshll.u32 %v6656_v60, 16  ;;  %v6658_v10 = vld [vmem:[%s6967_s18 + $0x2c] ss:$0 sps:$4 sm:$0x33]  }
  0x91   : > { %6144 = vmatprep.subr.bf16.mxu1 %v6779_v16  ;;  %v1482_v19 = vrot.slane %v1480_v11, 2 }
  0x92   : > { %v1491_v24 = vor.u32 %v1490_v15, %v1487_v12  ;;  %v6655_v12 = vld [vmem:[%s6969_s24 + $0x188] sm:$0xff]  }
  0x93   : > { %6109 = vmatpush3.bf16.msra.mxu0 %v6603_v20  ;;  %v6640_v20 = vld [vmem:[%s6967_s18 + $0x14] sm:$0xff]   ;;  %v1483_v23 = vor.u32 %v1482_v19, %v1479_v14 }
  0x94   : > { %6145 = vmatpush3.bf16.msra.mxu1 %v6607_v22  ;;  %6166 = vmatprep.subr.bf16.mxu0 %v6779_v16  ;;  %v6638_v22 = vld [vmem:[%s6967_s18 + $0xc] sm:$0xff]   ;;  %v1497_v26 = vshll.u32 %v6640_v20, 16  ;;  %v6660_v15 = vld [vmem:[%s6969_s24 + $0x1c8] sm:$0xff]  }
  0x95   : > { %6055 = vmatmul.mubr.bf16.gmra.mxu0 %v6600_v17  ;;  %6202 = vmatprep.subr.bf16.mxu1 %v6779_v16  ;;  %v6637_v17 = vld [vmem:[%s6967_s18 + $0x4] sm:$0xfc]   ;;  %v1743_v28 = vrot.slane %v6638_v22, 2  ;;  %v1492_v29 = vsel %vm1475_vm3, %v1483_v23, %v1491_v24  ;;  %v6666_v14 = vld [vmem:[%s6967_s18 + $0x10] sm:$0xff]  }
  0x96   : > { %6091 = vmatmul.mubr.bf16.gmra.mxu1 %v815_v25  ;;  %6110 = vmatprep.mubr.msk.bf16.mxu0 %vm6780_vm0, %v6779_v16  ;;  %v1494_v25 = vshrl.u32 %v6640_v20, 16  ;;  %v1742_v27 = vrot.slane %v6637_v17, 2  ;;  %v1499_v32 = vrot.slane %v1497_v26, 2  ;;  %v6659_v19 = vld [vmem:[%s6969_s24 + $0x180] sm:$0xff]   ;;  %v2198_v22 = vshrl.u32 %v6666_v14, 16 }
  0x97   : > { %6146 = vmatprep.mubr.msk.bf16.mxu1 %vm6780_vm0, %v6779_v16  ;;  %v2201_v23 = vshll.u32 %v6666_v14, 16 }
  0x9d   : > { %6111 = vmatmul.mubr.bf16.vlgmr.msra.gmra.mxu0 %v1031_v33  ;;  %v6645_v33 = vld [vmem:[%s6967_s18 + $0x1c] sm:$0xff]  }
  0x9e   : > { %6167 = vmatpush3.bf16.msra.mxu0 %v6608_v31  ;;  %6147 = vmatmul.mubr.bf16.vlgmr.msra.gmra.mxu1 %v1254_v34  ;;  %v1496_v31 = vrot.slane %v1494_v25, 1  ;;  %v1744_v34 = vsel %vm1741_vm4, %v1742_v27, %v1743_v28  ;;  %v1503_v39 = vshrl.u32 %v6645_v33, 16  ;;  %v6661_v27 = vld [vmem:[%s6967_s18 + $0x8] sm:$0xfc]  }
  0x9f   : > { %6168 = vmatprep.subr.bf16.mxu0 %v6779_v16  ;;  %6114 = vmatprep.mubr.msk.bf16.mxu0 %vm6780_vm0, %v6779_v16 }
  0xa0   : > { %6203 = vmatpush3.bf16.msra.mxu1 %v6613_v36  ;;  %6150 = vmatprep.mubr.msk.bf16.mxu1 %vm6780_vm0, %v6779_v16  ;;  %v6641_v36 = vld [vmem:[%s6969_s24 + $0x1f8] sm:$0xff]   ;;  %v1500_v38 = vor.u32 %v1499_v32, %v1496_v31  ;;  %v2200_v31 = vrot.slane %v2198_v22, 2  ;;  %v2203_v32 = vrot.slane %v2201_v23, 3 }
  0xa1   : > { %6204 = vmatprep.subr.bf16.mxu1 %v6779_v16  ;;  %v6682_v23 = vld [vmem:[%s6967_s18 + $0x8] sm:$0xf8]  }
  0xa2   : > { %6169 = vmatpush3.bf16.msra.mxu0 %v6611_v37  ;;  %v6639_v37 = vld [vmem:[%s6969_s24 + $0x1b0] sm:$0xff]  }
  0xa3   : > { %6170 = vmatprep.subr.bf16.mxu0 %v6779_v16 }
  0xa4   : > { %6205 = vmatpush3.bf16.msra.mxu1 %v6616_v40  ;;  %v1506_v40 = vshll.u32 %v6645_v33, 16  ;;  %v6669_v33 = vld [vmem:[%s6967_s18 + $0x18] sm:$0xff]  }
  0xa5   : > { %6115 = vmatmul.mubr.bf16.gmra.mxu0 %v1033_v42  ;;  %6206 = vmatprep.subr.bf16.mxu1 %v6779_v16  ;;  %v6644_v42 = vld [vmem:[%s6969_s24 + $0x1f0] sm:$0xff]  }
  0xa6   : > { %6151 = vmatmul.mubr.bf16.gmra.mxu1 %v1256_v44  ;;  %6171 = vmatpush3.bf16.msra.mxu0 %v6615_v43  ;;  %v6650_v43 = vld [vmem:[%s6967_s18 + $0x24] sm:$0xff]   ;;  %v1501_v44 = vsel %vm1475_vm3, %v1491_v24, %v1500_v38  ;;  %v1508_v47 = vrot.slane %v1506_v40, 2  ;;  %v6663_v24 = vld [vmem:[%s6969_s24 + $0x1c0] sm:$0xff]  }
  0xa7   : > { %6118 = vmatprep.mubr.msk.bf16.mxu0 %vm6780_vm0, %v6779_v16  ;;  %6172 = vmatprep.subr.bf16.mxu0 %v6779_v16 }
  0xa8   : > { %6154 = vmatprep.mubr.msk.bf16.mxu1 %vm6780_vm0, %v6779_v16  ;;  %6207 = vmatpush3.bf16.msra.mxu1 %v6620_v46  ;;  %v1505_v46 = vrot.slane %v1503_v39, 1  ;;  %v2210_v39 = vshll.u32 %v6669_v33, 16 }
  0xa9   : > { %6208 = vmatprep.subr.bf16.mxu1 %v6779_v16 }
  0xaa   : > { %6173 = vmatpush3.bf16.msra.mxu0 %v6618_v48  ;;  %v1746_v48 = vsel %vm1741_vm4, %v1743_v28, %v1745_v41  ;;  %v1509_v53 = vor.u32 %v1508_v47, %v1505_v46  ;;  %v6662_v28 = vld [vmem:[%s6967_s18 + $0x10] sm:$0xff]   ;;  %v6673_v46 = vld [vmem:[%s6967_s18 + $0x20] sm:$0xff]  }
  0xab   : > { %6174 = vmatprep.subr.bf16.mxu0 %v6779_v16  ;;  %v1966_v35 = vrot.slane %v6662_v28, 2  ;;  %v6667_v47 = vld [vmem:[%s6969_s24 + $0x230] sm:$0xff]   ;;  %v2455_v28 = vrot.slane %v6682_v23, 3 }
  0xac   : > { %6209 = vmatpush3.bf16.msra.mxu1 %v6623_v50  ;;  %v6648_v50 = vld [vmem:[%s6969_s24 + $0x1e8] sm:$0xff]   ;;  %v1510_v61 = vsel %vm1475_vm3, %v1500_v38, %v1509_v53  ;;  %v2207_v38 = vshrl.u32 %v6669_v33, 16 }
  0xad   : > { %6119 = vmatmul.mubr.bf16.gmra.mxu0 %v1035_v52  ;;  %6210 = vmatprep.subr.bf16.mxu1 %v6779_v16  ;;  %v1515_v52 = vshll.u32 %v6650_v43, 16  ;;  %v6686_v33 = vld [vmem:[%s6967_s18 + $0x18] sm:$0xff]  }
  0xae   : > { %6155 = vmatmul.mubr.bf16.gmra.mxu1 %v1258_v55  ;;  %6175 = vmatpush3.bf16.msra.mxu0 %v6621_v51  ;;  %v1512_v51 = vshrl.u32 %v6650_v43, 16  ;;  %v1747_v55 = vrot.slane %v6647_v49, 2 }
  0xaf   : > { %6122 = vmatprep.mubr.msk.bf16.mxu0 %vm6780_vm0, %v6779_v16  ;;  %6176 = vmatprep.subr.bf16.mxu0 %v6779_v16 }
  0xb0   : > { %6158 = vmatprep.mubr.msk.bf16.mxu1 %vm6780_vm0, %v6779_v16  ;;  %6211 = vmatpush3.bf16.msra.mxu1 %v6626_v56  ;;  %v6651_v56 = vld [vmem:[%s6969_s24 + $0x1e0] sm:$0xff]   ;;  %v1514_v58 = vrot.slane %v1512_v51, 1  ;;  %v1748_v62 = vsel %vm1741_vm4, %v1745_v41, %v1747_v55  ;;  %v6664_v41 = vld [vmem:[%s6969_s24 + $0x238] sm:$0xff]   ;;  %v2219_v51 = vshll.u32 %v6673_v46, 16 }
  0xb1   : > { %6212 = vmatprep.subr.bf16.mxu1 %v6779_v16 }
  0xb2   : > { %6177 = vmatpush3.bf16.msra.mxu0 %v6624_v57  ;;  %v6649_v57 = vld [vmem:[%s6969_s24 + $0x198] sm:$0xff]  }
  0xb3   : > { %6178 = vmatprep.subr.bf16.mxu0 %v6779_v16 }
  0xb4   : > { %6213 = vmatpush3.bf16.msra.mxu1 %v6629_v59  ;;  %v1517_v59 = vrot.slane %v1515_v52, 2 }
  0xb5   : > { %6123 = vmatmul.mubr.bf16.gmra.mxu0 %v1037_v1  ;;  %6214 = vmatprep.subr.bf16.mxu1 %v6779_v16 }
  0xb6   : > { %6159 = vmatmul.mubr.bf16.gmra.mxu1 %v1260_v2  ;;  %6126 = vmatprep.mubr.msk.bf16.mxu0 %vm6780_vm0, %v6779_v16  ;;  %v1518_v1 = vor.u32 %v1517_v59, %v1514_v58  ;;  %v6652_v2 = vld [vmem:[%s6969_s24 + $0x190] sm:$0xff]  }
  0xb7   : > { %6179 = vmatpush3.bf16.msra.mxu0 %v6627_v3  ;;  %6162 = vmatprep.mubr.msk.bf16.mxu1 %vm6780_vm0, %v6779_v16  ;;  %v1521_v3 = vshrl.u32 %v6656_v60, 16  ;;  %v6677_v58 = vld [vmem:[%s6967_s18 + $0x28] sm:$0xff]   ;;  %v6672_v60 = vld [vmem:[%s6969_s24 + $0x220] sm:$0xff]  }
  0xb8   : > { %6180 = vmatprep.subr.bf16.mxu0 %v6779_v16  ;;  %6215 = vmatpush3.bf16.msra.mxu1 %v6632_v5  ;;  %v1749_v5 = vrot.slane %v6653_v63, 2  ;;  %v1519_v7 = vsel %vm1475_vm3, %v1509_v53, %v1518_v1  ;;  %v6670_v53 = vld [vmem:[%s6969_s24 + $0x228] sm:$0xff]   ;;  %v2228_v63 = vshll.u32 %v6677_v58, 16 }
  0xb9   : > { %6216 = vmatprep.subr.bf16.mxu1 %v6779_v16  ;;  %v1523_v8 = vrot.slane %v1521_v3, 1 }
  0xba   : > { %v1750_v11 = vsel %vm1741_vm4, %v1747_v55, %v1749_v5 }
  0xbb   : > { %6181 = vmatpush3.bf16.msra.mxu0 %v6631_v9  ;;  %v1526_v9 = vrot.slane %v1524_v4, 2 }
  0xbc   : > { %6217 = vmatpush3.bf16.msra.mxu1 %v6635_v13  ;;  %6238 = vmatprep.subr.bf16.mxu0 %v6779_v16  ;;  %v6665_v13 = vld [vmem:[%s6967_s18 + $0x8] sm:$0xfc]  }
  0xbd   : > { %6127 = vmatmul.mubr.bf16.gmra.mxu0 %v1039_v18  ;;  %6274 = vmatprep.subr.bf16.mxu1 %v6779_v16  ;;  %v1527_v17 = vor.u32 %v1526_v9, %v1523_v8  ;;  %v1751_v18 = vrot.slane %v6658_v10, 2  ;;  %v2190_v20 = vshrl.u32 %v6665_v13, 16  ;;  %v6676_v8 = vld [vmem:[%s6969_s24 + $0x210] sm:$0xff]  }
  0xbe   : > { %6163 = vmatmul.mubr.bf16.gmra.mxu1 %v1262_v21  ;;  %6182 = vmatprep.mubr.msk.bf16.mxu0 %vm6780_vm0, %v6779_v16  ;;  %v2193_v21 = vshll.u32 %v6665_v13, 16  ;;  %v6679_v13 = vld [vmem:[%s6967_s18 + $0x30] ss:$0 sps:$4 sm:$0x33]  }
  0xbf   : > { %6218 = vmatprep.mubr.msk.bf16.mxu1 %vm6780_vm0, %v6779_v16  ;;  %v1528_v25 = vsel %vm1475_vm3, %v1518_v1, %v1527_v17  ;;  %v1752_v26 = vsel %vm1741_vm4, %v1749_v5, %v1751_v18  ;;  %v6674_v1 = vld [vmem:[%s6969_s24 + $0x218] sm:$0xff]   ;;  %v2230_v5 = vrot.slane %v2228_v63, 3 }
  0xc5   : > { %6183 = vmatmul.mubr.bf16.vlgmr.msra.gmra.mxu0 %v1492_v29  ;;  %v2192_v29 = vrot.slane %v2190_v20, 2 }
  0xc6   : > { %6239 = vmatpush3.bf16.msra.mxu0 %v6636_v30  ;;  %6219 = vmatmul.mubr.bf16.vlgmr.msra.gmra.mxu1 %v1744_v34  ;;  %v2195_v30 = vrot.slane %v2193_v21, 3  ;;  %v1965_v34 = vrot.slane %v6661_v27, 2  ;;  %v6681_v21 = vld [vmem:[%s6969_s24 + $0x200] sm:$0xff]   ;;  %v6685_v27 = vld [vmem:[%s6967_s18 + $0x28] sm:$0xff]  }
  0xc7   : > { %6240 = vmatprep.subr.bf16.mxu0 %v6779_v16  ;;  %6186 = vmatprep.mubr.msk.bf16.mxu0 %vm6780_vm0, %v6779_v16 }
  0xc8   : > { %6275 = vmatpush3.bf16.msra.mxu1 %v6641_v36  ;;  %6222 = vmatprep.mubr.msk.bf16.mxu1 %vm6780_vm0, %v6779_v16  ;;  %v2196_v36 = vor.u32 %v2195_v30, %v2192_v29  ;;  %v1967_v40 = vsel %vm1741_vm4, %v1965_v34, %v1966_v35 }
  0xc9   : > { %6276 = vmatprep.subr.bf16.mxu1 %v6779_v16 }
  0xca   : > { %6241 = vmatpush3.bf16.msra.mxu0 %v6639_v37  ;;  %v2204_v37 = vor.u32 %v2203_v32, %v2200_v31  ;;  %v2462_v31 = vrot.slane %v6685_v27, 3 }
  0xcb   : > { %6242 = vmatprep.subr.bf16.mxu0 %v6779_v16 }
  0xcc   : > { %6277 = vmatpush3.bf16.msra.mxu1 %v6644_v42  ;;  %v6668_v42 = vld [vmem:[%s6967_s18 + $0x18] sm:$0xff]   ;;  %v2205_v43 = vsel %vm2188_vm5, %v2196_v36, %v2204_v37  ;;  %v2458_v36 = vrot.slane %v6686_v33, 3 }
  0xcd   : > { %6187 = vmatmul.mubr.bf16.gmra.mxu0 %v1501_v44  ;;  %6278 = vmatprep.subr.bf16.mxu1 %v6779_v16  ;;  %v2209_v44 = vrot.slane %v2207_v38, 2 }
  0xce   : > { %6223 = vmatmul.mubr.bf16.gmra.mxu1 %v1746_v48  ;;  %6243 = vmatpush3.bf16.msra.mxu0 %v6643_v45  ;;  %v2212_v45 = vrot.slane %v2210_v39, 3  ;;  %v1968_v48 = vrot.slane %v6668_v42, 2 }
  0xcf   : > { %6190 = vmatprep.mubr.msk.bf16.mxu0 %vm6780_vm0, %v6779_v16  ;;  %6244 = vmatprep.subr.bf16.mxu0 %v6779_v16 }
  0xd0   : > { %6226 = vmatprep.mubr.msk.bf16.mxu1 %vm6780_vm0, %v6779_v16  ;;  %6279 = vmatpush3.bf16.msra.mxu1 %v6648_v50  ;;  %v2213_v49 = vor.u32 %v2212_v45, %v2209_v44  ;;  %v2216_v50 = vshrl.u32 %v6673_v46, 16  ;;  %v1969_v52 = vsel %vm1741_vm4, %v1966_v35, %v1968_v48  ;;  %v6687_v35 = vld [vmem:[%s6967_s18 + $0x30] ss:$0 sps:$4 sm:$0x77]  }
  0xd1   : > { %6280 = vmatprep.subr.bf16.mxu1 %v6779_v16  ;;  %v509_v46 = vld [vmem:[#allocation2] sm:$0xff] }
  0xd2   : > { %6245 = vmatpush3.bf16.msra.mxu0 %v6646_v54  ;;  %v6671_v54 = vld [vmem:[%s6967_s18 + $0x20] sm:$0xff]   ;;  %v2214_v55 = vsel %vm2188_vm5, %v2204_v37, %v2213_v49  ;;  %v2464_v37 = vrot.slane %v6687_v35, 3 }
  0xd3   : > { %6246 = vmatprep.subr.bf16.mxu0 %v6779_v16  ;;  %v1970_v59 = vrot.slane %v6671_v54, 2 }
  0xd4   : > { %6281 = vmatpush3.bf16.msra.mxu1 %v6651_v56  ;;  %v2218_v56 = vrot.slane %v2216_v50, 2  ;;  %v2465_v39 = vsel %vm2454_vm6, %v2462_v31, %v2464_v37 }
  0xd5   : > { %6191 = vmatmul.mubr.bf16.gmra.mxu0 %v1510_v61  ;;  %6282 = vmatprep.subr.bf16.mxu1 %v6779_v16 }
  0xd6   : > { %6227 = vmatmul.mubr.bf16.gmra.mxu1 %v1748_v62  ;;  %6247 = vmatpush3.bf16.msra.mxu0 %v6649_v57  ;;  %v2221_v57 = vrot.slane %v2219_v51, 3  ;;  %v2225_v62 = vshrl.u32 %v6677_v58, 16 }
  0xd7   : > { %6194 = vmatprep.mubr.msk.bf16.mxu0 %vm6780_vm0, %v6779_v16  ;;  %6248 = vmatprep.subr.bf16.mxu0 %v6779_v16 }
  0xd8   : > { %6230 = vmatprep.mubr.msk.bf16.mxu1 %vm6780_vm0, %v6779_v16  ;;  %6283 = vmatpush3.bf16.msra.mxu1 %v6654_v0  ;;  %v2222_v61 = vor.u32 %v2221_v57, %v2218_v56  ;;  %v1971_v0 = vsel %vm1741_vm4, %v1968_v48, %v1970_v59  ;;  %v2227_v4 = vrot.slane %v2225_v62, 2 }
  0xd9   : > { %6284 = vmatprep.subr.bf16.mxu1 %v6779_v16 }
  0xda   : > { %6249 = vmatpush3.bf16.msra.mxu0 %v6652_v2  ;;  %v6675_v2 = vld [vmem:[%s6967_s18 + $0x28] sm:$0xff]   ;;  %v2223_v3 = vsel %vm2188_vm5, %v2213_v49, %v2222_v61  ;;  %v2231_v9 = vor.u32 %v2230_v5, %v2227_v4 }
  0xdb   : > { %6250 = vmatprep.subr.bf16.mxu0 %v6779_v16 }
  0xdc   : > { %6285 = vmatpush3.bf16.msra.mxu1 %v6657_v6  ;;  %v6680_v6 = vld [vmem:[%s6967_s18 + $0x30] ss:$0 sps:$4 sm:$0x77]   ;;  %v2232_v14 = vsel %vm2188_vm5, %v2222_v61, %v2231_v9 }
  0xdd   : > { %6195 = vmatmul.mubr.bf16.gmra.mxu0 %v1519_v7  ;;  %6286 = vmatprep.subr.bf16.mxu1 %v6779_v16  ;;  %v1972_v7 = vrot.slane %v6675_v2, 2  ;;  %v2234_v10 = vshrl.u32 %v6680_v6, 16  ;;  %v512_v2 = vld [vmem:[#allocation2 + $0x48] sm:$0xff] }
  0xde   : > { %6231 = vmatmul.mubr.bf16.gmra.mxu1 %v1750_v11  ;;  %6198 = vmatprep.mubr.msk.bf16.mxu0 %vm6780_vm0, %v6779_v16  ;;  %v2237_v11 = vshll.u32 %v6680_v6, 16 }
  0xdf   : > { %6251 = vmatpush3.bf16.msra.mxu0 %v6655_v12  ;;  %6234 = vmatprep.mubr.msk.bf16.mxu1 %vm6780_vm0, %v6779_v16  ;;  %v1973_v12 = vsel %vm1741_vm4, %v1970_v59, %v1972_v7  ;;  %v2236_v17 = vrot.slane %v2234_v10, 2  ;;  %v511_v59 = vld [vmem:[#allocation2 + $0x10] sm:$0xff] }
  0xe0   : > { %6252 = vmatprep.subr.bf16.mxu0 %v6779_v16  ;;  %6287 = vmatpush3.bf16.msra.mxu1 %v6660_v15  ;;  %v6678_v15 = vld [vmem:[%s6969_s24 + $0x208] sm:$0xff]   ;;  %v2239_v18 = vrot.slane %v2237_v11, 3 }
  0xe1   : > { %6288 = vmatprep.subr.bf16.mxu1 %v6779_v16 }
  0xe2   : > { %v2240_v20 = vor.u32 %v2239_v18, %v2236_v17  ;;  %v514_v17 = vld [vmem:[#allocation2 + $0x8] sm:$0xff] }
  0xe3   : > { %6253 = vmatpush3.bf16.msra.mxu0 %v6659_v19  ;;  %v1974_v19 = vrot.slane %v6679_v13, 2 }
  0xe4   : > { %6289 = vmatpush3.bf16.msra.mxu1 %v6663_v24  ;;  %6310 = vmatprep.subr.bf16.mxu0 %v6779_v16  ;;  %v6683_v24 = vld [vmem:[%s6967_s18 + $0x10] sm:$0xff]  }
  0xe5   : > { %6199 = vmatmul.mubr.bf16.gmra.mxu0 %v1528_v25  ;;  %6426 = vmatprep.subr.bf16.mxu1 %v6779_v16  ;;  %v1975_v22 = vsel %vm1741_vm4, %v1972_v7, %v1974_v19  ;;  %v2241_v25 = vsel %vm2188_vm5, %v2231_v9, %v2240_v20  ;;  %v2456_v29 = vrot.slane %v6683_v24, 3  ;;  %v513_v9 = vld [vmem:[#allocation2 + $0x28] sm:$0xff]  ;;  %v515_v24 = vld [vmem:[#allocation2 + $0x20] sm:$0xff] }
  0xe6   : > { %6235 = vmatmul.mubr.bf16.gmra.mxu1 %v1752_v26  ;;  %6254 = vmatprep.mubr.msk.bf16.mxu0 %vm6780_vm0, %v6779_v16  ;;  %v6684_v26 = vld [vmem:[%s6967_s18 + $0x20] sm:$0xff]   ;;  %s6792_s18 = smov (!%p5820_p4), 72  }
  0xe7   : > { %6290 = vmatprep.mubr.msk.bf16.mxu1 %vm6780_vm0, %v6779_v16  ;;  %v2460_v30 = vrot.slane %v6684_v26, 3  ;;  %v2457_v32 = vsel %vm2454_vm6, %v2455_v28, %v2456_v29  ;;  %v2459_v38 = vsel %vm2454_vm6, %v2456_v29, %v2458_v36 }
  0xe9   : > { %v2463_v34 = vsel %vm2454_vm6, %v2460_v30, %v2462_v31  ;;  %v516_v31 = vld [vmem:[#allocation2 + $0x40] sm:$0xff] }
  0xed   : > { %6255 = vmatmul.mubr.bf16.vlgmr.msra.gmra.mxu0 %v1967_v40  ;;  %v2461_v40 = vsel %vm2454_vm6, %v2458_v36, %v2460_v30 }
  0xee   : > { %6311 = vmatpush3.bf16.msra.mxu0 %v6664_v41  ;;  %6291 = vmatmul.mubr.bf16.vlgmr.msra.gmra.mxu1 %v2205_v43 }
  0xef   : > { %6312 = vmatprep.subr.bf16.mxu0 %v6779_v16  ;;  %6258 = vmatprep.mubr.msk.bf16.mxu0 %vm6780_vm0, %v6779_v16 }
  0xf0   : > { %6434 = vmatpush3.bf16.msra.mxu1 %v6664_v41  ;;  %6294 = vmatprep.mubr.msk.bf16.mxu1 %vm6780_vm0, %v6779_v16  ;;  %v508_v41 = vld [vmem:[#allocation2 + $0x30] sm:$0xff] }
  0xf1   : > { %6427 = vmatprep.subr.bf16.mxu1 %v6779_v16 }
  0xf2   : > { %6313 = vmatpush3.bf16.msra.mxu0 %v6667_v47 }
  0xf3   : > { %6314 = vmatprep.subr.bf16.mxu0 %v6779_v16 }
  0xf4   : > { %6435 = vmatpush3.bf16.msra.mxu1 %v6667_v47 }
  0xf5   : > { %6259 = vmatmul.mubr.bf16.gmra.mxu0 %v1969_v52  ;;  %6428 = vmatprep.subr.bf16.mxu1 %v6779_v16 }
  0xf6   : > { %6295 = vmatmul.mubr.bf16.gmra.mxu1 %v2214_v55  ;;  %6315 = vmatpush3.bf16.msra.mxu0 %v6670_v53 }
  0xf7   : > { %6262 = vmatprep.mubr.msk.bf16.mxu0 %vm6780_vm0, %v6779_v16  ;;  %6316 = vmatprep.subr.bf16.mxu0 %v6779_v16 }
  0xf8   : > { %6298 = vmatprep.mubr.msk.bf16.mxu1 %vm6780_vm0, %v6779_v16  ;;  %6436 = vmatpush3.bf16.msra.mxu1 %v6670_v53  ;;  %v510_v53 = vld [vmem:[#allocation2 + $0x18] sm:$0xff] }
  0xf9   : > { %6429 = vmatprep.subr.bf16.mxu1 %v6779_v16 }
  0xfa   : > { %6317 = vmatpush3.bf16.msra.mxu0 %v6672_v60 }
  0xfb   : > { %6318 = vmatprep.subr.bf16.mxu0 %v6779_v16 }
  0xfc   : > { %6437 = vmatpush3.bf16.msra.mxu1 %v6672_v60 }
  0xfd   : > { %6263 = vmatmul.mubr.bf16.gmra.mxu0 %v1971_v0  ;;  %6430 = vmatprep.subr.bf16.mxu1 %v6779_v16 }
  0xfe   : > { %6299 = vmatmul.mubr.bf16.gmra.mxu1 %v2223_v3  ;;  %6319 = vmatpush3.bf16.msra.mxu0 %v6674_v1 }
  0xff   : > { %6266 = vmatprep.mubr.msk.bf16.mxu0 %vm6780_vm0, %v6779_v16  ;;  %6320 = vmatprep.subr.bf16.mxu0 %v6779_v16 }
 0x100   : > { %6302 = vmatprep.mubr.msk.bf16.mxu1 %vm6780_vm0, %v6779_v16  ;;  %6438 = vmatpush3.bf16.msra.mxu1 %v6674_v1 }
 0x101   : > { %6431 = vmatprep.subr.bf16.mxu1 %v6779_v16 }
 0x102   : > { %6321 = vmatpush3.bf16.msra.mxu0 %v6676_v8 }
 0x103   : > { %6322 = vmatprep.subr.bf16.mxu0 %v6779_v16 }
 0x104   : > { %6439 = vmatpush3.bf16.msra.mxu1 %v6676_v8 }
 0x105   : > { %6267 = vmatmul.mubr.bf16.gmra.mxu0 %v1973_v12  ;;  %6432 = vmatprep.subr.bf16.mxu1 %v6779_v16 }
 0x106   : > { %6303 = vmatmul.mubr.bf16.gmra.mxu1 %v2232_v14  ;;  %6270 = vmatprep.mubr.msk.bf16.mxu0 %vm6780_vm0, %v6779_v16 }
 0x107   : > { %6323 = vmatpush3.bf16.msra.mxu0 %v6678_v15  ;;  %6306 = vmatprep.mubr.msk.bf16.mxu1 %vm6780_vm0, %v6779_v16 }
 0x108   : > { %6324 = vmatprep.subr.bf16.mxu0 %v6779_v16  ;;  %6440 = vmatpush3.bf16.msra.mxu1 %v6678_v15 }
 0x109   : > { %6433 = vmatprep.subr.bf16.mxu1 %v6779_v16 }
 0x10b   : > { %6325 = vmatpush3.bf16.msra.mxu0 %v6681_v21 }
 0x10c   : > { %6441 = vmatpush3.bf16.msra.mxu1 %v6681_v21 }
 0x10d   : > { %6271 = vmatmul.mubr.bf16.gmra.mxu0 %v1975_v22 }
 0x10e   : > { %6307 = vmatmul.mubr.bf16.gmra.mxu1 %v2241_v25  ;;  %6326 = vmatprep.mubr.msk.bf16.mxu0 %vm6780_vm0, %v6779_v16 }
 0x10f   : > { %6338 = vmatprep.mubr.msk.bf16.mxu1 %vm6780_vm0, %v6779_v16 }
 0x115   : > { %6327 = vmatmul.mubr.bf16.vlgmr.msra.gmra.mxu0 %v2457_v32 }
 0x116   : > { %6339 = vmatmul.mubr.bf16.vlgmr.msra.gmra.mxu1 %v2463_v34  ;;  %6330 = vmatprep.mubr.msk.bf16.mxu0 %vm6780_vm0, %v6779_v16 }
 0x117   : > { %6342 = vmatprep.mubr.msk.bf16.mxu1 %vm6780_vm0, %v6779_v16 }
 0x11d   : > { %6331 = vmatmul.mubr.bf16.gmra.mxu0 %v2459_v38  ;;  %v517_v38 = vld [vmem:[#allocation2 + $0x38] sm:$0xff] }
 0x11e   : > { %6343 = vmatmul.mubr.bf16.gmra.mxu1 %v2465_v39  ;;  %6334 = vmatprep.mubr.msk.bf16.mxu0 %vm6780_vm0, %v6779_v16 }
 0x125   : > { %6335 = vmatmul.mubr.bf16.gmra.mxu0 %v2461_v40 }
 0x135   : > { %v646_v42 = vpop.f32.mrf.mxu0 }
 0x136   : > { %v685_v43 = vadd.f32 %v646_v42, %v508_v41  ;;  %v903_v44 = vpop.f32.mrf.mxu1 }
 0x137   : > { %v6040_v45 = vpop.f32.mrf.mxu0 }
 0x138   : > { %v7318_v47 = vadd.f32 %v903_v44, %v685_v43  ;;  %v6076_v48 = vpop.f32.mrf.mxu1 }
 0x139   : > { %v649_v49 = vpop.f32.mrf.mxu0 }
 0x13a   : > { %v686_v50 = vadd.f32 %v649_v49, %v509_v46  ;;  %v906_v51 = vpop.f32.mrf.mxu1 }
 0x13b   : > { %v6041_v52 = vpop.f32.mrf.mxu0 }
 0x13c   : > { %v7320_v54 = vadd.f32 %v906_v51, %v686_v50  ;;  %v6077_v16 = vpop.f32.mrf.mxu1 }
 0x13d   : > { %v654_v55 = vpop.f32.mrf.mxu0 }
 0x13e   : > { %v687_v56 = vadd.f32 %v654_v55, %v510_v53  ;;  %v911_v57 = vpop.f32.mrf.mxu1 }
 0x13f   : > { %v6044_v58 = vpop.f32.mrf.mxu0 }
 0x140   : > { %v7322_v60 = vadd.f32 %v911_v57, %v687_v56  ;;  %v6080_v61 = vpop.f32.mrf.mxu1 }
 0x141   : > { %v657_v62 = vpop.f32.mrf.mxu0 }
 0x142   : > { %v688_v63 = vadd.f32 %v657_v62, %v511_v59  ;;  %v914_v0 = vpop.f32.mrf.mxu1 }
 0x143   : > { %v6045_v1 = vpop.f32.mrf.mxu0 }
 0x144   : > { %v945_v3 = vadd.f32 %v914_v0, %v688_v63  ;;  %v6081_v4 = vpop.f32.mrf.mxu1 }
 0x145   : > { %v662_v5 = vpop.f32.mrf.mxu0 }
 0x146   : > { %v689_v6 = vadd.f32 %v662_v5, %v512_v2  ;;  %v919_v7 = vpop.f32.mrf.mxu1 }
 0x147   : > { %v6048_v8 = vpop.f32.mrf.mxu0 }
 0x148   : > { %v946_v10 = vadd.f32 %v919_v7, %v689_v6  ;;  %v6084_v11 = vpop.f32.mrf.mxu1 }
 0x149   : > { %v665_v12 = vpop.f32.mrf.mxu0 }
 0x14a   : > { %v690_v13 = vadd.f32 %v665_v12, %v513_v9  ;;  %v922_v14 = vpop.f32.mrf.mxu1 }
 0x14b   : > { %v6049_v15 = vpop.f32.mrf.mxu0 }
 0x14c   : > { %v947_v18 = vadd.f32 %v922_v14, %v690_v13  ;;  %v6085_v19 = vpop.f32.mrf.mxu1 }
 0x14d   : > { %v670_v20 = vpop.f32.mrf.mxu0 }
 0x14e   : > { %v691_v21 = vadd.f32 %v670_v20, %v514_v17  ;;  %v927_v22 = vpop.f32.mrf.mxu1 }
 0x14f   : > { %v6052_v23 = vpop.f32.mrf.mxu0 }
 0x150   : > { %v948_v25 = vadd.f32 %v927_v22, %v691_v21  ;;  %v6088_v26 = vpop.f32.mrf.mxu1 }
 0x151   : > { %v673_v27 = vpop.f32.mrf.mxu0 }
 0x152   : > { %v692_v28 = vadd.f32 %v673_v27, %v515_v24  ;;  %v930_v29 = vpop.f32.mrf.mxu1 }
 0x153   : > { %v6053_v30 = vpop.f32.mrf.mxu0 }
 0x154   : > { %v949_v32 = vadd.f32 %v930_v29, %v692_v28  ;;  %v6089_v33 = vpop.f32.mrf.mxu1 }
 0x155   : > { %v678_v34 = vpop.f32.mrf.mxu0 }
 0x156   : > { %v693_v35 = vadd.f32 %v678_v34, %v516_v31  ;;  %v935_v36 = vpop.f32.mrf.mxu1 }
 0x157   : > { %v6056_v37 = vpop.f32.mrf.mxu0 }
 0x158   : > { %v950_v39 = vadd.f32 %v935_v36, %v693_v35  ;;  %v6092_v40 = vpop.f32.mrf.mxu1 }
 0x159   : > { %v681_v41 = vpop.f32.mrf.mxu0 }
 0x15a   : > { %v694_v42 = vadd.f32 %v681_v41, %v517_v38  ;;  %v938_v43 = vpop.f32.mrf.mxu1 }
 0x15b   : > { %v6057_v44 = vpop.f32.mrf.mxu0 }
 0x15c   : > { %v951_v45 = vadd.f32 %v938_v43, %v694_v42  ;;  %v6093_v46 = vpop.f32.mrf.mxu1 }
 0x15d   : > { %v1127_v48 = vpop.f32.mrf.mxu0 }
 0x15e   : > { %v1166_v49 = vadd.f32 %v1127_v48, %v7318_v47  ;;  %v1350_v50 = vpop.f32.mrf.mxu1 }
 0x15f   : > { %v6112_v51 = vpop.f32.mrf.mxu0 }
 0x160   : > { %v1389_v52 = vadd.f32 %v1350_v50, %v1166_v49  ;;  %v6148_v53 = vpop.f32.mrf.mxu1 }
 0x161   : > { %v1130_v16 = vpop.f32.mrf.mxu0 }
 0x162   : > { %v1167_v55 = vadd.f32 %v1130_v16, %v7320_v54  ;;  %v1353_v56 = vpop.f32.mrf.mxu1 }
 0x163   : > { %v6113_v57 = vpop.f32.mrf.mxu0 }
 0x164   : > { %v1390_v58 = vadd.f32 %v1353_v56, %v1167_v55  ;;  %v6149_v59 = vpop.f32.mrf.mxu1 }
 0x165   : > { %v1135_v61 = vpop.f32.mrf.mxu0 }
 0x166   : > { %v1168_v62 = vadd.f32 %v1135_v61, %v7322_v60  ;;  %v1358_v63 = vpop.f32.mrf.mxu1 }
 0x167   : > { %v6116_v0 = vpop.f32.mrf.mxu0 }
 0x168   : > { %v1391_v1 = vadd.f32 %v1358_v63, %v1168_v62  ;;  %v6152_v2 = vpop.f32.mrf.mxu1 }
 0x169   : > { %v1138_v4 = vpop.f32.mrf.mxu0 }
 0x16a   : > { %v1169_v47 = vadd.f32 %v1138_v4, %v945_v3  ;;  %v1361_v5 = vpop.f32.mrf.mxu1 }
 0x16b   : > { %v6117_v6 = vpop.f32.mrf.mxu0 }
 0x16c   : > { %v1392_v7 = vadd.f32 %v1361_v5, %v1169_v47  ;;  %v6153_v8 = vpop.f32.mrf.mxu1 }
 0x16d   : > { %v1143_v9 = vpop.f32.mrf.mxu0 }
 0x16e   : > { %v1170_v11 = vadd.f32 %v1143_v9, %v946_v10  ;;  %v1366_v54 = vpop.f32.mrf.mxu1 }
 0x16f   : > { %v6120_v12 = vpop.f32.mrf.mxu0 }
 0x170   : > { %v1393_v13 = vadd.f32 %v1366_v54, %v1170_v11  ;;  %v6156_v14 = vpop.f32.mrf.mxu1 }
 0x171   : > { %v1146_v15 = vpop.f32.mrf.mxu0 }
 0x172   : > { %v1171_v17 = vadd.f32 %v1146_v15, %v947_v18  ;;  %v1369_v19 = vpop.f32.mrf.mxu1 }
 0x173   : > { %v6121_v60 = vpop.f32.mrf.mxu0 }
 0x174   : > { %v1394_v20 = vadd.f32 %v1369_v19, %v1171_v17  ;;  %v6157_v21 = vpop.f32.mrf.mxu1 }
 0x175   : > { %v1151_v22 = vpop.f32.mrf.mxu0 }
 0x176   : > { %v1172_v23 = vadd.f32 %v1151_v22, %v948_v25  ;;  %v1374_v24 = vpop.f32.mrf.mxu1 }
 0x177   : > { %v6124_v3 = vpop.f32.mrf.mxu0 }
 0x178   : > { %v7327_v26 = vadd.f32 %v1374_v24, %v1172_v23  ;;  %v6160_v27 = vpop.f32.mrf.mxu1 }
 0x179   : > { %v1154_v28 = vpop.f32.mrf.mxu0 }
 0x17a   : > { %v1173_v29 = vadd.f32 %v1154_v28, %v949_v32  ;;  %v1377_v10 = vpop.f32.mrf.mxu1 }
 0x17b   : > { %v6125_v30 = vpop.f32.mrf.mxu0 }
 0x17c   : > { %v7329_v31 = vadd.f32 %v1377_v10, %v1173_v29  ;;  %v6161_v33 = vpop.f32.mrf.mxu1 }
 0x17d   : > { %v1159_v34 = vpop.f32.mrf.mxu0 }
 0x17e   : > { %v1174_v18 = vadd.f32 %v1159_v34, %v950_v39  ;;  %v1382_v35 = vpop.f32.mrf.mxu1 }
 0x17f   : > { %v6128_v36 = vpop.f32.mrf.mxu0 }
 0x180   : > { %v7331_v37 = vadd.f32 %v1382_v35, %v1174_v18  ;;  %v6164_v38 = vpop.f32.mrf.mxu1 }
 0x181   : > { %v1162_v25 = vpop.f32.mrf.mxu0 }
 0x182   : > { %v1175_v40 = vadd.f32 %v1162_v25, %v951_v45  ;;  %v1385_v41 = vpop.f32.mrf.mxu1 }
 0x183   : > { %v6129_v42 = vpop.f32.mrf.mxu0 }
 0x184   : > { %v7333_v43 = vadd.f32 %v1385_v41, %v1175_v40  ;;  %v6165_v44 = vpop.f32.mrf.mxu1 }
 0x185   : > { %v1616_v32 = vpop.f32.mrf.mxu0 }
 0x186   : > { %v1655_v46 = vadd.f32 %v1616_v32, %v1389_v52  ;;  %v1840_v48 = vpop.f32.mrf.mxu1 }
 0x187   : > { %v6184_v49 = vpop.f32.mrf.mxu0 }
 0x188   : > { %v7335_v50 = vadd.f32 %v1840_v48, %v1655_v46  ;;  %v6220_v51 = vpop.f32.mrf.mxu1 }
 0x189   : > { %v1619_v39 = vpop.f32.mrf.mxu0 }
 0x18a   : > { %v1656_v53 = vadd.f32 %v1619_v39, %v1390_v58  ;;  %v1843_v16 = vpop.f32.mrf.mxu1 }
 0x18b   : > { %v6185_v55 = vpop.f32.mrf.mxu0 }
 0x18c   : > { %v7337_v56 = vadd.f32 %v1843_v16, %v1656_v53  ;;  %v6221_v57 = vpop.f32.mrf.mxu1 }
 0x18d   : > { %v1624_v45 = vpop.f32.mrf.mxu0 }
 0x18e   : > { %v1657_v59 = vadd.f32 %v1624_v45, %v1391_v1  ;;  %v1848_v61 = vpop.f32.mrf.mxu1 }
 0x18f   : > { %v6188_v62 = vpop.f32.mrf.mxu0 }
 0x190   : > { %v7339_v63 = vadd.f32 %v1848_v61, %v1657_v59  ;;  %v6224_v0 = vpop.f32.mrf.mxu1 }
 0x191   : > { %v1627_v52 = vpop.f32.mrf.mxu0 }
 0x192   : > { %v1658_v2 = vadd.f32 %v1627_v52, %v1392_v7  ;;  %v1851_v4 = vpop.f32.mrf.mxu1 }
 0x193   : > { %v6189_v47 = vpop.f32.mrf.mxu0 }
 0x194   : > { %v7341_v5 = vadd.f32 %v1851_v4, %v1658_v2  ;;  %v6225_v6 = vpop.f32.mrf.mxu1 }
 0x195   : > { %v1632_v58 = vpop.f32.mrf.mxu0 }
 0x196   : > { %v1659_v8 = vadd.f32 %v1632_v58, %v1393_v13  ;;  %v1856_v9 = vpop.f32.mrf.mxu1 }
 0x197   : > { %v6192_v11 = vpop.f32.mrf.mxu0 }
 0x198   : > { %v7343_v54 = vadd.f32 %v1856_v9, %v1659_v8  ;;  %v6228_v12 = vpop.f32.mrf.mxu1 }
 0x199   : > { %v1635_v1 = vpop.f32.mrf.mxu0 }
 0x19a   : > { %v1660_v14 = vadd.f32 %v1635_v1, %v1394_v20  ;;  %v1859_v15 = vpop.f32.mrf.mxu1 }
 0x19b   : > { %v6193_v17 = vpop.f32.mrf.mxu0 }
 0x19c   : > { %v7345_v19 = vadd.f32 %v1859_v15, %v1660_v14  ;;  %v6229_v60 = vpop.f32.mrf.mxu1 }
 0x19d   : > { %v1640_v7 = vpop.f32.mrf.mxu0 }
 0x19e   : > { %v1864_v21 = vpop.f32.mrf.mxu1  ;;  %v1661_v9 = vadd.f32 %v1640_v7, %v7327_v26 }
 0x19f   : > { %v6196_v22 = vpop.f32.mrf.mxu0 }
 0x1a0   : > { %v6232_v23 = vpop.f32.mrf.mxu1  ;;  %v1885_v15 = vadd.f32 %v1864_v21, %v1661_v9 }
 0x1a1   : > { %v1643_v24 = vpop.f32.mrf.mxu0 }
 0x1a2   : > { %v1867_v3 = vpop.f32.mrf.mxu1  ;;  %v1662_v17 = vadd.f32 %v1643_v24, %v7329_v31 }
 0x1a3   : > { %v6197_v27 = vpop.f32.mrf.mxu0 }
 0x1a4   : > { %v6233_v13 = vpop.f32.mrf.mxu1 }
 0x1a5   : > { %v1648_v28 = vpop.f32.mrf.mxu0 }
 0x1a6   : > { %v1872_v29 = vpop.f32.mrf.mxu1 }
 0x1a7   : > { %v6200_v10 = vpop.f32.mrf.mxu0 }
 0x1a8   : > { %v6236_v30 = vpop.f32.mrf.mxu1 }
 0x1a9   : > { %v1651_v33 = vpop.f32.mrf.mxu0  ;;  %v1886_v30 = vadd.f32 %v1867_v3, %v1662_v17 }
 0x1aa   : > { %v7347_v34 = vpop.f32.mrf.mxu1 }
 0x1ab   : > { %v6201_v20 = vpop.f32.mrf.mxu0 }
 0x1ac   : > { %v6237_v18 = vpop.f32.mrf.mxu1  ;;  %v1663_v20 = vadd.f32 %v1648_v28, %v7331_v37 }
 0x1ad   : > { %v2063_v35 = vpop.f32.mrf.mxu0 }
 0x1ae   : > { %v2329_v36 = vpop.f32.mrf.mxu1  ;;  %v2102_v22 = vadd.f32 %v2063_v35, %v7335_v50  ;;  %v1887_v24 = vadd.f32 %v1872_v29, %v1663_v20  ;;  %v1664_v50 = vadd.f32 %v1651_v33, %v7333_v43 }
 0x1af   : > { %v6256_v38 = vpop.f32.mrf.mxu0 }
 0x1b0   : > { %v6292_v25 = vpop.f32.mrf.mxu1  ;;  %v2368_v38 = vadd.f32 %v2329_v36, %v2102_v22 }
 0x1b1   : > { %v2066_v40 = vpop.f32.mrf.mxu0 }
 0x1b2   : > { %v2332_v41 = vpop.f32.mrf.mxu1  ;;  %v2103_v26 = vadd.f32 %v2066_v40, %v7337_v56 }
 0x1b3   : > { %v6257_v42 = vpop.f32.mrf.mxu0 }
 0x1b4   : > { %v6293_v44 = vpop.f32.mrf.mxu1 }
 0x1b5   : > { %v2071_v32 = vpop.f32.mrf.mxu0 }
 0x1b6   : > { %v2337_v46 = vpop.f32.mrf.mxu1  ;;  %v2104_v3 = vadd.f32 %v2071_v32, %v7339_v63 }
 0x1b7   : > { %v6260_v48 = vpop.f32.mrf.mxu0 }
 0x1b8   : > { %v6296_v49 = vpop.f32.mrf.mxu1  ;;  %v2370_v29 = vadd.f32 %v2337_v46, %v2104_v3 }
 0x1b9   : > { %v2074_v51 = vpop.f32.mrf.mxu0  ;;  %v2369_v49 = vadd.f32 %v2332_v41, %v2103_v26 }
 0x1ba   : > { %v7349_v39 = vpop.f32.mrf.mxu1  ;;  %v2105_v43 = vadd.f32 %v2074_v51, %v7341_v5 }
 0x1bb   : > { %v6261_v53 = vpop.f32.mrf.mxu0 }
 0x1bc   : > { %v6297_v16 = vpop.f32.mrf.mxu1 }
 0x1bd   : > { %v7351_v55 = vpop.f32.mrf.mxu0  ;;  %v1888_v16 = vadd.f32 %v7347_v34, %v1664_v50 }
 0x1be   : > { %v7353_v57 = vpop.f32.mrf.mxu1  ;;  %v2106_v34 = vadd.f32 %v7351_v55, %v7343_v54 }
 0x1bf   : > { %v6264_v45 = vpop.f32.mrf.mxu0 }
 0x1c0   : > { %v6300_v59 = vpop.f32.mrf.mxu1 }
 0x1c1   : > { %v7355_v61 = vpop.f32.mrf.mxu0 }
 0x1c2   : > { %v7357_v62 = vpop.f32.mrf.mxu1 }
 0x1c3   : > { %v6265_v0 = vpop.f32.mrf.mxu0 }
 0x1c4   : > { %v6301_v52 = vpop.f32.mrf.mxu1 }
 0x1c5   : > { %v2087_v2 = vpop.f32.mrf.mxu0 }
 0x1c6   : > { %v2353_v4 = vpop.f32.mrf.mxu1  ;;  %v2108_v27 = vadd.f32 %v2087_v2, %v1885_v15 }
 0x1c7   : > { %v6268_v47 = vpop.f32.mrf.mxu0 }
 0x1c8   : > { %v6304_v6 = vpop.f32.mrf.mxu1  ;;  %v2374_v25 = vadd.f32 %v2353_v4, %v2108_v27  ;;  %v2371_v47 = vadd.f32 %v7349_v39, %v2105_v43 }
 0x1c9   : > { %v2090_v58 = vpop.f32.mrf.mxu0 }
 0x1ca   : > { %v2356_v8 = vpop.f32.mrf.mxu1  ;;  %v2109_v42 = vadd.f32 %v2090_v58, %v1886_v30 }
 0x1cb   : > { %v6269_v11 = vpop.f32.mrf.mxu0 }
 0x1cc   : > { %v6305_v12 = vpop.f32.mrf.mxu1  ;;  %v2375_v28 = vadd.f32 %v2356_v8, %v2109_v42  ;;  %v2372_v11 = vadd.f32 %v7353_v57, %v2106_v34 }
 0x1cd   : > { %v2095_v1 = vpop.f32.mrf.mxu0  ;;  %v2107_v12 = vadd.f32 %v7355_v61, %v7345_v19 }
 0x1ce   : > { %v2361_v14 = vpop.f32.mrf.mxu1  ;;  %v2110_v36 = vadd.f32 %v2095_v1, %v1887_v24 }
 0x1cf   : > { %v6272_v60 = vpop.f32.mrf.mxu0  ;;  %v2373_v55 = vadd.f32 %v7357_v62, %v2107_v12 }
 0x1d0   : > { %v6308_v23 = vpop.f32.mrf.mxu1  ;;  %v2376_v41 = vadd.f32 %v2361_v14, %v2110_v36 }
 0x1d1   : > { %v2098_v13 = vpop.f32.mrf.mxu0 }
 0x1d2   : > { %v2364_v10 = vpop.f32.mrf.mxu1  ;;  %v2111_v0 = vadd.f32 %v2098_v13, %v1888_v16 }
 0x1d3   : > { %v6273_v18 = vpop.f32.mrf.mxu0 }
 0x1d4   : > { %v6309_v7 = vpop.f32.mrf.mxu1  ;;  %v2377_v46 = vadd.f32 %v2364_v10, %v2111_v0 }
 0x1d5   : > { %v2553_v21 = vpop.f32.mrf.mxu0 }
 0x1d6   : > { %v2592_v44 = vadd.f32 %v2553_v21, %v2368_v38  ;;  %v2577_v31 = vpop.f32.mrf.mxu1 }
 0x1d7   : > { %v6328_v35 = vpop.f32.mrf.mxu0  ;;  %v2598_v48 = vadd.f32 %v2577_v31, %v2374_v25 }
 0x1d8   : > { %2602 = vst [vmem:[#allocation2 + $0x30] sm:$0xff] %v2592_v44  ;;  %v6340_v37 = vpop.f32.mrf.mxu1 }
 0x1d9   : > { %2608 = vst [vmem:[#allocation2 + $0x8] sm:$0xff] %v2598_v48  ;;  %v2556_v56 = vpop.f32.mrf.mxu0 }
 0x1da   : > { %v2593_v40 = vadd.f32 %v2556_v56, %v2369_v49  ;;  %v2580_v53 = vpop.f32.mrf.mxu1 }
 0x1db   : > { %v6329_v45 = vpop.f32.mrf.mxu0  ;;  %v2599_v59 = vadd.f32 %v2580_v53, %v2375_v28 }
 0x1dc   : > { %2603 = vst [vmem:[#allocation2] sm:$0xff] %v2593_v40  ;;  %v6341_v33 = vpop.f32.mrf.mxu1 }
 0x1dd   : > { %2609 = vst [vmem:[#allocation2 + $0x20] sm:$0xff] %v2599_v59  ;;  %v2561_v63 = vpop.f32.mrf.mxu0 }
 0x1de   : > { %v2594_v32 = vadd.f32 %v2561_v63, %v2370_v29  ;;  %v2585_v52 = vpop.f32.mrf.mxu1 }
 0x1df   : > { %v6332_v2 = vpop.f32.mrf.mxu0  ;;  %v2600_v4 = vadd.f32 %v2585_v52, %v2376_v41 }
 0x1e0   : > { %2604 = vst [vmem:[#allocation2 + $0x18] sm:$0xff] %v2594_v32  ;;  %v6344_v6 = vpop.f32.mrf.mxu1 }
 0x1e1   : > { %2610 = vst [vmem:[#allocation2 + $0x40] sm:$0xff] %v2600_v4  ;;  %v2564_v5 = vpop.f32.mrf.mxu0 }
 0x1e2   : > { %v2595_v51 = vadd.f32 %v2564_v5, %v2371_v47  ;;  %v2588_v58 = vpop.f32.mrf.mxu1 }
 0x1e3   : > { %v6333_v8 = vpop.f32.mrf.mxu0  ;;  %v2601_v9 = vadd.f32 %v2588_v58, %v2377_v46 }
 0x1e4   : > { %2605 = vst [vmem:[#allocation2 + $0x10] sm:$0xff] %v2595_v51  ;;  %v6345_v1 = vpop.f32.mrf.mxu1 }
 0x1e5   : > { %2611 = vst [vmem:[#allocation2 + $0x38] sm:$0xff] %v2601_v9  ;;  %v2569_v39 = vpop.f32.mrf.mxu0 }
 0x1e6   : > { %v2596_v14 = vadd.f32 %v2569_v39, %v2372_v11 }
 0x1e7   : > { %v6336_v54 = vpop.f32.mrf.mxu0 }
 0x1e8   : > { %2606 = vst [vmem:[#allocation2 + $0x48] sm:$0xff] %v2596_v14  ;;  %2615 = sbr.rel (%p5820_p4) target bundleno = 1920 (0x780), region = 105 }
 0x1e9   : > { %v2572_v15 = vpop.f32.mrf.mxu0 }
 0x1ea   : > { %v2597_v17 = vadd.f32 %v2572_v15, %v2373_v55 }
 0x1eb   : > { %v6337_v60 = vpop.f32.mrf.mxu0 }
 0x1ec   : > { %2607 = vst [vmem:[#allocation2 + $0x28] sm:$0xff] %v2597_v17 }
 0x1ed   : > { %v2685_v19 = vld [vmem:[%s7835_s4 + $0x78] sm:$0xff]  ;;  %v2684_v57 = vld [vmem:[%s7835_s4 + $0x70] sm:$0xff]  ;;  %v2683_v61 = vld [vmem:[%s7835_s4 + $0x68] sm:$0xff]  ;;  %v6781_v14 = vmov 1983009808   ;;  %v2822_v55 = vlaneseq  ;;  %vm3448_vm7 = vcmask 64512  }
 0x1ee   : > { %6346 = vmatprep.subr.mxu0 %v2685_v19  ;;  %v2682_v62 = vld [vmem:[%s7835_s4 + $0x60] sm:$0xff]  ;;  %v2616_v22 = vld [vmem:[#allocation2 + $0x30] sm:$0xff]  ;;  %v2681_v27 = vld [vmem:[%s7835_s4 + $0x58] sm:$0xff]  ;;  %v2820_v54 = vunpack.c.l.s4 %v6781_v14  ;;  %vm3450_vm8 = vcmask 130048   ;;  %vm3452_vm9 = vcmask 195584   ;;  %vm3454_vm10 = vcmask 261120  }
 0x1ef   : > { %6347 = vmatpush3.msra.mxu0 %v2685_v19  ;;  %v7391_v23 = vld [vmem:[%s7833_s2] ss:$0 sm:$0xff]  ;;  %v2680_v30 = vld [vmem:[%s7835_s4 + $0x50] sm:$0xff]  ;;  %v2679_v18 = vld [vmem:[%s7835_s4 + $0x48] sm:$0xff]  ;;  %v2823_v17 = vshrl.u32 %v2822_v55, 7  ;;  %vm3456_vm11 = vcmask 326656  }
 0x1f0   : > { %6348 = vmatprep.subr.mxu0 %v2684_v57  ;;  %v2633_v13 = vmul.f32 %v7391_v23, %v2616_v22  ;;  %v7400_v10 = vld [vmem:[%s7834_s3] ss:$0 sm:$0xff]  ;;  %v2677_v7 = vld [vmem:[%s7835_s4 + $0x38] sm:$0xff]  ;;  %v2676_v25 = vld [vmem:[%s7835_s4 + $0x30] sm:$0xff]  ;;  %v2821_v15 = vunpack.c.0.s8 %v2820_v54  ;;  %v6782_v19 = vmov 1934713408  }
 0x1f1   : > { %6349 = vmatpush3.msra.mxu0 %v2684_v57  ;;  %v2678_v26 = vld [vmem:[%s7835_s4 + $0x40] sm:$0xff]  ;;  %v2675_v42 = vld [vmem:[%s7835_s4 + $0x28] sm:$0xff]  ;;  %v2618_v44 = vld [vmem:[#allocation2 + $0x18] sm:$0xff]  ;;  %v3032_v57 = vunpack.c.l.s4 %v6782_v19  ;;  %vm3458_vm12 = vcmask 392192   ;;  %vm3460_vm13 = vcmask 457728   ;;  %vm3462_vm14 = vcmask 523264  }
 0x1f2   : > { %6350 = vmatprep.subr.mxu0 %v2683_v61  ;;  %v2650_v20 = vadd.f32 %v7400_v10, %v2633_v13  ;;  %v2617_v21 = vld [vmem:[#allocation2] sm:$0xff]  ;;  %v2673_v50 = vld [vmem:[%s7835_s4 + $0x18] sm:$0xff]  ;;  %v2635_v35 = vmul.f32 %v7391_v23, %v2618_v44  ;;  %v2619_v48 = vld [vmem:[#allocation2 + $0x10] sm:$0xff]  ;;  %vm3464_vm15 = vcmask 588800   ;;  %vm4712_vm0 = vcmask 80896  }
 0x1f3   : > { %6351 = vmatpush3.msra.mxu0 %v2683_v61  ;;  %v2674_v31 = vld [vmem:[%s7835_s4 + $0x20] sm:$0xff]  ;;  %v2634_v24 = vmul.f32 %v7391_v23, %v2617_v21  ;;  %v2620_v49 = vld [vmem:[#allocation2 + $0x48] sm:$0xff]  ;;  %v2672_v3 = vld [vmem:[%s7835_s4 + $0x10] sm:$0xff]  ;;  %v2636_v28 = vmul.f32 %v7391_v23, %v2619_v48  ;;  %v7459_v61 = vsub.s32 %v2821_v15, %v2823_v17 }
 0x1f4   : > { %6352 = vmatprep.subr.mxu0 %v2682_v62  ;;  %v2660_v38 = vmax.f32 %v2650_v20, 0.0  ;;  %v2671_v36 = vld [vmem:[%s7835_s4 + $0x8] sm:$0xff]  ;;  %v2652_v56 = vadd.f32 %v7400_v10, %v2635_v35  ;;  %v2637_v40 = vmul.f32 %v7391_v23, %v2620_v49  ;;  %v2670_v45 = vld [vmem:[%s7835_s4] sm:$0xff]  ;;  %v2625_v46 = vld [vmem:[#allocation2 + $0x38] sm:$0xff] }
 0x1f5   : > { %6353 = vmatpush3.msra.mxu0 %v2682_v62  ;;  %v2651_v37 = vadd.f32 %v7400_v10, %v2634_v24  ;;  %v2621_v53 = vld [vmem:[#allocation2 + $0x28] sm:$0xff]  ;;  %v2653_v29 = vadd.f32 %v7400_v10, %v2636_v28  ;;  %v2623_v63 = vld [vmem:[#allocation2 + $0x20] sm:$0xff]  ;;  %v2642_v58 = vmul.f32 %v7391_v23, %v2625_v46 }
 0x1f6   : > { %6354 = vmatprep.subr.mxu0 %v2681_v27  ;;  %6378 = vmatprep.mubr.f32.mxu0 %v2660_v38  ;;  %v2622_v16 = vld [vmem:[#allocation2 + $0x8] sm:$0xff]  ;;  %v2638_v43 = vmul.f32 %v7391_v23, %v2621_v53  ;;  %v2662_v33 = vmax.f32 %v2652_v56, 0.0  ;;  %v2654_v41 = vadd.f32 %v7400_v10, %v2637_v40  ;;  %v2624_v32 = vld [vmem:[#allocation2 + $0x40] sm:$0xff]  ;;  %v2640_v4 = vmul.f32 %v7391_v23, %v2623_v63 }
 0x1f7   : > { %6355 = vmatpush3.msra.mxu0 %v2681_v27  ;;  %v2661_v59 = vmax.f32 %v2651_v37, 0.0  ;;  %v2639_v0 = vmul.f32 %v7391_v23, %v2622_v16  ;;  %v2663_v52 = vmax.f32 %v2653_v29, 0.0  ;;  %v2641_v6 = vmul.f32 %v7391_v23, %v2624_v32  ;;  %v7457_v60 = vld [vmem:[%s7836_s5] ss:$0 sm:$0xff] }
 0x1f8   : > { %6356 = vmatprep.subr.mxu0 %v2680_v30  ;;  %v2655_v2 = vadd.f32 %v7400_v10, %v2638_v43  ;;  %v2664_v47 = vmax.f32 %v2654_v41, 0.0  ;;  %v2657_v51 = vadd.f32 %v7400_v10, %v2640_v4  ;;  %v2659_v12 = vadd.f32 %v7400_v10, %v2642_v58 }
 0x1f9   : > { %6357 = vmatpush3.msra.mxu0 %v2680_v30  ;;  %v2656_v34 = vadd.f32 %v7400_v10, %v2639_v0  ;;  %v2658_v9 = vadd.f32 %v7400_v10, %v2641_v6  ;;  %v3033_v27 = vunpack.c.0.s8 %v3032_v57 }
 0x1fa   : > { %6358 = vmatprep.subr.mxu0 %v2679_v18  ;;  %v2665_v5 = vmax.f32 %v2655_v2, 0.0  ;;  %v2667_v11 = vmax.f32 %v2657_v51, 0.0  ;;  %v2669_v39 = vmax.f32 %v2659_v12, 0.0 }
 0x1fb   : > { %6359 = vmatpush3.msra.mxu0 %v2679_v18  ;;  %v2666_v8 = vmax.f32 %v2656_v34, 0.0  ;;  %v2668_v1 = vmax.f32 %v2658_v9, 0.0 }
 0x1fc   : > { %6360 = vmatprep.subr.mxu0 %v2678_v26 }
 0x1fd   : > { %6361 = vmatpush3.msra.mxu0 %v2678_v26 }
 0x1fe   : > { %6362 = vmatprep.subr.mxu0 %v2677_v7 }
 0x1ff   : > { %6363 = vmatpush3.msra.mxu0 %v2677_v7 }
 0x200   : > { %6364 = vmatprep.subr.mxu0 %v2676_v25 }
 0x201   : > { %6365 = vmatpush3.msra.mxu0 %v2676_v25  ;;  %v7466_v25 = vsub.s32 %v3033_v27, %v2823_v17 }
 0x202   : > { %6366 = vmatprep.subr.mxu0 %v2675_v42 }
 0x203   : > { %6367 = vmatpush3.msra.mxu0 %v2675_v42 }
 0x204   : > { %6368 = vmatprep.subr.mxu0 %v2674_v31 }
 0x205   : > { %6369 = vmatpush3.msra.mxu0 %v2674_v31 }
 0x206   : > { %6370 = vmatprep.subr.mxu0 %v2673_v50 }
 0x207   : > { %6371 = vmatpush3.msra.mxu0 %v2673_v50 }
 0x208   : > { %6372 = vmatprep.subr.mxu0 %v2672_v3 }
 0x209   : > { %6373 = vmatpush3.msra.mxu0 %v2672_v3 }
 0x20a   : > { %6374 = vmatprep.subr.mxu0 %v2671_v36 }
 0x20b   : > { %6375 = vmatpush3.msra.mxu0 %v2671_v36 }
 0x20c   : > { %6376 = vmatprep.subr.mxu0 %v2670_v45 }
 0x20d   : > { %6377 = vmatpush3.msra.mxu0 %v2670_v45 }
 0x20e   : > { %6379 = vmatmul.mubr.f32.vlgmr.msra.gmra.mxu0 %v2661_v59 }
 0x20f   : > { %6381 = vmatprep.mubr.f32.mxu0 %v2662_v33 }
 0x212   : > { %6382 = vmatmul.mubr.f32.gmra.mxu0 %v2663_v52 }
 0x213   : > { %6384 = vmatprep.mubr.f32.mxu0 %v2664_v47 }
 0x216   : > { %6385 = vmatmul.mubr.f32.gmra.mxu0 %v2665_v5 }
 0x217   : > { %6387 = vmatprep.mubr.f32.mxu0 %v2666_v8 }
 0x21a   : > { %6388 = vmatmul.mubr.f32.gmra.mxu0 %v2667_v11 }
 0x21b   : > { %6390 = vmatprep.mubr.f32.mxu0 %v2668_v1 }
 0x21e   : > { %6391 = vmatmul.mubr.f32.gmra.mxu0 %v2669_v39 }
 0x2ce   : > { %v6380_v62 = vpop.f32.mrf.mxu0 }
 0x2cf   : > { %v2765_v22 = vadd.f32 %v6380_v62, %v7457_v60 }
 0x2d0   : > { %v2759_v23 = vpop.f32.mrf.mxu0 }
 0x2d1   : > { %v2835_v13 = vcombine.high %v2765_v22, %v2765_v22  ;;  %v2842_v10 = vrot.slane %v2765_v22, %v7459_v61  ;;  %v2760_v30 = vadd.f32 %v7457_v60, %v2759_v23 }
 0x2d2   : > { %v6383_v20 = vpop.f32.mrf.mxu0 }
 0x2d3   : > { %v2849_v18 = vrot.slane %v2835_v13, %v7459_v61  ;;  %v2850_v38 = vcombine.high %v2842_v10, %v2842_v10  ;;  %v2818_v26 = vcombine.high %v2760_v30, %v2760_v30  ;;  %v2825_v7 = vrot.slane %v2760_v30, %v7459_v61 }
 0x2d4   : > { %v2775_v42 = vadd.f32 %v6383_v20, %v7457_v60  ;;  %v2769_v21 = vpop.f32.mrf.mxu0 }
 0x2d5   : > { %v2851_v44 = vcombine.high %v2849_v18, %v2849_v18  ;;  %v2832_v31 = vrot.slane %v2818_v26, %v7459_v61  ;;  %v2833_v24 = vcombine.high %v2825_v7, %v2825_v7  ;;  %v3030_v50 = vcombine.low %v2825_v7, %v2850_v38 }
 0x2d6   : > { %v2869_v35 = vcombine.high %v2775_v42, %v2775_v42  ;;  %v2770_v48 = vadd.f32 %v7457_v60, %v2769_v21  ;;  %v6386_v49 = vpop.f32.mrf.mxu0  ;;  %v2876_v37 = vrot.slane %v2775_v42, %v7459_v61 }
 0x2d7   : > { %v3066_v3 = vcombine.low %v2833_v24, %v2849_v18  ;;  %v2834_v28 = vcombine.high %v2832_v31, %v2832_v31  ;;  %v3102_v36 = vcombine.low %v2832_v31, %v2851_v44  ;;  %v7475_v45 = vrot.slane %v3030_v50, %v7466_v25 }
 0x2d8   : > { %v2883_v56 = vrot.slane %v2869_v35, %v7459_v61  ;;  %v2852_v40 = vcombine.high %v2770_v48, %v2770_v48  ;;  %v2859_v53 = vrot.slane %v2770_v48, %v7459_v61  ;;  %v2779_v16 = vpop.f32.mrf.mxu0  ;;  %v2785_v59 = vadd.f32 %v6386_v49, %v7457_v60 }
 0x2d9   : > { %v2780_v29 = vadd.f32 %v7457_v60, %v2779_v16  ;;  %v7483_v47 = vrot.slane %v3102_v36, %v7466_v25  ;;  %v2884_v34 = vcombine.high %v2876_v37, %v2876_v37  ;;  %v7486_v5 = vrot.slane %v3066_v3, %v7466_v25 }
 0x2da   : > { %v2885_v43 = vcombine.high %v2883_v56, %v2883_v56  ;;  %v2866_v33 = vrot.slane %v2852_v40, %v7459_v61  ;;  %v2867_v41 = vcombine.high %v2859_v53, %v2859_v53  ;;  %v3138_v0 = vcombine.low %v2834_v28, %v2859_v53  ;;  %v6389_v63 = vpop.f32.mrf.mxu0 }
 0x2db   : > { %v2903_v32 = vcombine.high %v2785_v59, %v2785_v59  ;;  %v2910_v52 = vrot.slane %v2785_v59, %v7459_v61  ;;  %v2886_v2 = vcombine.high %v2780_v29, %v2780_v29  ;;  %v2893_v4 = vrot.slane %v2780_v29, %v7459_v61 }
 0x2dc   : > { %v2868_v6 = vcombine.high %v2866_v33, %v2866_v33  ;;  %v2789_v46 = vpop.f32.mrf.mxu0  ;;  %v3039_v51 = vcombine.low %v2866_v33, %v2885_v43  ;;  %v7491_v11 = vrot.slane %v3138_v0, %v7466_v25  ;;  %v7493_v12 = vcombine.low %v2842_v10, %v2867_v41 }
 0x2dd   : > { %v2917_v58 = vrot.slane %v2903_v32, %v7459_v61  ;;  %v2900_v8 = vrot.slane %v2886_v2, %v7459_v61  ;;  %v2901_v9 = vcombine.high %v2893_v4, %v2893_v4  ;;  %v2795_v39 = vadd.f32 %v6389_v63, %v7457_v60 }
 0x2de   : > { %v3075_v1 = vcombine.low %v2868_v6, %v2893_v4  ;;  %v6392_v14 = vpop.f32.mrf.mxu0  ;;  %v2918_v54 = vcombine.high %v2910_v52, %v2910_v52  ;;  %v2790_v22 = vadd.f32 %v7457_v60, %v2789_v46  ;;  %v7499_v27 = vrot.slane %v3039_v51, %v7466_v25 }
 0x2df   : > { %v3111_v55 = vcombine.low %v2876_v37, %v2901_v9  ;;  %v3147_v15 = vcombine.low %v2884_v34, %v2900_v8  ;;  %v2919_v17 = vcombine.high %v2917_v58, %v2917_v58  ;;  %v2902_v19 = vcombine.high %v2900_v8, %v2900_v8 }
 0x2e0   : > { %v2937_v57 = vcombine.high %v2795_v39, %v2795_v39  ;;  %v2944_v62 = vrot.slane %v2795_v39, %v7459_v61  ;;  %v2799_v23 = vpop.f32.mrf.mxu0  ;;  %v3082_v13 = vrot.slane %v3075_v1, %v7466_v25  ;;  %v2805_v30 = vadd.f32 %v6392_v14, %v7457_v60 }
 0x2e1   : > { %v3118_v10 = vrot.slane %v3111_v55, %v7466_v25  ;;  %v7505_v20 = vrot.slane %v3147_v15, %v7466_v25  ;;  %v2920_v26 = vcombine.high %v2790_v22, %v2790_v22  ;;  %v2927_v7 = vrot.slane %v2790_v22, %v7459_v61 }
 0x2e2   : > { %v2951_v18 = vrot.slane %v2937_v57, %v7459_v61  ;;  %v3156_v38 = vcombine.low %v2919_v17, %v2944_v62  ;;  %v2971_v42 = vcombine.high %v2805_v30, %v2805_v30  ;;  %v2978_v21 = vrot.slane %v2805_v30, %v7459_v61 }
 0x2e3   : > { %v2800_v44 = vadd.f32 %v7457_v60, %v2799_v23  ;;  %v7511_v31 = vcombine.low %v2883_v56, %v2902_v19  ;;  %v2952_v24 = vcombine.high %v2944_v62, %v2944_v62  ;;  %v2934_v50 = vrot.slane %v2920_v26, %v7459_v61 }
 0x2e4   : > { %v2953_v35 = vcombine.high %v2951_v18, %v2951_v18  ;;  %v7515_v48 = vrot.slane %v3156_v38, %v7466_v25  ;;  %v2935_v49 = vcombine.high %v2927_v7, %v2927_v7  ;;  %v2985_v3 = vrot.slane %v2971_v42, %v7459_v61 }
 0x2e5   : > { %v2986_v37 = vcombine.high %v2978_v21, %v2978_v21  ;;  %v2936_v28 = vcombine.high %v2934_v50, %v2934_v50  ;;  %v3084_v36 = vcombine.low %v2918_v54, %v2934_v50  ;;  %v2954_v53 = vcombine.high %v2800_v44, %v2800_v44 }
 0x2e6   : > { %v3093_v40 = vcombine.low %v2953_v35, %v2978_v21  ;;  %v3048_v16 = vcombine.low %v2910_v52, %v2935_v49  ;;  %v2987_v59 = vcombine.high %v2985_v3, %v2985_v3  ;;  %v2961_v60 = vrot.slane %v2800_v44, %v7459_v61 }
 0x2e7   : > { %v5826_v56 = vcombine.high %v7486_v5, %v3082_v13  ;;  %v3120_v29 = vcombine.low %v2917_v58, %v2936_v28  ;;  %v2968_v33 = vrot.slane %v2954_v53, %v7459_v61  ;;  %v3091_v41 = vrot.slane %v3084_v36, %v7466_v25 }
 0x2e8   : > { %v3100_v43 = vrot.slane %v3093_v40, %v7466_v25  ;;  %v7524_v0 = vrot.slane %v3048_v16, %v7466_v25  ;;  %v3192_v63 = vcombine.low %v2927_v7, %v2952_v24  ;;  %v2969_v32 = vcombine.high %v2961_v60, %v2961_v60 }
 0x2e9   : > { %v3129_v2 = vcombine.low %v2961_v60, %v2986_v37  ;;  %v2970_v4 = vcombine.high %v2968_v33, %v2968_v33  ;;  %v3201_v52 = vcombine.low %v2968_v33, %v2987_v59  ;;  %v3260_v6 = vcombine.low %v7486_v5, %v3082_v13  ;;  %v3028_v59 = vld [vmem:[%s7837_s6] sm:$0xff] }
 0x2ea   : > { %v5827_v34 = vcombine.high %v3091_v41, %v3100_v43  ;;  %v3165_v51 = vcombine.low %v2969_v32, %v2985_v3  ;;  %v3261_v58 = vcombine.low %v3091_v41, %v3100_v43  ;;  %v3127_v8 = vrot.slane %v3120_v29, %v7466_v25  ;;  %6395 = vmatprep.mubr.msk.f32.mxu1 %vm3448_vm7, %v3028_v59 }
 0x2eb   : > { %v3136_v46 = vrot.slane %v3129_v2, %v7466_v25  ;;  %v3057_v9 = vcombine.low %v2951_v18, %v2970_v4  ;;  %v3292_v1 = vrot.slane %v5826_v56, %v7459_v61  ;;  %v3268_v14 = vrot.slane %v3260_v6, %v7459_v61 }
 0x2ec   : > { %v3299_v39 = vrot.slane %v5827_v34, %v7459_v61  ;;  %v3172_v54 = vrot.slane %v3165_v51, %v7466_v25  ;;  %v3275_v55 = vrot.slane %v3261_v58, %v7459_v61  ;;  %v5828_v15 = vcombine.high %v7483_v47, %v3118_v10 }
 0x2ed   : > { %v5829_v5 = vcombine.high %v3127_v8, %v3136_v46  ;;  %v3308_v19 = vcombine.low %v7483_v47, %v3118_v10  ;;  %v3309_v57 = vcombine.low %v3127_v8, %v3136_v46  ;;  %v3064_v62 = vrot.slane %v3057_v9, %v7466_v25 }
 0x2ee   : > { %v3300_v17 = vcombine.low %v3292_v1, %v3299_v39  ;;  %v3208_v22 = vrot.slane %v3201_v52, %v7466_v25  ;;  %v3276_v23 = vcombine.low %v3268_v14, %v3275_v55  ;;  %v3340_v13 = vrot.slane %v5828_v15, %v7459_v61 }
 0x2ef   : > { %v3347_v30 = vrot.slane %v5829_v5, %v7459_v61  ;;  %v3316_v18 = vrot.slane %v3308_v19, %v7459_v61  ;;  %v3323_v38 = vrot.slane %v3309_v57, %v7459_v61  ;;  %v5825_v26 = vcombine.high %v7524_v0, %v3064_v62 }
 0x2f0   : > { %3301 = vrot.lane.b32.xlu1 %v3300_v17, %s6783_s21  ;;  %v3356_v47 = vcombine.low %v7491_v11, %v7505_v20  ;;  %v3199_v10 = vrot.slane %v3192_v63, %v7466_v25  ;;  %3277 = vrot.lane.b32.xlu0 %v3276_v23, %s6784_s19  ;;  %v5824_v7 = vcombine.high %v7475_v45, %v7499_v27  ;;  %v6789_v32 = vmov 0.0  }
 0x2f1   : > { %v3357_v42 = vcombine.low %v7515_v48, %v3172_v54  ;;  %v3181_v21 = vrot.slane %v7493_v12, %v7466_v25  ;;  %v3348_v44 = vcombine.low %v3340_v13, %v3347_v30  ;;  %v3324_v24 = vcombine.low %v3316_v18, %v3323_v38  ;;  %v3029_v38 = vld [vmem:[%s7837_s6 + $0x8] sm:$0xff] }
 0x2f2   : > { %v3251_v50 = vrot.slane %v5825_v26, %v7459_v61  ;;  %v5831_v49 = vcombine.high %v7515_v48, %v3172_v54  ;;  %v3190_v3 = vrot.slane %v7511_v31, %v7466_v25  ;;  %v3405_v37 = vcombine.low %v3199_v10, %v3208_v22 }
 0x2f3   : > { %v3371_v35 = vrot.slane %v3357_v42, %v7459_v61  ;;  %v3364_v28 = vrot.slane %v3356_v47, %v7459_v61  ;;  %v3214_v12 = vcombine.low %v7475_v45, %v7499_v27  ;;  %v3244_v36 = vrot.slane %v5824_v7, %v7459_v61 }
 0x2f4   : > { %3325 = vrot.lane.b32.xlu1 %v3324_v24, %s6785_s17  ;;  %3349 = vrot.lane.b32.xlu0 %v3348_v44, %s6786_s27  ;;  %v5830_v48 = vcombine.high %v7491_v11, %v7505_v20  ;;  %v3404_v40 = vcombine.low %v3181_v21, %v3190_v3  ;;  %v3419_v31 = vrot.slane %v3405_v37, %v7459_v61 }
 0x2f5   : > { %v3372_v53 = vcombine.low %v3364_v28, %v3371_v35  ;;  %v3215_v16 = vcombine.low %v7524_v0, %v3064_v62  ;;  %v3252_v60 = vcombine.low %v3244_v36, %v3251_v50  ;;  %v3395_v45 = vrot.slane %v5831_v49, %v7459_v61 }
 0x2f6   : > { %v5833_v27 = vcombine.high %v3199_v10, %v3208_v22  ;;  %v3412_v11 = vrot.slane %v3404_v40, %v7459_v61  ;;  %v3222_v20 = vrot.slane %v3214_v12, %v7459_v61  ;;  %v3388_v29 = vrot.slane %v5830_v48, %v7459_v61 }
 0x2f7   : > { %v3229_v56 = vrot.slane %v3215_v16, %v7459_v61  ;;  %v5832_v43 = vcombine.high %v3181_v21, %v3190_v3  ;;  %v3466_v2 = vcombine.low %v6789_v32, %v6789_v32 }
 0x2f8   : > { %3373 = vrot.lane.b32.xlu1 %v3372_v53, %s6787_s10  ;;  %3253 = vrot.lane.b32.xlu0 %v3252_v60, %s6788_s12  ;;  %v3420_v33 = vcombine.low %v3412_v11, %v3419_v31  ;;  %v3396_v0 = vcombine.low %v3388_v29, %v3395_v45  ;;  %v3443_v63 = vrot.slane %v5833_v27, %v7459_v61 }
 0x2f9   : > { %v3230_v41 = vcombine.low %v3222_v20, %v3229_v56  ;;  %v3436_v4 = vrot.slane %v5832_v43, %v7459_v61  ;;  %v3473_v52 = vrot.slane %v3466_v2, %v7459_v61 }
 0x2fb   : > { %v3444_v34 = vcombine.low %v3436_v4, %v3443_v63  ;;  %v3474_v6 = vcombine.low %v3473_v52, %v3473_v52 }
 0x2fc   : > { %3421 = vrot.lane.b32.xlu1 %v3420_v33, %s6790_s13  ;;  %3397 = vrot.lane.b32.xlu0 %v3396_v0, %s6791_s26 }
 0x2fd   : > { %v3481_v46 = vrot.slane %v3474_v6, %v7466_v25 }
 0x2ff   : > { %v3483_v51 = vcombine.high %v3481_v46, %v3481_v46  ;;  %v3482_v58 = vcombine.low %v3481_v46, %v3481_v46 }
 0x300   : > { %3445 = vrot.lane.b32.xlu0 %v3444_v34, %s6792_s18 }
 0x301   : > { %3485 = vrot.lane.b32.xlu1 %v3483_v51, %s6788_s12 }
 0x304   : > { %3489 = vrot.lane.b32.xlu0 %v6789_v32, %s6784_s19 }
 0x305   : > { %3492 = vrot.lane.b32.xlu1 %v6789_v32, %s6783_s21  ;;  %s6798_s21 = smov 88  }
 0x308   : > { %3495 = vrot.lane.b32.xlu0 %v6789_v32, %s6785_s17 }
 0x309   : > { %3498 = vrot.lane.b32.xlu1 %v6789_v32, %s6786_s27 }
 0x30c   : > { %3501 = vrot.lane.b32.xlu0 %v6789_v32, %s6787_s10 }
 0x30d   : > { %3504 = vrot.lane.b32.xlu1 %v6789_v32, %s6791_s26 }
 0x310   : > { %3508 = vrot.lane.b32.xlu0 %v3482_v58, %s6790_s13 }
 0x311   : > { %3511 = vrot.lane.b32.xlu1 %v3483_v51, %s6792_s18 }
 0x362   : > { %v3302_v8 = vpop.permute.xlu1 %3301  ;;  %v3278_v9 = vpop.permute.xlu0 %3277 }
 0x366   : > { %v3326_v1 = vpop.permute.xlu1 %3325  ;;  %v3350_v39 = vpop.permute.xlu0 %3349 }
 0x36a   : > { %v3254_v14 = vpop.permute.xlu0 %3253  ;;  %v3374_v55 = vpop.permute.xlu1 %3373 }
 0x36b   : > { %v3449_v54 = vsel %vm3448_vm7, %v3230_v41, %v3254_v14 }
 0x36c   : > { %v3451_v15 = vsel %vm3450_vm8, %v3449_v54, %v3278_v9 }
 0x36d   : > { %v3453_v5 = vsel %vm3452_vm9, %v3451_v15, %v3302_v8 }
 0x36e   : > { %v3455_v17 = vsel %vm3454_vm10, %v3453_v5, %v3326_v1  ;;  %v3398_v19 = vpop.permute.xlu0 %3397  ;;  %v3422_v23 = vpop.permute.xlu1 %3421 }
 0x36f   : > { %v3457_v57 = vsel %vm3456_vm11, %v3455_v17, %v3350_v39 }
 0x370   : > { %v3459_v62 = vsel %vm3458_vm12, %v3457_v57, %v3374_v55 }
 0x371   : > { %v3461_v22 = vsel %vm3460_vm13, %v3459_v62, %v3398_v19 }
 0x372   : > { %v3463_v13 = vsel %vm3462_vm14, %v3461_v22, %v3422_v23  ;;  %v3446_v30 = vpop.permute.xlu0 %3445 }
 0x373   : > { %v3465_v18 = vsel %vm3464_vm15, %v3463_v13, %v3446_v30  ;;  %v3486_v26 = vpop.permute.xlu1 %3485 }
 0x374   : > { %6393 = vmatprep.subr.mxu1 %v3465_v18  ;;  %v3514_v10 = vsel %vm3448_vm7, %v3482_v58, %v3486_v26 }
 0x375   : > { %6394 = vmatpush3.msra.mxu1 %v3465_v18 }
 0x376   : > { %6396 = vmatmul.mubr.msk.f32.vlgmr.msra.gmra.mxu1 %vm3448_vm7, %v3029_v38  ;;  %v3490_v47 = vpop.permute.xlu0 %3489 }
 0x377   : > { %v3515_v7 = vsel %vm3450_vm8, %v3514_v10, %v3490_v47  ;;  %v3493_v42 = vpop.permute.xlu1 %3492 }
 0x378   : > { %v3516_v44 = vsel %vm3452_vm9, %v3515_v7, %v3493_v42 }
 0x37a   : > { %v3496_v21 = vpop.permute.xlu0 %3495 }
 0x37b   : > { %v3517_v24 = vsel %vm3454_vm10, %v3516_v44, %v3496_v21  ;;  %v3499_v50 = vpop.permute.xlu1 %3498 }
 0x37c   : > { %v3518_v49 = vsel %vm3456_vm11, %v3517_v24, %v3499_v50 }
 0x37e   : > { %v3502_v35 = vpop.permute.xlu0 %3501 }
 0x37f   : > { %v3519_v3 = vsel %vm3458_vm12, %v3518_v49, %v3502_v35  ;;  %v3505_v37 = vpop.permute.xlu1 %3504 }
 0x380   : > { %v3520_v12 = vsel %vm3460_vm13, %v3519_v3, %v3505_v37 }
 0x382   : > { %v3509_v28 = vpop.permute.xlu0 %3508 }
 0x383   : > { %v3521_v36 = vsel %vm3462_vm14, %v3520_v12, %v3509_v28  ;;  %v3512_v48 = vpop.permute.xlu1 %3511 }
 0x384   : > { %v3522_v40 = vsel %vm3464_vm15, %v3521_v36, %v3512_v48 }
 0x436   : > { %v6397_v53 = vpop.f32.mrf.mxu1 }
 0x437   : > { %v3601_v31 = vadd.f32 %v6397_v53, %v3522_v40 }
 0x438   : > { %v3595_v16 = vpop.f32.mrf.mxu1 }
 0x439   : > { %3614 = vrot.lane.b32.xlu0 %v3601_v31, %s6793_s0  ;;  %3608 = vrot.lane.b32.xlu1 %v3601_v31, %s6794_s25  ;;  %v3596_v59 = vadd.f32 %v3595_v16, %v3522_v40 }
 0x43d   : > { %3626 = vrot.lane.b32.xlu0 %v3601_v31, %s6795_s30  ;;  %3620 = vrot.lane.b32.xlu1 %v3601_v31, %s6796_s11 }
 0x441   : > { %3638 = vrot.lane.b32.xlu0 %v3601_v31, %s6797_s16  ;;  %3632 = vrot.lane.b32.xlu1 %v3601_v31, %s6798_s21 }
 0x445   : > { %3650 = vrot.lane.b32.xlu0 %v3601_v31, %s6790_s13  ;;  %3644 = vrot.lane.b32.xlu1 %v3601_v31, %s6792_s18 }
 0x449   : > { %3656 = vrot.lane.b32.xlu1 %v3601_v31, %s6791_s26  ;;  %3606 = vrot.lane.b32.xlu0 %v3596_v59, %s6794_s25 }
 0x44d   : > { %3612 = vrot.lane.b32.xlu1 %v3596_v59, %s6793_s0  ;;  %3618 = vrot.lane.b32.xlu0 %v3596_v59, %s6796_s11 }
 0x451   : > { %3624 = vrot.lane.b32.xlu1 %v3596_v59, %s6795_s30  ;;  %3630 = vrot.lane.b32.xlu0 %v3596_v59, %s6798_s21 }
 0x455   : > { %3636 = vrot.lane.b32.xlu1 %v3596_v59, %s6797_s16  ;;  %3642 = vrot.lane.b32.xlu0 %v3596_v59, %s6792_s18 }
 0x459   : > { %3654 = vrot.lane.b32.xlu1 %v3596_v59, %s6791_s26  ;;  %3648 = vrot.lane.b32.xlu0 %v3596_v59, %s6790_s13 }
 0x477   : > { %3662 = vxpose.xlu0.b32.start [1/2] (short) (narrow) %v3596_v59, 8 }
 0x47b   : > { %3663 = vxpose.xlu0.b32.end [2/2] (short) (narrow) %v3601_v31, 8 }
 0x4ab   : > { %v3615_v60 = vpop.permute.xlu0 %3614  ;;  %v3609_v45 = vpop.permute.xlu1 %3608 }
 0x4af   : > { %v3627_v27 = vpop.permute.xlu0 %3626  ;;  %v3621_v11 = vpop.permute.xlu1 %3620 }
 0x4b3   : > { %v3639_v20 = vpop.permute.xlu0 %3638  ;;  %v3633_v56 = vpop.permute.xlu1 %3632 }
 0x4b7   : > { %v3651_v29 = vpop.permute.xlu0 %3650  ;;  %v3645_v43 = vpop.permute.xlu1 %3644 }
 0x4bb   : > { %v3657_v33 = vpop.permute.xlu1 %3656  ;;  %v3607_v41 = vpop.permute.xlu0 %3606 }
 0x4bc   : > { %3694 = vxpose.xlu1.b32.start [1/2] (short) (narrow) %v3607_v41, 8 }
 0x4bf   : > { %v3613_v0 = vpop.permute.xlu1 %3612  ;;  %v3619_v63 = vpop.permute.xlu0 %3618 }
 0x4c0   : > { %3726 = vxpose.xlu0.b32.start [1/2] (short) (narrow) %v3613_v0, 8  ;;  %3695 = vxpose.xlu1.b32.end [2/2] (short) (narrow) %v3609_v45, 8 }
 0x4c3   : > { %v3625_v2 = vpop.permute.xlu1 %3624  ;;  %v3631_v4 = vpop.permute.xlu0 %3630 }
 0x4c4   : > { %3727 = vxpose.xlu0.b32.end [2/2] (short) (narrow) %v3615_v60, 8  ;;  %3790 = vxpose.xlu1.b32.start [1/2] (short) (narrow) %v3625_v2, 8 }
 0x4c7   : > { %v3637_v52 = vpop.permute.xlu1 %3636  ;;  %v3643_v34 = vpop.permute.xlu0 %3642 }
 0x4c8   : > { %3791 = vxpose.xlu1.b32.end [2/2] (short) (narrow) %v3627_v27, 8  ;;  %3758 = vxpose.xlu0.b32.start [1/2] (short) (narrow) %v3619_v63, 8 }
 0x4cb   : > { %v3649_v6 = vpop.permute.xlu0 %3648  ;;  %v3655_v46 = vpop.permute.xlu1 %3654 }
 0x4cc   : > { %3854 = vxpose.xlu1.b32.start [1/2] (short) (narrow) %v3637_v52, 8  ;;  %3759 = vxpose.xlu0.b32.end [2/2] (short) (narrow) %v3621_v11, 8 }
 0x4d0   : > { %3855 = vxpose.xlu1.b32.end [2/2] (short) (narrow) %v3639_v20, 8  ;;  %3822 = vxpose.xlu0.b32.start [1/2] (short) (narrow) %v3631_v4, 8 }
 0x4d4   : > { %3823 = vxpose.xlu0.b32.end [2/2] (short) (narrow) %v3633_v56, 8  ;;  %3918 = vxpose.xlu1.b32.start [1/2] (short) (narrow) %v3649_v6, 8 }
 0x4d8   : > { %3886 = vxpose.xlu0.b32.start [1/2] (short) (narrow) %v3643_v34, 8  ;;  %3919 = vxpose.xlu1.b32.end [2/2] (short) (narrow) %v3651_v29, 8 }
 0x4dc   : > { %3887 = vxpose.xlu0.b32.end [2/2] (short) (narrow) %v3645_v43, 8 }
 0x4e0   : > { %3950 = vxpose.xlu0.b32.start [1/2] (short) (narrow) %v3655_v46, 8 }
 0x4e4   : > { %3951 = vxpose.xlu0.b32.end [2/2] (short) (narrow) %v3657_v33, 8 }
 0x4f3   : > { %v3678_v51 = vpop.trf.xlu0 }
 0x538   : > { %v3710_v8 = vpop.trf.xlu1 }
 0x53c   : > { %v3742_v58 = vpop.trf.xlu0 }
 0x53d   : > { %v3982_v14 = vcombine.low %v3678_v51, %v3742_v58  ;;  %v3983_v24 = vcombine.high %v3678_v51, %v3742_v58 }
 0x53f   : > { %v3990_v15 = vrot.slane %v3982_v14, %v7459_v61  ;;  %v3997_v36 = vrot.slane %v3983_v24, %v7459_v61 }
 0x540   : > { %v3806_v1 = vpop.trf.xlu1 }
 0x544   : > { %v3774_v9 = vpop.trf.xlu0 }
 0x545   : > { %v3998_v54 = vcombine.low %v3710_v8, %v3774_v9  ;;  %v3999_v50 = vcombine.high %v3710_v8, %v3774_v9 }
 0x547   : > { %v4006_v5 = vrot.slane %v3998_v54, %v7459_v61  ;;  %v4013_v48 = vrot.slane %v3999_v50, %v7459_v61  ;;  %v3661_v54 = vld [vmem:[%s7838_s7 + $0x8] sm:$0xff] }
 0x548   : > { %v3870_v55 = vpop.trf.xlu1  ;;  %6398 = vmatprep.subr.msk.mxu1 %vm4712_vm0, %v3661_v54 }
 0x549   : > { %v4014_v17 = vcombine.low %v3806_v1, %v3870_v55  ;;  %v4046_v23 = vcombine.low %v3990_v15, %v4006_v5  ;;  %v4015_v35 = vcombine.high %v3806_v1, %v3870_v55  ;;  %v4047_v49 = vcombine.high %v3990_v15, %v4006_v5  ;;  %6399 = vmatpush3.xpose.msk.msra.mxu1 %vm4712_vm0, %v3661_v54  ;;  %v3660_v55 = vld [vmem:[%s7838_s7] sm:$0xff] }
 0x54a   : > { %v4062_v11 = vcombine.low %v3997_v36, %v4013_v48  ;;  %v4063_v6 = vcombine.high %v3997_v36, %v4013_v48  ;;  %6400 = vmatprep.subr.msk.mxu1 %vm4712_vm0, %v3660_v55 }
 0x54b   : > { %v4022_v62 = vrot.slane %v4014_v17, %v7459_v61  ;;  %v4054_v38 = vrot.slane %v4046_v23, %v7466_v25  ;;  %v4029_v40 = vrot.slane %v4015_v35, %v7459_v61  ;;  %v4061_v53 = vrot.slane %v4047_v49, %v7466_v25 }
 0x54c   : > { %v3838_v39 = vpop.trf.xlu0  ;;  %v4070_v63 = vrot.slane %v4062_v11, %v7466_v25  ;;  %v4077_v8 = vrot.slane %v4063_v6, %v7466_v25 }
 0x54d   : > { %6401 = vmatpush3.xpose.msk.msra.mxu1 %vm4712_vm0, %v3660_v55 }
 0x550   : > { %v3934_v13 = vpop.trf.xlu1 }
 0x551   : > { %v4125_v18 = vrot.slane %v3934_v13, %v7459_v61  ;;  %v4118_v31 = vcombine.high %v3934_v13, %v6789_v32 }
 0x553   : > { %v4132_v20 = vrot.slane %v4118_v31, %v7459_v61 }
 0x554   : > { %v3902_v19 = vpop.trf.xlu0 }
 0x555   : > { %v4030_v57 = vcombine.low %v3838_v39, %v3902_v19  ;;  %v4031_v47 = vcombine.high %v3838_v39, %v3902_v19 }
 0x557   : > { %v4038_v22 = vrot.slane %v4030_v57, %v7459_v61  ;;  %v4045_v37 = vrot.slane %v4031_v47, %v7459_v61 }
 0x559   : > { %v4078_v30 = vcombine.low %v4022_v62, %v4038_v22  ;;  %v4079_v44 = vcombine.high %v4022_v62, %v4038_v22  ;;  %v4094_v27 = vcombine.low %v4029_v40, %v4045_v37  ;;  %v4095_v4 = vcombine.high %v4029_v40, %v4045_v37 }
 0x55b   : > { %v4086_v26 = vrot.slane %v4078_v30, %v7466_v25  ;;  %v4093_v12 = vrot.slane %v4079_v44, %v7466_v25  ;;  %v4102_v33 = vrot.slane %v4094_v27, %v7466_v25  ;;  %v4109_v46 = vrot.slane %v4095_v4, %v7466_v25 }
 0x55c   : > { %v3966_v10 = vpop.trf.xlu0 }
 0x55d   : > { %v4140_v7 = vrot.slane %v3966_v10, %v7459_v61  ;;  %v4111_v42 = vcombine.high %v4054_v38, %v4086_v26  ;;  %v4110_v21 = vcombine.low %v4054_v38, %v4086_v26  ;;  %v4133_v16 = vcombine.high %v3966_v10, %v6789_v32 }
 0x55e   : > { %v4112_v45 = vcombine.low %v4061_v53, %v4093_v12  ;;  %v4113_v29 = vcombine.high %v4061_v53, %v4093_v12  ;;  %v4114_v2 = vcombine.low %v4070_v63, %v4102_v33  ;;  %v4115_v52 = vcombine.high %v4070_v63, %v4102_v33 }
 0x55f   : > { %v4148_v3 = vcombine.low %v4125_v18, %v4140_v7  ;;  %4216 = vxpose.xlu0.b32.start [1/2] (short) (narrow) %v4111_v42, 16  ;;  %4184 = vxpose.xlu1.b32.start [1/2] (short) (narrow) %v4110_v21, 16  ;;  %v4149_v59 = vcombine.high %v4125_v18, %v4140_v7  ;;  %v4147_v56 = vrot.slane %v4133_v16, %v7459_v61 }
 0x560   : > { %v4116_v9 = vcombine.low %v4077_v8, %v4109_v46  ;;  %v4117_v1 = vcombine.high %v4077_v8, %v4109_v46 }
 0x561   : > { %v4156_v28 = vrot.slane %v4148_v3, %v7466_v25  ;;  %v4163_v43 = vrot.slane %v4149_v59, %v7466_v25  ;;  %v4164_v41 = vcombine.low %v4132_v20, %v4147_v56  ;;  %v4165_v51 = vcombine.high %v4132_v20, %v4147_v56 }
 0x563   : > { %4185 = vxpose.xlu1.b32.end [2/2] (short) (narrow) %v4156_v28, 16  ;;  %v4180_v60 = vcombine.high %v4156_v28, %v6789_v32  ;;  %v4181_v0 = vcombine.high %v4163_v43, %v6789_v32  ;;  %v4172_v34 = vrot.slane %v4164_v41, %v7466_v25  ;;  %v4179_v39 = vrot.slane %v4165_v51, %v7466_v25 }
 0x565   : > { %4217 = vxpose.xlu0.b32.end [2/2] (short) (narrow) %v4180_v60, 16  ;;  %v4182_v58 = vcombine.high %v4172_v34, %v6789_v32  ;;  %v4183_v14 = vcombine.high %v4179_v39, %v6789_v32 }
 0x567   : > { %4248 = vxpose.xlu1.b32.start [1/2] (short) (narrow) %v4112_v45, 16 }
 0x569   : > { %4280 = vxpose.xlu0.b32.start [1/2] (short) (narrow) %v4113_v29, 16 }
 0x56b   : > { %4249 = vxpose.xlu1.b32.end [2/2] (short) (narrow) %v4163_v43, 16 }
 0x56d   : > { %4281 = vxpose.xlu0.b32.end [2/2] (short) (narrow) %v4181_v0, 16 }
 0x56f   : > { %4312 = vxpose.xlu1.b32.start [1/2] (short) (narrow) %v4114_v2, 16 }
 0x571   : > { %4344 = vxpose.xlu0.b32.start [1/2] (short) (narrow) %v4115_v52, 16 }
 0x573   : > { %4313 = vxpose.xlu1.b32.end [2/2] (short) (narrow) %v4172_v34, 16 }
 0x575   : > { %4345 = vxpose.xlu0.b32.end [2/2] (short) (narrow) %v4182_v58, 16 }
 0x577   : > { %4376 = vxpose.xlu1.b32.start [1/2] (short) (narrow) %v4116_v9, 16 }
 0x579   : > { %4408 = vxpose.xlu0.b32.start [1/2] (short) (narrow) %v4117_v1, 16 }
 0x57b   : > { %4377 = vxpose.xlu1.b32.end [2/2] (short) (narrow) %v4179_v39, 16 }
 0x57d   : > { %4409 = vxpose.xlu0.b32.end [2/2] (short) (narrow) %v4183_v14, 16 }
 0x5db   : > { %v4200_v15 = vpop.trf.xlu1 }
 0x5dd   : > { %v4232_v32 = vpop.trf.xlu0 }
 0x5df   : > { %v7669_v5 = vpop.trf.xlu1 }
 0x5e1   : > { %v7671_v17 = vpop.trf.xlu0 }
 0x5e3   : > { %v4264_v19 = vpop.trf.xlu1 }
 0x5e4   : > { %v4440_v38 = vcombine.low %v4200_v15, %v4264_v19  ;;  %v4441_v49 = vcombine.high %v4200_v15, %v4264_v19 }
 0x5e5   : > { %v4296_v57 = vpop.trf.xlu0 }
 0x5e6   : > { %v4456_v30 = vcombine.low %v4232_v32, %v4296_v57  ;;  %v4448_v42 = vrot.slane %v4440_v38, %v7459_v61  ;;  %v4457_v21 = vcombine.high %v4232_v32, %v4296_v57  ;;  %v4455_v59 = vrot.slane %v4441_v49, %v7459_v61 }
 0x5e7   : > { %v7673_v62 = vpop.trf.xlu1 }
 0x5e8   : > { %v4464_v47 = vrot.slane %v4456_v30, %v7459_v61  ;;  %v4471_v36 = vrot.slane %v4457_v21, %v7459_v61  ;;  %v4576_v2 = vcombine.low %v7669_v5, %v7673_v62 }
 0x5e9   : > { %v7675_v22 = vpop.trf.xlu0 }
 0x5ea   : > { %v4504_v3 = vcombine.low %v4448_v42, %v4464_v47  ;;  %v4505_v40 = vcombine.high %v4448_v42, %v4464_v47  ;;  %v4520_v29 = vcombine.low %v4455_v59, %v4471_v36  ;;  %v4592_v43 = vcombine.low %v7671_v17, %v7675_v22 }
 0x5eb   : > { %v4328_v23 = vpop.trf.xlu1  ;;  %v4521_v46 = vcombine.high %v4455_v59, %v4471_v36  ;;  %v4584_v9 = vrot.slane %v4576_v2, %v7459_v61  ;;  %v4593_v32 = vcombine.high %v7671_v17, %v7675_v22 }
 0x5ec   : > { %v4512_v60 = vrot.slane %v4504_v3, %v7466_v25  ;;  %v4519_v33 = vrot.slane %v4505_v40, %v7466_v25  ;;  %v4528_v51 = vrot.slane %v4520_v29, %v7466_v25  ;;  %v4600_v58 = vrot.slane %v4592_v43, %v7459_v61 }
 0x5ed   : > { %v4360_v13 = vpop.trf.xlu0  ;;  %v4535_v15 = vrot.slane %v4521_v46, %v7466_v25 }
 0x5ee   : > { %v4640_v19 = vcombine.low %v4584_v9, %v4600_v58  ;;  %v4641_v17 = vcombine.high %v4584_v9, %v4600_v58 }
 0x5ef   : > { %v7677_v18 = vpop.trf.xlu1 }
 0x5f0   : > { %v4648_v22 = vrot.slane %v4640_v19, %v7466_v25 }
 0x5f1   : > { %v4361_v26 = vpop.trf.xlu0 }
 0x5f3   : > { %v4392_v10 = vpop.trf.xlu1 }
 0x5f4   : > { %v4472_v7 = vcombine.low %v4328_v23, %v4392_v10  ;;  %v4473_v24 = vcombine.high %v4328_v23, %v4392_v10  ;;  %v4577_v23 = vcombine.high %v7669_v5, %v7673_v62  ;;  %v4607_v10 = vrot.slane %v4593_v32, %v7459_v61 }
 0x5f5   : > { %v4424_v44 = vpop.trf.xlu0 }
 0x5f6   : > { %v4488_v50 = vcombine.low %v4360_v13, %v4424_v44  ;;  %v4489_v35 = vcombine.high %v4360_v13, %v4424_v44  ;;  %v4480_v37 = vrot.slane %v4472_v7, %v7459_v61  ;;  %v4487_v53 = vrot.slane %v4473_v24, %v7459_v61 }
 0x5f7   : > { %v4393_v45 = vpop.trf.xlu1  ;;  %v4591_v5 = vrot.slane %v4577_v23, %v7459_v61  ;;  %v4655_v44 = vrot.slane %v4641_v17, %v7466_v25 }
 0x5f8   : > { %v4496_v28 = vrot.slane %v4488_v50, %v7459_v61  ;;  %v4503_v12 = vrot.slane %v4489_v35, %v7459_v61  ;;  %v4608_v0 = vcombine.low %v7677_v18, %v4393_v45  ;;  %v4609_v57 = vcombine.high %v7677_v18, %v4393_v45 }
 0x5f9   : > { %v4425_v48 = vpop.trf.xlu0  ;;  %v4656_v24 = vcombine.low %v4591_v5, %v4607_v10 }
 0x5fa   : > { %v4536_v31 = vcombine.low %v4480_v37, %v4496_v28  ;;  %v4537_v16 = vcombine.high %v4480_v37, %v4496_v28  ;;  %v4552_v20 = vcombine.low %v4487_v53, %v4503_v12  ;;  %v4624_v56 = vcombine.low %v4361_v26, %v4425_v48 }
 0x5fb   : > { %v4553_v4 = vcombine.high %v4487_v53, %v4503_v12  ;;  %v4616_v8 = vrot.slane %v4608_v0, %v7459_v61  ;;  %v4625_v14 = vcombine.high %v4361_v26, %v4425_v48  ;;  %v4623_v18 = vrot.slane %v4609_v57, %v7459_v61 }
 0x5fc   : > { %v4544_v27 = vrot.slane %v4536_v31, %v7466_v25  ;;  %v4551_v11 = vrot.slane %v4537_v16, %v7466_v25  ;;  %v4560_v52 = vrot.slane %v4552_v20, %v7466_v25  ;;  %v4632_v34 = vrot.slane %v4624_v56, %v7459_v61 }
 0x5fd   : > { %v4567_v39 = vrot.slane %v4553_v4, %v7466_v25  ;;  %v4639_v30 = vrot.slane %v4625_v14, %v7459_v61  ;;  %v4657_v37 = vcombine.high %v4591_v5, %v4607_v10  ;;  %v4664_v61 = vrot.slane %v4656_v24, %v7466_v25 }
 0x5fe   : > { %v4569_v41 = vcombine.high %v4512_v60, %v4544_v27  ;;  %v4568_v63 = vcombine.low %v4512_v60, %v4544_v27  ;;  %v4570_v6 = vcombine.low %v4519_v33, %v4551_v11  ;;  %v4571_v1 = vcombine.high %v4519_v33, %v4551_v11 }
 0x5ff   : > { %v4672_v54 = vcombine.low %v4616_v8, %v4632_v34  ;;  %v4572_v55 = vcombine.low %v4528_v51, %v4560_v52  ;;  %v4573_v13 = vcombine.high %v4528_v51, %v4560_v52  ;;  %v4673_v38 = vcombine.high %v4616_v8, %v4632_v34 }
 0x600   : > { %6402 = vmatprep.mubr.msk.f32.mxu1 %vm4712_vm0, %v4568_v63  ;;  %v4574_v47 = vcombine.low %v4535_v15, %v4567_v39  ;;  %v4575_v7 = vcombine.high %v4535_v15, %v4567_v39  ;;  %v4688_v42 = vcombine.low %v4623_v18, %v4639_v30  ;;  %v4689_v35 = vcombine.high %v4623_v18, %v4639_v30 }
 0x601   : > { %6403 = vmatmul.mubr.msk.f32.vlgmr.msra.gmra.mxu1 %vm4712_vm0, %v4569_v41  ;;  %v4680_v26 = vrot.slane %v4672_v54, %v7466_v25  ;;  %v4687_v62 = vrot.slane %v4673_v38, %v7466_v25  ;;  %v4671_v48 = vrot.slane %v4657_v37, %v7466_v25 }
 0x602   : > { %6405 = vmatprep.mubr.msk.f32.mxu1 %vm4712_vm0, %v4570_v6  ;;  %v4696_v49 = vrot.slane %v4688_v42, %v7466_v25  ;;  %v4703_v12 = vrot.slane %v4689_v35, %v7466_v25 }
 0x603   : > { %v4704_v21 = vcombine.low %v4648_v22, %v4680_v26  ;;  %v4705_v50 = vcombine.high %v4648_v22, %v4680_v26  ;;  %v4706_v3 = vcombine.low %v4655_v44, %v4687_v62  ;;  %v4707_v28 = vcombine.high %v4655_v44, %v4687_v62 }
 0x604   : > { %v4708_v36 = vcombine.low %v4664_v61, %v4696_v49  ;;  %v4709_v40 = vcombine.high %v4664_v61, %v4696_v49  ;;  %v4710_v53 = vcombine.low %v4671_v48, %v4703_v12  ;;  %v4711_v31 = vcombine.high %v4671_v48, %v4703_v12 }
 0x605   : > { %6406 = vmatmul.mubr.msk.f32.gmra.mxu1 %vm4712_vm0, %v4571_v1 }
 0x606   : > { %6408 = vmatprep.mubr.msk.f32.mxu1 %vm4712_vm0, %v4572_v55 }
 0x609   : > { %6409 = vmatmul.mubr.msk.f32.gmra.mxu1 %vm4712_vm0, %v4573_v13 }
 0x60a   : > { %6411 = vmatprep.mubr.msk.f32.mxu1 %vm4712_vm0, %v4574_v47 }
 0x60d   : > { %6412 = vmatmul.mubr.msk.f32.gmra.mxu1 %vm4712_vm0, %v4575_v7 }
 0x60e   : > { %6414 = vmatprep.mubr.msk.f32.mxu1 %vm4712_vm0, %v4704_v21 }
 0x611   : > { %6415 = vmatmul.mubr.msk.f32.gmra.mxu1 %vm4712_vm0, %v4705_v50 }
 0x612   : > { %6417 = vmatprep.mubr.msk.f32.mxu1 %vm4712_vm0, %v4706_v3 }
 0x615   : > { %6418 = vmatmul.mubr.msk.f32.gmra.mxu1 %vm4712_vm0, %v4707_v28 }
 0x616   : > { %6420 = vmatprep.mubr.msk.f32.mxu1 %vm4712_vm0, %v4708_v36 }
 0x619   : > { %6421 = vmatmul.mubr.msk.f32.gmra.mxu1 %vm4712_vm0, %v4709_v40 }
 0x61a   : > { %6423 = vmatprep.mubr.msk.f32.mxu1 %vm4712_vm0, %v4710_v53 }
 0x61d   : > { %6424 = vmatmul.mubr.msk.f32.gmra.mxu1 %vm4712_vm0, %v4711_v31 }
 0x6c1   : > { %v6404_v16 = vpop.f32.mrf.mxu1 }
 0x6c2   : > { %4944 = vxpose.xlu1.b32.start.end [1/1] (short) (narrow) %v6404_v16, 16 }
 0x6c3   : > { %v4833_v59 = vpop.f32.mrf.mxu1 }
 0x6c5   : > { %v6407_v60 = vpop.f32.mrf.mxu1 }
 0x6c6   : > { %5008 = vxpose.xlu0.b32.start.end [1/1] (short) (narrow) %v6407_v60, 16 }
 0x6c7   : > { %4912 = vxpose.xlu1.b32.start.end [1/1] (short) (narrow) %v4833_v59, 16  ;;  %v4843_v45 = vpop.f32.mrf.mxu1 }
 0x6c9   : > { %v6410_v27 = vpop.f32.mrf.mxu1 }
 0x6cb   : > { %4976 = vxpose.xlu0.b32.start.end [1/1] (short) (narrow) %v4843_v45, 16  ;;  %v4853_v25 = vpop.f32.mrf.mxu1 }
 0x6cc   : > { %5040 = vxpose.xlu1.b32.start.end [1/1] (short) (narrow) %v4853_v25, 16 }
 0x6cd   : > { %v6413_v11 = vpop.f32.mrf.mxu1 }
 0x6cf   : > { %v4863_v20 = vpop.f32.mrf.mxu1 }
 0x6d0   : > { %5072 = vxpose.xlu0.b32.start.end [1/1] (short) (narrow) %v6410_v27, 16 }
 0x6d1   : > { %5104 = vxpose.xlu1.b32.start.end [1/1] (short) (narrow) %v4863_v20, 16  ;;  %v6416_v56 = vpop.f32.mrf.mxu1 }
 0x6d3   : > { %v4873_v29 = vpop.f32.mrf.mxu1 }
 0x6d5   : > { %5136 = vxpose.xlu0.b32.start.end [1/1] (short) (narrow) %v6413_v11, 16  ;;  %v6419_v43 = vpop.f32.mrf.mxu1 }
 0x6d6   : > { %5168 = vxpose.xlu1.b32.start.end [1/1] (short) (narrow) %v4873_v29, 16 }
 0x6d7   : > { %v4883_v33 = vpop.f32.mrf.mxu1 }
 0x6d9   : > { %v6422_v41 = vpop.f32.mrf.mxu1 }
 0x6da   : > { %5200 = vxpose.xlu0.b32.start.end [1/1] (short) (narrow) %v6416_v56, 16 }
 0x6db   : > { %5232 = vxpose.xlu1.b32.start.end [1/1] (short) (narrow) %v4883_v33, 16  ;;  %v4893_v0 = vpop.f32.mrf.mxu1 }
 0x6dd   : > { %v6425_v63 = vpop.f32.mrf.mxu1 }
 0x6df   : > { %5264 = vxpose.xlu0.b32.start.end [1/1] (short) (narrow) %v6419_v43, 16  ;;  %v4903_v2 = vpop.f32.mrf.mxu1 }
 0x6e0   : > { %5296 = vxpose.xlu1.b32.start.end [1/1] (short) (narrow) %v4893_v0, 16 }
 0x6e4   : > { %5328 = vxpose.xlu0.b32.start.end [1/1] (short) (narrow) %v6422_v41, 16 }
 0x6e5   : > { %5360 = vxpose.xlu1.b32.start.end [1/1] (short) (narrow) %v4903_v2, 16 }
 0x6e9   : > { %5392 = vxpose.xlu0.b32.start.end [1/1] (short) (narrow) %v6425_v63, 16 }
 0x73e   : > { %v4960_v4 = vpop.trf.xlu1 }
 0x73f   : > { %5426 = vst.msk [vmem:[%s6980_s15 + $0x10] sm:$0xff] %vm3448_vm7, %v4960_v4 }
 0x742   : > { %v5024_v52 = vpop.trf.xlu0  ;;  %v4961_v34 = vpop.trf.xlu1 }
 0x743   : > { %5430 = vst.msk [vmem:[%s6980_s15 + $0x30] sm:$0xff] %vm3448_vm7, %v5024_v52  ;;  %5427 = vst.msk [vmem:[%s6980_s15 + $0x18] sm:$0xff] %vm3448_vm7, %v4961_v34 }
 0x746   : > { %v5025_v6 = vpop.trf.xlu0  ;;  %v4928_v46 = vpop.trf.xlu1 }
 0x747   : > { %5431 = vst.msk [vmem:[%s6980_s15 + $0x38] sm:$0xff] %vm3448_vm7, %v5025_v6  ;;  %5424 = vst.msk [vmem:[%s6980_s15] sm:$0xff] %vm3448_vm7, %v4928_v46 }
 0x74a   : > { %v4992_v51 = vpop.trf.xlu0  ;;  %v4929_v58 = vpop.trf.xlu1 }
 0x74b   : > { %5428 = vst.msk [vmem:[%s6980_s15 + $0x20] sm:$0xff] %vm3448_vm7, %v4992_v51  ;;  %5425 = vst.msk [vmem:[%s6980_s15 + $0x8] sm:$0xff] %vm3448_vm7, %v4929_v58 }
 0x74e   : > { %v4993_v8 = vpop.trf.xlu0  ;;  %v5056_v9 = vpop.trf.xlu1 }
 0x74f   : > { %5429 = vst.msk [vmem:[%s6980_s15 + $0x28] sm:$0xff] %vm3448_vm7, %v4993_v8  ;;  %5432 = vst.msk [vmem:[%s6980_s15 + $0x40] sm:$0xff] %vm3448_vm7, %v5056_v9 }
 0x752   : > { %v5088_v1 = vpop.trf.xlu0  ;;  %v5057_v39 = vpop.trf.xlu1 }
 0x753   : > { %5434 = vst.msk [vmem:[%s6980_s15 + $0x50] sm:$0xff] %vm3448_vm7, %v5088_v1  ;;  %5433 = vst.msk [vmem:[%s6980_s15 + $0x48] sm:$0xff] %vm3448_vm7, %v5057_v39 }
 0x756   : > { %v5089_v14 = vpop.trf.xlu0  ;;  %v5120_v54 = vpop.trf.xlu1 }
 0x757   : > { %5435 = vst.msk [vmem:[%s6980_s15 + $0x58] sm:$0xff] %vm3448_vm7, %v5089_v14  ;;  %5436 = vst.msk [vmem:[%s6980_s15 + $0x60] sm:$0xff] %vm3448_vm7, %v5120_v54 }
 0x75a   : > { %v5152_v55 = vpop.trf.xlu0  ;;  %v5121_v15 = vpop.trf.xlu1 }
 0x75b   : > { %5438 = vst.msk [vmem:[%s6980_s15 + $0x70] sm:$0xff] %vm3448_vm7, %v5152_v55  ;;  %5437 = vst.msk [vmem:[%s6980_s15 + $0x68] sm:$0xff] %vm3448_vm7, %v5121_v15 }
 0x75e   : > { %v5153_v32 = vpop.trf.xlu0  ;;  %v5184_v19 = vpop.trf.xlu1 }
 0x75f   : > { %5439 = vst.msk [vmem:[%s6980_s15 + $0x78] sm:$0xff] %vm3448_vm7, %v5153_v32  ;;  %5440 = vst.msk [vmem:[%s6980_s15 + $0x80] sm:$0xff] %vm3448_vm7, %v5184_v19 }
 0x762   : > { %v5216_v57 = vpop.trf.xlu0  ;;  %v5185_v23 = vpop.trf.xlu1 }
 0x763   : > { %5442 = vst.msk [vmem:[%s6980_s15 + $0x90] sm:$0xff] %vm3448_vm7, %v5216_v57  ;;  %5441 = vst.msk [vmem:[%s6980_s15 + $0x88] sm:$0xff] %vm3448_vm7, %v5185_v23 }
 0x766   : > { %v5217_v13 = vpop.trf.xlu0  ;;  %v5248_v30 = vpop.trf.xlu1 }
 0x767   : > { %5443 = vst.msk [vmem:[%s6980_s15 + $0x98] sm:$0xff] %vm3448_vm7, %v5217_v13  ;;  %5444 = vst.msk [vmem:[%s6980_s15 + $0xa0] sm:$0xff] %vm3448_vm7, %v5248_v30 }
 0x76a   : > { %v5280_v38 = vpop.trf.xlu0  ;;  %v5249_v26 = vpop.trf.xlu1 }
 0x76b   : > { %5446 = vst.msk [vmem:[%s6980_s15 + $0xb0] sm:$0xff] %vm3448_vm7, %v5280_v38  ;;  %5445 = vst.msk [vmem:[%s6980_s15 + $0xa8] sm:$0xff] %vm3448_vm7, %v5249_v26 }
 0x76e   : > { %v5281_v47 = vpop.trf.xlu0  ;;  %v5312_v10 = vpop.trf.xlu1 }
 0x76f   : > { %5447 = vst.msk [vmem:[%s6980_s15 + $0xb8] sm:$0xff] %vm3448_vm7, %v5281_v47  ;;  %5448 = vst.msk [vmem:[%s6980_s15 + $0xc0] sm:$0xff] %vm3448_vm7, %v5312_v10 }
 0x772   : > { %v5344_v17 = vpop.trf.xlu0  ;;  %v5313_v22 = vpop.trf.xlu1 }
 0x773   : > { %5450 = vst.msk [vmem:[%s6980_s15 + $0xd0] sm:$0xff] %vm3448_vm7, %v5344_v17  ;;  %5449 = vst.msk [vmem:[%s6980_s15 + $0xc8] sm:$0xff] %vm3448_vm7, %v5313_v22 }
 0x776   : > { %v5345_v18 = vpop.trf.xlu0  ;;  %v5376_v7 = vpop.trf.xlu1 }
 0x777   : > { %5451 = vst.msk [vmem:[%s6980_s15 + $0xd8] sm:$0xff] %vm3448_vm7, %v5345_v18  ;;  %5452 = vst.msk [vmem:[%s6980_s15 + $0xe0] sm:$0xff] %vm3448_vm7, %v5376_v7 }
 0x77a   : > { %v5408_v5 = vpop.trf.xlu0  ;;  %v5377_v62 = vpop.trf.xlu1 }
 0x77b   : > { %5454 = vst.msk [vmem:[%s6980_s15 + $0xf0] sm:$0xff] %vm3448_vm7, %v5408_v5  ;;  %5453 = vst.msk [vmem:[%s6980_s15 + $0xe8] sm:$0xff] %vm3448_vm7, %v5377_v62 }
 0x77e   : > { %v5409_v42 = vpop.trf.xlu0 }
 0x77f   : > { %5455 = vst.msk [vmem:[%s6980_s15 + $0xf8] sm:$0xff] %vm3448_vm7, %v5409_v42 }
 0x780 PF: > { %s21_s14 = sadd.s32 1, %s6770_s14   ;;  %s7856_s30 = sld [smem:[#allocation10_spill]] }
 0x781   : > { %p18_p5 = scmp.ge.s32.totalorder %s21_s14, 6   ;;  %s7857_s9 = sld [smem:[#allocation15_spill]] }
 0x782   : > { %s7858_s10 = sld [smem:[#allocation11_spill]]  ;;  %s7862_s27 = smov %s6738_s28 }
 0x783   : > { %s7859_s11 = sld [smem:[#allocation12_spill]]  ;;  %s7863_s28 = smov %s6742_s29 }
 0x784   : > { %s7860_s12 = sld [smem:[#allocation13_spill]]  ;;  %s7864_s29 = smov %s6914_s22 }
 0x785   : > { %s7861_s13 = sld [smem:[#allocation14_spill]]  ;;  %20 = sbr.rel (!%p18_p5) target bundleno = 8 (0x8), region = 162 }
 0x78a   :  { %5477 = vsyncpa [#allocation5], 1 }
 0x78b   :  { %5479 = vsyncpa [#allocation5 + $0x1], 1 }

</bundles_post_ra>
